<compile_context>
chip_gen: v7x
topology: tpu7x:2x2x1
jax: 0.10.0
libtpu: 0.0.40
codegen_flags: <defaults>
</compile_context>

<pallas_src>
import functools

import jax
import jax.numpy as jnp
import numpy as np
from jax.experimental import pallas as pl
from jax.experimental.pallas import tpu as pltpu

EPS = 1e-5
LANE = 128
SUB = 8


def _round_up(n, m):
    return -(-n // m) * m


# ---------------------------------- kernel ----------------------------------

def _make_basic_block_kernel(*, is_shortcut, stride, Bt, H1, W1, W1p,
                             Cin_p, C_p, Cout_p):
    """Fused BasicBlock kernel for Bt images per grid step."""
    s = stride
    M = Bt * H1 * W1p

    def kernel(*refs):
        if is_shortcut:
            (x_ref, w1_ref, s1_ref, b1_ref, w2_ref, s2_ref, b2_ref,
             wsc_ref, ssc_ref, bsc_ref, out_ref, z1pad_ref) = refs
        else:
            (x_ref, w1_ref, s1_ref, b1_ref, w2_ref, s2_ref, b2_ref,
             out_ref, z1pad_ref) = refs

        # x_ref: (Bt, s*s, Hh, Wh, Cin_p) bf16 -- space-to-depth phases of the
        # zero-padded input; tap (ky,kx) of the strided conv is a contiguous
        # slice of phase (ky%s, kx%s).
        def x_tap(ky, kx):
            ph = (ky % s) * s + (kx % s)
            oy, ox = ky // s, kx // s
            return x_ref[:, ph, oy:oy + H1, ox:ox + W1p, :]   # (Bt,H1,W1p,Cin_p)

        # ---- conv1 (3x3, stride) : 3 MXU matmuls with K = 3*Cin_p ----
        acc1 = jnp.zeros((M, C_p), jnp.float32)
        for ky in range(3):
            patch = jnp.concatenate([x_tap(ky, kx) for kx in range(3)], axis=-1)
            patch = patch.reshape(M, 3 * Cin_p)
            acc1 = acc1 + jnp.dot(patch, w1_ref[ky],
                                  preferred_element_type=jnp.float32)
        z1 = jnp.maximum(acc1 * s1_ref[...] + b1_ref[...], 0.0)   # BN1+ReLU (f32)
        z1 = z1.reshape(Bt, H1, W1p, C_p)
        if W1p != W1:  # width-padded output columns hold garbage -> force zero
            col = jax.lax.broadcasted_iota(jnp.int32, (1, 1, W1p, 1), 2)
            z1 = jnp.where(col < W1, z1, 0.0)

        # ---- stage z1 in a zero-halo VMEM scratch for conv2 ----
        # only the 1-pixel halo strips are zeroed; interior written once.
        zrow = jnp.zeros((Bt, 1, W1p + 2, C_p), z1pad_ref.dtype)
        zcol = jnp.zeros((Bt, H1 + 2, 1, C_p), z1pad_ref.dtype)
        z1pad_ref[:, 0:1, :, :] = zrow
        z1pad_ref[:, H1 + 1:H1 + 2, :, :] = zrow
        z1pad_ref[:, :, 0:1, :] = zcol
        z1pad_ref[:, :, W1p + 1:W1p + 2, :] = zcol
        z1pad_ref[:, 1:1 + H1, 1:1 + W1p, :] = z1.astype(z1pad_ref.dtype)

        # ---- conv2 (3x3, stride 1) : 3 MXU matmuls with K = 3*C_p ----
        acc2 = jnp.zeros((M, Cout_p), jnp.float32)
        for ky in range(3):
            patch = jnp.concatenate(
                [z1pad_ref[:, ky:ky + H1, kx:kx + W1p, :] for kx in range(3)],
                axis=-1)
            patch = patch.reshape(M, 3 * C_p)
            acc2 = acc2 + jnp.dot(patch, w2_ref[ky],
                                  preferred_element_type=jnp.float32)
        z2 = acc2 * s2_ref[...] + b2_ref[...]                     # BN2 (f32)

        # ---- residual branch: both paths read the centre tap of x ----
        center = x_tap(1, 1).reshape(M, Cin_p)                    # bf16
        if is_shortcut:
            sc = jnp.dot(center, wsc_ref[...],
                         preferred_element_type=jnp.float32)
            sc = sc * ssc_ref[...] + bsc_ref[...]
        else:
            sc = center.astype(jnp.float32)                       # identity

        out = jnp.maximum(z2 + sc, 0.0).reshape(Bt, H1, W1p, Cout_p)
        if W1p != W1:
            col = jax.lax.broadcasted_iota(jnp.int32, (1, 1, W1p, 1), 2)
            out = jnp.where(col < W1, out, 0.0)
        out_ref[...] = out.astype(out_ref.dtype)

    return kernel


# ---------------------------- JAX glue (layout only) ----------------------------

def _fold_bn(gamma, beta, rmean, rvar, c_pad):
    s = gamma / jnp.sqrt(rvar + EPS)
    b = beta - rmean * s
    s = jnp.pad(s, (0, c_pad - s.shape[0]))
    b = jnp.pad(b, (0, c_pad - b.shape[0]))
    return (s.reshape(1, c_pad).astype(jnp.float32),
            b.reshape(1, c_pad).astype(jnp.float32))


def _conv3x3_slab(w, cin_p, cout_p):
    # w: (Cout, Cin, 3, 3) PyTorch OIHW -> (3, 3*cin_p, cout_p) bf16;
    # rows per ky ordered [kx=0 channels, kx=1 channels, kx=2 channels].
    cout, cin = w.shape[0], w.shape[1]
    wt = jnp.transpose(w, (2, 3, 1, 0))                 # (3, 3, Cin, Cout)
    wt = jnp.pad(wt, ((0, 0), (0, 0), (0, cin_p - cin), (0, cout_p - cout)))
    return wt.reshape(3, 3 * cin_p, cout_p).astype(jnp.bfloat16)


def _vmem_capacity_bytes():
    try:
        info = pltpu.get_tpu_info()
        cap = getattr(info, "vmem_capacity_bytes", None)
        if cap:
            return int(cap)
    except Exception:
        pass
    return 64 << 20        # conservative fallback: v7x per-TensorCore VMEM


def _pick_batch_tile(n, m_row, per_image_bytes, budget_bytes):
    """Largest divisor of n that fits the VMEM budget; stop once M >= 256 rows."""
    best = 1
    for bt in range(1, n + 1):
        if n % bt:
            continue
        if bt > 1 and bt * per_image_bytes > budget_bytes:
            break
        best = bt
        if bt * m_row >= 256:
            break
    return best


@functools.partial(jax.jit, static_argnames=("stride", "is_shortcut", "out_format"))
def basic_block_forward(x_nchw, params, *, stride=1, is_shortcut=False,
                        out_format="nchw"):
    N, Cin, H, W = x_nchw.shape
    w1 = params["conv1_w"]                      # (channel, in_channel, 3, 3)
    C = w1.shape[0]
    w2 = params["conv2_w"]                      # (out_channel, channel, 3, 3)
    Cout = w2.shape[0]
    if not is_shortcut:
        assert Cin == Cout and stride == 1, "identity shortcut needs matching shapes"
    s = stride

    Cin_p, C_p, Cout_p = (_round_up(Cin, LANE), _round_up(C, LANE),
                          _round_up(Cout, LANE))
    H1 = (H - 1) // s + 1                       # conv output height (pad=1, k=3)
    W1 = (W - 1) // s + 1
    W1p = _round_up(W1, SUB)                    # sublane-aligned matmul rows
    Hh = H1 - 1 + pl.cdiv(3, s)                 # phase rows needed by conv1 taps
    Wh = W1p - 1 + pl.cdiv(3, s)
    Hp, Wp = s * Hh, s * Wh

    # NCHW -> NHWC, bf16, channel pad to a lane multiple, 1-px zero pad top/left,
    # enough zeros bottom/right for the width-padded output columns.
    # TODO(synk): accept NHWC activations end-to-end to drop this transpose.
    x = jnp.transpose(x_nchw, (0, 2, 3, 1)).astype(jnp.bfloat16)
    x = jnp.pad(x, ((0, 0), (1, Hp - H - 1), (1, Wp - W - 1), (0, Cin_p - Cin)))
    if s == 1:
        xps = x[:, None]                        # (N, 1, Hh, Wh, Cin_p) -- no shuffle
    else:
        # space-to-depth by `stride`: phase (py,px) holds xp[:, s*i+py, s*j+px, :]
        xps = x.reshape(N, Hh, s, Wh, s, Cin_p)
        xps = jnp.transpose(xps, (0, 2, 4, 1, 3, 5)).reshape(N, s * s, Hh, Wh, Cin_p)

    w1_slab = _conv3x3_slab(w1, Cin_p, C_p)
    w2_slab = _conv3x3_slab(w2, C_p, Cout_p)
    s1, b1 = _fold_bn(params["bn1_g"], params["bn1_b"],
                      params["bn1_rm"], params["bn1_rv"], C_p)
    s2, b2 = _fold_bn(params["bn2_g"], params["bn2_b"],
                      params["bn2_rm"], params["bn2_rv"], Cout_p)

    # ---- VMEM accounting (incl. in-kernel temporaries) + batch-tile choice ----
    vmem_cap = _vmem_capacity_bytes()
    m_row = H1 * W1p
    per_image = (2 * (s * s * Hh * Wh * Cin_p * 2)          # x block, 2 buffers
                 + 2 * (H1 * W1p * Cout_p * 2)              # out block, 2 buffers
                 + (H1 + 2) * (W1p + 2) * C_p * 2           # z1pad scratch
                 + m_row * (3 * Cin_p + 3 * C_p) * 2        # bf16 tap patches
                 + m_row * (2 * C_p + 2 * Cout_p) * 4)      # f32 acc1/z1, acc2/out
    Bt = _pick_batch_tile(N, m_row, per_image, int(0.4 * vmem_cap))

    weight_bytes = ((9 * Cin_p * C_p + 9 * C_p * Cout_p) * 2
                    + (2 * C_p + 2 * Cout_p) * 4)
    if is_shortcut:
        weight_bytes += Cin_p * Cout_p * 2 + 2 * Cout_p * 4
    vmem_need = Bt * per_image + 2 * weight_bytes           # weights double-buffered
    vmem_limit = int(min(max(int(1.5 * vmem_need), 32 << 20),
                         int(0.85 * vmem_cap)))

    def full_spec(shape):
        return pl.BlockSpec(shape, lambda b, _s=shape: (0,) * len(_s))

    inputs = [xps, w1_slab, s1, b1, w2_slab, s2, b2]
    in_specs = [
        pl.BlockSpec((Bt, s * s, Hh, Wh, Cin_p), lambda b: (b, 0, 0, 0, 0)),
        full_spec((3, 3 * Cin_p, C_p)),
        full_spec((1, C_p)), full_spec((1, C_p)),
        full_spec((3, 3 * C_p, Cout_p)),
        full_spec((1, Cout_p)), full_spec((1, Cout_p)),
    ]
    if is_shortcut:
        wsc = params["sc_w"][:, :, 0, 0]                    # (Cout, Cin)
        wsc = jnp.pad(jnp.transpose(wsc, (1, 0)),
                      ((0, Cin_p - Cin), (0, Cout_p - Cout))).astype(jnp.bfloat16)
        ssc, bsc = _fold_bn(params["bnsc_g"], params["bnsc_b"],
                            params["bnsc_rm"], params["bnsc_rv"], Cout_p)
        inputs += [wsc, ssc, bsc]
        in_specs += [full_spec((Cin_p, Cout_p)),
                     full_spec((1, Cout_p)), full_spec((1, Cout_p))]

    kernel = _make_basic_block_kernel(
        is_shortcut=is_shortcut, stride=s, Bt=Bt, H1=H1, W1=W1, W1p=W1p,
        Cin_p=Cin_p, C_p=C_p, Cout_p=Cout_p)

    # ---- advisory cost estimate for XLA's scheduler ----
    flops = 2 * N * m_row * (9 * Cin_p * C_p + 9 * C_p * Cout_p)
    if is_shortcut:
        flops += 2 * N * m_row * Cin_p * Cout_p
    act_bytes = int(np.prod(xps.shape)) * 2 + N * m_row * Cout_p * 2
    param_bytes = int(sum(int(np.prod(a.shape)) * a.dtype.itemsize
                          for a in inputs[1:]))   # grid-invariant: DMA'd once
    cost = pl.CostEstimate(flops=flops, transcendentals=0,
                           bytes_accessed=act_bytes + param_bytes)

    out = pl.pallas_call(
        kernel,
        out_shape=jax.ShapeDtypeStruct((N, H1, W1p, Cout_p), jnp.bfloat16),
        grid_spec=pltpu.PrefetchScalarGridSpec(
            num_scalar_prefetch=0,
            grid=(N // Bt,),
            in_specs=in_specs,
            out_specs=pl.BlockSpec((Bt, H1, W1p, Cout_p), lambda b: (b, 0, 0, 0)),
            scratch_shapes=[pltpu.VMEM((Bt, H1 + 2, W1p + 2, C_p), jnp.bfloat16)],
        ),
        compiler_params=pltpu.CompilerParams(
            dimension_semantics=("parallel",),
            vmem_limit_bytes=vmem_limit),
        cost_estimate=cost,
    )(*inputs)

    if out_format == "nhwc_padded":
        return out                                   # (N, H1, W1p, Cout_p) bf16
    out = out[:, :, :W1, :Cout]
    return jnp.transpose(out, (0, 3, 1, 2)).astype(jnp.float32)   # NCHW f32


# ---------------------------- reference (mixed precision) ----------------------------
# Matches the kernel's numerics: bf16 matmul operands, f32 accumulation,
# f32 BN / ReLU / residual math, bf16 intermediate z1 and bf16 final store.

def _convbn_ref(x, w, gamma, beta, rmean, rvar, stride, padding):
    y = jax.lax.conv_general_dilated(
        x.astype(jnp.bfloat16), w.astype(jnp.bfloat16),
        (stride, stride), [(padding, padding), (padding, padding)],
        dimension_numbers=("NCHW", "OIHW", "NCHW"),
        preferred_element_type=jnp.float32)
    s = gamma / jnp.sqrt(rvar + EPS)
    b = beta - rmean * s
    return y * s[None, :, None, None] + b[None, :, None, None]


def basic_block_ref(x, params, *, stride=1, is_shortcut=False):
    xb = x.astype(jnp.bfloat16).astype(jnp.float32)
    z = jax.nn.relu(_convbn_ref(xb, params["conv1_w"], params["bn1_g"], params["bn1_b"],
                                params["bn1_rm"], params["bn1_rv"], stride, 1))
    z = z.astype(jnp.bfloat16).astype(jnp.float32)      # kernel stages z1 as bf16
    z = _convbn_ref(z, params["conv2_w"], params["bn2_g"], params["bn2_b"],
                    params["bn2_rm"], params["bn2_rv"], 1, 1)
    if is_shortcut:
        sc = _convbn_ref(xb, params["sc_w"], params["bnsc_g"], params["bnsc_b"],
                         params["bnsc_rm"], params["bnsc_rv"], stride, 0)
    else:
        sc = xb
    out = jax.nn.relu(z + sc)
    return out.astype(jnp.bfloat16).astype(jnp.float32)  # kernel stores bf16


# ---------------------------- deterministic params ----------------------------

def init_params(key, in_channel, channel, out_channel, is_shortcut):
    ks = jax.random.split(key, 8)

    def conv_w(k, co, ci, kh, kw):
        fan_in = ci * kh * kw
        return (jax.random.normal(k, (co, ci, kh, kw), jnp.float32)
                / np.sqrt(float(fan_in)))

    def bn(k, c):
        k1, k2, k3, k4 = jax.random.split(k, 4)
        return (1.0 + 0.1 * jax.random.normal(k1, (c,), jnp.float32),
                0.1 * jax.random.normal(k2, (c,), jnp.float32),
                0.05 * jax.random.normal(k3, (c,), jnp.float32),
                1.0 + 0.1 * jnp.abs(jax.random.normal(k4, (c,), jnp.float32)))

    p = {}
    p["conv1_w"] = conv_w(ks[0], channel, in_channel, 3, 3)
    p["bn1_g"], p["bn1_b"], p["bn1_rm"], p["bn1_rv"] = bn(ks[1], channel)
    p["conv2_w"] = conv_w(ks[2], out_channel, channel, 3, 3)
    p["bn2_g"], p["bn2_b"], p["bn2_rm"], p["bn2_rv"] = bn(ks[3], out_channel)
    if is_shortcut:
        p["sc_w"] = conv_w(ks[4], out_channel, in_channel, 1, 1)
        p["bnsc_g"], p["bnsc_b"], p["bnsc_rm"], p["bnsc_rv"] = bn(ks[5], out_channel)
    return p


if __name__ == "__main__":
    key = jax.random.PRNGKey(0)
    kx, kp1, kp2 = jax.random.split(key, 3)

    # x is NCHW like the PyTorch module expects.
    x = jax.random.normal(kx, (2, 4, 16, 16), jnp.float32)

    # Case 1: projection shortcut, stride 2 (downsampling residual block).
    p1 = init_params(kp1, in_channel=4, channel=8, out_channel=16, is_shortcut=True)
    out1 = jax.block_until_ready(basic_block_forward(x, p1, stride=2, is_shortcut=True))
    ref1 = basic_block_ref(x, p1, stride=2, is_shortcut=True)
    assert out1.shape == (2, 16, 8, 8)
    np.testing.assert_allclose(np.asarray(out1), np.asarray(ref1), rtol=2e-2, atol=2e-2)

    # Case 2: identity shortcut, stride 1 (in_channel == out_channel).
    p2 = init_params(kp2, in_channel=4, channel=8, out_channel=4, is_shortcut=False)
    out2 = jax.block_until_ready(basic_block_forward(x, p2, stride=1, is_shortcut=False))
    ref2 = basic_block_ref(x, p2, stride=1, is_shortcut=False)
    assert out2.shape == (2, 4, 16, 16)
    np.testing.assert_allclose(np.asarray(out2), np.asarray(ref2), rtol=2e-2, atol=2e-2)

    print("KERNEL_OK")
</pallas_src>

<mosaic_0001>
module attributes {stable_mosaic.version = 11 : i64} {
  func.func @kernel(%arg0: i32, %arg1: memref<2x4x9x9x128xbf16, #tpu.memory_space<vmem>>, %arg2: memref<3x384x128xbf16, #tpu.memory_space<vmem>>, %arg3: memref<1x128xf32, #tpu.memory_space<vmem>>, %arg4: memref<1x128xf32, #tpu.memory_space<vmem>>, %arg5: memref<3x384x128xbf16, #tpu.memory_space<vmem>>, %arg6: memref<1x128xf32, #tpu.memory_space<vmem>>, %arg7: memref<1x128xf32, #tpu.memory_space<vmem>>, %arg8: memref<128x128xbf16, #tpu.memory_space<vmem>>, %arg9: memref<1x128xf32, #tpu.memory_space<vmem>>, %arg10: memref<1x128xf32, #tpu.memory_space<vmem>>, %arg11: memref<2x8x8x128xbf16, #tpu.memory_space<vmem>>, %arg12: memref<2x10x10x128xbf16, #tpu.memory_space<vmem>>) attributes {dimension_semantics = [#tpu.dimension_semantics<parallel>], iteration_bounds = array<i64: 1>, scalar_prefetch = 0 : i64, scratch_operands = 1 : i64, tpu.core_type = #tpu.core_type<tc>, window_params = [{transform_indices = @transform_0, window_bounds = array<i64: 2, 4, 9, 9, 128>}, {pipeline_mode = #tpu.pipeline_mode<synchronous>, transform_indices = @transform_1, window_bounds = array<i64: 3, 384, 128>}, {pipeline_mode = #tpu.pipeline_mode<synchronous>, transform_indices = @transform_2, window_bounds = array<i64: 1, 128>}, {pipeline_mode = #tpu.pipeline_mode<synchronous>, transform_indices = @transform_3, window_bounds = array<i64: 1, 128>}, {pipeline_mode = #tpu.pipeline_mode<synchronous>, transform_indices = @transform_4, window_bounds = array<i64: 3, 384, 128>}, {pipeline_mode = #tpu.pipeline_mode<synchronous>, transform_indices = @transform_5, window_bounds = array<i64: 1, 128>}, {pipeline_mode = #tpu.pipeline_mode<synchronous>, transform_indices = @transform_6, window_bounds = array<i64: 1, 128>}, {pipeline_mode = #tpu.pipeline_mode<synchronous>, transform_indices = @transform_7, window_bounds = array<i64: 128, 128>}, {pipeline_mode = #tpu.pipeline_mode<synchronous>, transform_indices = @transform_8, window_bounds = array<i64: 1, 128>}, {pipeline_mode = #tpu.pipeline_mode<synchronous>, transform_indices = @transform_9, window_bounds = array<i64: 1, 128>}, {transform_indices = @transform_10, window_bounds = array<i64: 2, 8, 8, 128>}]} {
    %cst = arith.constant 0.000000e+00 : f32
    %0 = vector.broadcast %cst : f32 to vector<128x128xf32>
    %c0 = arith.constant 0 : index
    %c0_0 = arith.constant 0 : index
    %c0_1 = arith.constant 0 : index
    %c0_2 = arith.constant 0 : index
    %c0_3 = arith.constant 0 : index
    %1 = vector.load %arg1[%c0, %c0_0, %c0_1, %c0_2, %c0_3] : memref<2x4x9x9x128xbf16, #tpu.memory_space<vmem>>, vector<2x1x8x8x128xbf16>
    %2 = vector.shape_cast %1 : vector<2x1x8x8x128xbf16> to vector<2x8x8x128xbf16>
    %c0_4 = arith.constant 0 : index
    %c1 = arith.constant 1 : index
    %c0_5 = arith.constant 0 : index
    %c0_6 = arith.constant 0 : index
    %c0_7 = arith.constant 0 : index
    %3 = vector.load %arg1[%c0_4, %c1, %c0_5, %c0_6, %c0_7] : memref<2x4x9x9x128xbf16, #tpu.memory_space<vmem>>, vector<2x1x8x8x128xbf16>
    %4 = vector.shape_cast %3 : vector<2x1x8x8x128xbf16> to vector<2x8x8x128xbf16>
    %c0_8 = arith.constant 0 : index
    %c0_9 = arith.constant 0 : index
    %c0_10 = arith.constant 0 : index
    %c1_11 = arith.constant 1 : index
    %c0_12 = arith.constant 0 : index
    %5 = vector.load %arg1[%c0_8, %c0_9, %c0_10, %c1_11, %c0_12] : memref<2x4x9x9x128xbf16, #tpu.memory_space<vmem>>, vector<2x1x8x8x128xbf16>
    %6 = vector.shape_cast %5 : vector<2x1x8x8x128xbf16> to vector<2x8x8x128xbf16>
    %7 = tpu.concatenate %2, %4, %6 in 3 : vector<2x8x8x128xbf16>, vector<2x8x8x128xbf16>, vector<2x8x8x128xbf16> -> vector<2x8x8x384xbf16>
    %8 = vector.shape_cast %7 : vector<2x8x8x384xbf16> to vector<128x384xbf16>
    %c0_13 = arith.constant 0 : index
    %c0_14 = arith.constant 0 : index
    %c0_15 = arith.constant 0 : index
    %9 = vector.load %arg2[%c0_13, %c0_14, %c0_15] : memref<3x384x128xbf16, #tpu.memory_space<vmem>>, vector<1x384x128xbf16>
    %10 = vector.shape_cast %9 : vector<1x384x128xbf16> to vector<384x128xbf16>
    %cst_16 = arith.constant dense<0.000000e+00> : vector<128x128xf32>
    %11 = tpu.matmul %8, %10, %cst_16 {dimension_numbers = #tpu.dot_dimension_numbers<[1], [0], [0], [1], [0, 0, 1, 1], [], []>} : vector<128x384xbf16>, vector<384x128xbf16>, vector<128x128xf32> -> vector<128x128xf32>
    %12 = arith.addf %0, %11 : vector<128x128xf32>
    %c0_17 = arith.constant 0 : index
    %c2 = arith.constant 2 : index
    %c0_18 = arith.constant 0 : index
    %c0_19 = arith.constant 0 : index
    %c0_20 = arith.constant 0 : index
    %13 = vector.load %arg1[%c0_17, %c2, %c0_18, %c0_19, %c0_20] : memref<2x4x9x9x128xbf16, #tpu.memory_space<vmem>>, vector<2x1x8x8x128xbf16>
    %14 = vector.shape_cast %13 : vector<2x1x8x8x128xbf16> to vector<2x8x8x128xbf16>
    %c0_21 = arith.constant 0 : index
    %c3 = arith.constant 3 : index
    %c0_22 = arith.constant 0 : index
    %c0_23 = arith.constant 0 : index
    %c0_24 = arith.constant 0 : index
    %15 = vector.load %arg1[%c0_21, %c3, %c0_22, %c0_23, %c0_24] : memref<2x4x9x9x128xbf16, #tpu.memory_space<vmem>>, vector<2x1x8x8x128xbf16>
    %16 = vector.shape_cast %15 : vector<2x1x8x8x128xbf16> to vector<2x8x8x128xbf16>
    %c0_25 = arith.constant 0 : index
    %c2_26 = arith.constant 2 : index
    %c0_27 = arith.constant 0 : index
    %c1_28 = arith.constant 1 : index
    %c0_29 = arith.constant 0 : index
    %17 = vector.load %arg1[%c0_25, %c2_26, %c0_27, %c1_28, %c0_29] : memref<2x4x9x9x128xbf16, #tpu.memory_space<vmem>>, vector<2x1x8x8x128xbf16>
    %18 = vector.shape_cast %17 : vector<2x1x8x8x128xbf16> to vector<2x8x8x128xbf16>
    %19 = tpu.concatenate %14, %16, %18 in 3 : vector<2x8x8x128xbf16>, vector<2x8x8x128xbf16>, vector<2x8x8x128xbf16> -> vector<2x8x8x384xbf16>
    %20 = vector.shape_cast %19 : vector<2x8x8x384xbf16> to vector<128x384xbf16>
    %c1_30 = arith.constant 1 : index
    %c0_31 = arith.constant 0 : index
    %c0_32 = arith.constant 0 : index
    %21 = vector.load %arg2[%c1_30, %c0_31, %c0_32] : memref<3x384x128xbf16, #tpu.memory_space<vmem>>, vector<1x384x128xbf16>
    %22 = vector.shape_cast %21 : vector<1x384x128xbf16> to vector<384x128xbf16>
    %cst_33 = arith.constant dense<0.000000e+00> : vector<128x128xf32>
    %23 = tpu.matmul %20, %22, %cst_33 {dimension_numbers = #tpu.dot_dimension_numbers<[1], [0], [0], [1], [0, 0, 1, 1], [], []>} : vector<128x384xbf16>, vector<384x128xbf16>, vector<128x128xf32> -> vector<128x128xf32>
    %24 = arith.addf %12, %23 : vector<128x128xf32>
    %c0_34 = arith.constant 0 : index
    %c0_35 = arith.constant 0 : index
    %c1_36 = arith.constant 1 : index
    %c0_37 = arith.constant 0 : index
    %c0_38 = arith.constant 0 : index
    %25 = vector.load %arg1[%c0_34, %c0_35, %c1_36, %c0_37, %c0_38] : memref<2x4x9x9x128xbf16, #tpu.memory_space<vmem>>, vector<2x1x8x8x128xbf16>
    %26 = vector.shape_cast %25 : vector<2x1x8x8x128xbf16> to vector<2x8x8x128xbf16>
    %c0_39 = arith.constant 0 : index
    %c1_40 = arith.constant 1 : index
    %c1_41 = arith.constant 1 : index
    %c0_42 = arith.constant 0 : index
    %c0_43 = arith.constant 0 : index
    %27 = vector.load %arg1[%c0_39, %c1_40, %c1_41, %c0_42, %c0_43] : memref<2x4x9x9x128xbf16, #tpu.memory_space<vmem>>, vector<2x1x8x8x128xbf16>
    %28 = vector.shape_cast %27 : vector<2x1x8x8x128xbf16> to vector<2x8x8x128xbf16>
    %c0_44 = arith.constant 0 : index
    %c0_45 = arith.constant 0 : index
    %c1_46 = arith.constant 1 : index
    %c1_47 = arith.constant 1 : index
    %c0_48 = arith.constant 0 : index
    %29 = vector.load %arg1[%c0_44, %c0_45, %c1_46, %c1_47, %c0_48] : memref<2x4x9x9x128xbf16, #tpu.memory_space<vmem>>, vector<2x1x8x8x128xbf16>
    %30 = vector.shape_cast %29 : vector<2x1x8x8x128xbf16> to vector<2x8x8x128xbf16>
    %31 = tpu.concatenate %26, %28, %30 in 3 : vector<2x8x8x128xbf16>, vector<2x8x8x128xbf16>, vector<2x8x8x128xbf16> -> vector<2x8x8x384xbf16>
    %32 = vector.shape_cast %31 : vector<2x8x8x384xbf16> to vector<128x384xbf16>
    %c2_49 = arith.constant 2 : index
    %c0_50 = arith.constant 0 : index
    %c0_51 = arith.constant 0 : index
    %33 = vector.load %arg2[%c2_49, %c0_50, %c0_51] : memref<3x384x128xbf16, #tpu.memory_space<vmem>>, vector<1x384x128xbf16>
    %34 = vector.shape_cast %33 : vector<1x384x128xbf16> to vector<384x128xbf16>
    %cst_52 = arith.constant dense<0.000000e+00> : vector<128x128xf32>
    %35 = tpu.matmul %32, %34, %cst_52 {dimension_numbers = #tpu.dot_dimension_numbers<[1], [0], [0], [1], [0, 0, 1, 1], [], []>} : vector<128x384xbf16>, vector<384x128xbf16>, vector<128x128xf32> -> vector<128x128xf32>
    %36 = arith.addf %24, %35 : vector<128x128xf32>
    %c0_53 = arith.constant 0 : index
    %c0_54 = arith.constant 0 : index
    %37 = vector.load %arg3[%c0_53, %c0_54] : memref<1x128xf32, #tpu.memory_space<vmem>>, vector<1x128xf32>
    %38 = vector.broadcast %37 : vector<1x128xf32> to vector<128x128xf32>
    %39 = arith.mulf %36, %38 : vector<128x128xf32>
    %c0_55 = arith.constant 0 : index
    %c0_56 = arith.constant 0 : index
    %40 = vector.load %arg4[%c0_55, %c0_56] : memref<1x128xf32, #tpu.memory_space<vmem>>, vector<1x128xf32>
    %41 = vector.broadcast %40 : vector<1x128xf32> to vector<128x128xf32>
    %42 = arith.addf %39, %41 : vector<128x128xf32>
    %cst_57 = arith.constant 0.000000e+00 : f32
    %43 = vector.broadcast %cst_57 : f32 to vector<128x128xf32>
    %44 = arith.maximumf %42, %43 : vector<128x128xf32>
    %45 = vector.shape_cast %44 : vector<128x128xf32> to vector<2x8x8x128xf32>
    %cst_58 = arith.constant 0.000000e+00 : bf16
    %46 = vector.broadcast %cst_58 : bf16 to vector<2x1x10x128xbf16>
    %cst_59 = arith.constant 0.000000e+00 : bf16
    %47 = vector.broadcast %cst_59 : bf16 to vector<2x10x1x128xbf16>
    %c0_60 = arith.constant 0 : index
    %c0_61 = arith.constant 0 : index
    %c0_62 = arith.constant 0 : index
    %c0_63 = arith.constant 0 : index
    %48 = vector.load %arg12[%c0_60, %c0_61, %c0_62, %c0_63] : memref<2x10x10x128xbf16, #tpu.memory_space<vmem>>, vector<2x1x10x128xbf16>
    tpu.vector_store %arg12[%c0_60, %c0_61, %c0_62, %c0_63], %46 {strides = array<i32>} : memref<2x10x10x128xbf16, #tpu.memory_space<vmem>>, vector<2x1x10x128xbf16>,
    %c0_64 = arith.constant 0 : index
    %c9 = arith.constant 9 : index
    %c0_65 = arith.constant 0 : index
    %c0_66 = arith.constant 0 : index
    %49 = vector.load %arg12[%c0_64, %c9, %c0_65, %c0_66] : memref<2x10x10x128xbf16, #tpu.memory_space<vmem>>, vector<2x1x10x128xbf16>
    tpu.vector_store %arg12[%c0_64, %c9, %c0_65, %c0_66], %46 {strides = array<i32>} : memref<2x10x10x128xbf16, #tpu.memory_space<vmem>>, vector<2x1x10x128xbf16>,
    %c0_67 = arith.constant 0 : index
    %c0_68 = arith.constant 0 : index
    %c0_69 = arith.constant 0 : index
    %c0_70 = arith.constant 0 : index
    %50 = vector.load %arg12[%c0_67, %c0_68, %c0_69, %c0_70] : memref<2x10x10x128xbf16, #tpu.memory_space<vmem>>, vector<2x10x1x128xbf16>
    tpu.vector_store %arg12[%c0_67, %c0_68, %c0_69, %c0_70], %47 {strides = array<i32>} : memref<2x10x10x128xbf16, #tpu.memory_space<vmem>>, vector<2x10x1x128xbf16>,
    %c0_71 = arith.constant 0 : index
    %c0_72 = arith.constant 0 : index
    %c9_73 = arith.constant 9 : index
    %c0_74 = arith.constant 0 : index
    %51 = vector.load %arg12[%c0_71, %c0_72, %c9_73, %c0_74] : memref<2x10x10x128xbf16, #tpu.memory_space<vmem>>, vector<2x10x1x128xbf16>
    tpu.vector_store %arg12[%c0_71, %c0_72, %c9_73, %c0_74], %47 {strides = array<i32>} : memref<2x10x10x128xbf16, #tpu.memory_space<vmem>>, vector<2x10x1x128xbf16>,
    %52 = arith.truncf %45 : vector<2x8x8x128xf32> to vector<2x8x8x128xbf16>
    %c0_75 = arith.constant 0 : index
    %c1_76 = arith.constant 1 : index
    %c1_77 = arith.constant 1 : index
    %c0_78 = arith.constant 0 : index
    %53 = vector.load %arg12[%c0_75, %c1_76, %c1_77, %c0_78] : memref<2x10x10x128xbf16, #tpu.memory_space<vmem>>, vector<2x8x8x128xbf16>
    tpu.vector_store %arg12[%c0_75, %c1_76, %c1_77, %c0_78], %52 {strides = array<i32>} : memref<2x10x10x128xbf16, #tpu.memory_space<vmem>>, vector<2x8x8x128xbf16>,
    %cst_79 = arith.constant 0.000000e+00 : f32
    %54 = vector.broadcast %cst_79 : f32 to vector<128x128xf32>
    %c0_80 = arith.constant 0 : index
    %c0_81 = arith.constant 0 : index
    %c0_82 = arith.constant 0 : index
    %c0_83 = arith.constant 0 : index
    %55 = vector.load %arg12[%c0_80, %c0_81, %c0_82, %c0_83] : memref<2x10x10x128xbf16, #tpu.memory_space<vmem>>, vector<2x8x8x128xbf16>
    %c0_84 = arith.constant 0 : index
    %c0_85 = arith.constant 0 : index
    %c1_86 = arith.constant 1 : index
    %c0_87 = arith.constant 0 : index
    %56 = vector.load %arg12[%c0_84, %c0_85, %c1_86, %c0_87] : memref<2x10x10x128xbf16, #tpu.memory_space<vmem>>, vector<2x8x8x128xbf16>
    %c0_88 = arith.constant 0 : index
    %c0_89 = arith.constant 0 : index
    %c2_90 = arith.constant 2 : index
    %c0_91 = arith.constant 0 : index
    %57 = vector.load %arg12[%c0_88, %c0_89, %c2_90, %c0_91] : memref<2x10x10x128xbf16, #tpu.memory_space<vmem>>, vector<2x8x8x128xbf16>
    %58 = tpu.concatenate %55, %56, %57 in 3 : vector<2x8x8x128xbf16>, vector<2x8x8x128xbf16>, vector<2x8x8x128xbf16> -> vector<2x8x8x384xbf16>
    %59 = vector.shape_cast %58 : vector<2x8x8x384xbf16> to vector<128x384xbf16>
    %c0_92 = arith.constant 0 : index
    %c0_93 = arith.constant 0 : index
    %c0_94 = arith.constant 0 : index
    %60 = vector.load %arg5[%c0_92, %c0_93, %c0_94] : memref<3x384x128xbf16, #tpu.memory_space<vmem>>, vector<1x384x128xbf16>
    %61 = vector.shape_cast %60 : vector<1x384x128xbf16> to vector<384x128xbf16>
    %cst_95 = arith.constant dense<0.000000e+00> : vector<128x128xf32>
    %62 = tpu.matmul %59, %61, %cst_95 {dimension_numbers = #tpu.dot_dimension_numbers<[1], [0], [0], [1], [0, 0, 1, 1], [], []>} : vector<128x384xbf16>, vector<384x128xbf16>, vector<128x128xf32> -> vector<128x128xf32>
    %63 = arith.addf %54, %62 : vector<128x128xf32>
    %c0_96 = arith.constant 0 : index
    %c1_97 = arith.constant 1 : index
    %c0_98 = arith.constant 0 : index
    %c0_99 = arith.constant 0 : index
    %64 = vector.load %arg12[%c0_96, %c1_97, %c0_98, %c0_99] : memref<2x10x10x128xbf16, #tpu.memory_space<vmem>>, vector<2x8x8x128xbf16>
    %c0_100 = arith.constant 0 : index
    %c1_101 = arith.constant 1 : index
    %c1_102 = arith.constant 1 : index
    %c0_103 = arith.constant 0 : index
    %65 = vector.load %arg12[%c0_100, %c1_101, %c1_102, %c0_103] : memref<2x10x10x128xbf16, #tpu.memory_space<vmem>>, vector<2x8x8x128xbf16>
    %c0_104 = arith.constant 0 : index
    %c1_105 = arith.constant 1 : index
    %c2_106 = arith.constant 2 : index
    %c0_107 = arith.constant 0 : index
    %66 = vector.load %arg12[%c0_104, %c1_105, %c2_106, %c0_107] : memref<2x10x10x128xbf16, #tpu.memory_space<vmem>>, vector<2x8x8x128xbf16>
    %67 = tpu.concatenate %64, %65, %66 in 3 : vector<2x8x8x128xbf16>, vector<2x8x8x128xbf16>, vector<2x8x8x128xbf16> -> vector<2x8x8x384xbf16>
    %68 = vector.shape_cast %67 : vector<2x8x8x384xbf16> to vector<128x384xbf16>
    %c1_108 = arith.constant 1 : index
    %c0_109 = arith.constant 0 : index
    %c0_110 = arith.constant 0 : index
    %69 = vector.load %arg5[%c1_108, %c0_109, %c0_110] : memref<3x384x128xbf16, #tpu.memory_space<vmem>>, vector<1x384x128xbf16>
    %70 = vector.shape_cast %69 : vector<1x384x128xbf16> to vector<384x128xbf16>
    %cst_111 = arith.constant dense<0.000000e+00> : vector<128x128xf32>
    %71 = tpu.matmul %68, %70, %cst_111 {dimension_numbers = #tpu.dot_dimension_numbers<[1], [0], [0], [1], [0, 0, 1, 1], [], []>} : vector<128x384xbf16>, vector<384x128xbf16>, vector<128x128xf32> -> vector<128x128xf32>
    %72 = arith.addf %63, %71 : vector<128x128xf32>
    %c0_112 = arith.constant 0 : index
    %c2_113 = arith.constant 2 : index
    %c0_114 = arith.constant 0 : index
    %c0_115 = arith.constant 0 : index
    %73 = vector.load %arg12[%c0_112, %c2_113, %c0_114, %c0_115] : memref<2x10x10x128xbf16, #tpu.memory_space<vmem>>, vector<2x8x8x128xbf16>
    %c0_116 = arith.constant 0 : index
    %c2_117 = arith.constant 2 : index
    %c1_118 = arith.constant 1 : index
    %c0_119 = arith.constant 0 : index
    %74 = vector.load %arg12[%c0_116, %c2_117, %c1_118, %c0_119] : memref<2x10x10x128xbf16, #tpu.memory_space<vmem>>, vector<2x8x8x128xbf16>
    %c0_120 = arith.constant 0 : index
    %c2_121 = arith.constant 2 : index
    %c2_122 = arith.constant 2 : index
    %c0_123 = arith.constant 0 : index
    %75 = vector.load %arg12[%c0_120, %c2_121, %c2_122, %c0_123] : memref<2x10x10x128xbf16, #tpu.memory_space<vmem>>, vector<2x8x8x128xbf16>
    %76 = tpu.concatenate %73, %74, %75 in 3 : vector<2x8x8x128xbf16>, vector<2x8x8x128xbf16>, vector<2x8x8x128xbf16> -> vector<2x8x8x384xbf16>
    %77 = vector.shape_cast %76 : vector<2x8x8x384xbf16> to vector<128x384xbf16>
    %c2_124 = arith.constant 2 : index
    %c0_125 = arith.constant 0 : index
    %c0_126 = arith.constant 0 : index
    %78 = vector.load %arg5[%c2_124, %c0_125, %c0_126] : memref<3x384x128xbf16, #tpu.memory_space<vmem>>, vector<1x384x128xbf16>
    %79 = vector.shape_cast %78 : vector<1x384x128xbf16> to vector<384x128xbf16>
    %cst_127 = arith.constant dense<0.000000e+00> : vector<128x128xf32>
    %80 = tpu.matmul %77, %79, %cst_127 {dimension_numbers = #tpu.dot_dimension_numbers<[1], [0], [0], [1], [0, 0, 1, 1], [], []>} : vector<128x384xbf16>, vector<384x128xbf16>, vector<128x128xf32> -> vector<128x128xf32>
    %81 = arith.addf %72, %80 : vector<128x128xf32>
    %c0_128 = arith.constant 0 : index
    %c0_129 = arith.constant 0 : index
    %82 = vector.load %arg6[%c0_128, %c0_129] : memref<1x128xf32, #tpu.memory_space<vmem>>, vector<1x128xf32>
    %83 = vector.broadcast %82 : vector<1x128xf32> to vector<128x128xf32>
    %84 = arith.mulf %81, %83 : vector<128x128xf32>
    %c0_130 = arith.constant 0 : index
    %c0_131 = arith.constant 0 : index
    %85 = vector.load %arg7[%c0_130, %c0_131] : memref<1x128xf32, #tpu.memory_space<vmem>>, vector<1x128xf32>
    %86 = vector.broadcast %85 : vector<1x128xf32> to vector<128x128xf32>
    %87 = arith.addf %84, %86 : vector<128x128xf32>
    %c0_132 = arith.constant 0 : index
    %c3_133 = arith.constant 3 : index
    %c0_134 = arith.constant 0 : index
    %c0_135 = arith.constant 0 : index
    %c0_136 = arith.constant 0 : index
    %88 = vector.load %arg1[%c0_132, %c3_133, %c0_134, %c0_135, %c0_136] : memref<2x4x9x9x128xbf16, #tpu.memory_space<vmem>>, vector<2x1x8x8x128xbf16>
    %89 = vector.shape_cast %88 : vector<2x1x8x8x128xbf16> to vector<2x8x8x128xbf16>
    %90 = vector.shape_cast %89 : vector<2x8x8x128xbf16> to vector<128x128xbf16>
    %c0_137 = arith.constant 0 : index
    %c0_138 = arith.constant 0 : index
    %91 = vector.load %arg8[%c0_137, %c0_138] : memref<128x128xbf16, #tpu.memory_space<vmem>>, vector<128x128xbf16>
    %cst_139 = arith.constant dense<0.000000e+00> : vector<128x128xf32>
    %92 = tpu.matmul %90, %91, %cst_139 {dimension_numbers = #tpu.dot_dimension_numbers<[1], [0], [0], [1], [0, 0, 1, 1], [], []>} : vector<128x128xbf16>, vector<128x128xbf16>, vector<128x128xf32> -> vector<128x128xf32>
    %c0_140 = arith.constant 0 : index
    %c0_141 = arith.constant 0 : index
    %93 = vector.load %arg9[%c0_140, %c0_141] : memref<1x128xf32, #tpu.memory_space<vmem>>, vector<1x128xf32>
    %94 = vector.broadcast %93 : vector<1x128xf32> to vector<128x128xf32>
    %95 = arith.mulf %92, %94 : vector<128x128xf32>
    %c0_142 = arith.constant 0 : index
    %c0_143 = arith.constant 0 : index
    %96 = vector.load %arg10[%c0_142, %c0_143] : memref<1x128xf32, #tpu.memory_space<vmem>>, vector<1x128xf32>
    %97 = vector.broadcast %96 : vector<1x128xf32> to vector<128x128xf32>
    %98 = arith.addf %95, %97 : vector<128x128xf32>
    %99 = arith.addf %87, %98 : vector<128x128xf32>
    %cst_144 = arith.constant 0.000000e+00 : f32
    %100 = vector.broadcast %cst_144 : f32 to vector<128x128xf32>
    %101 = arith.maximumf %99, %100 : vector<128x128xf32>
    %102 = vector.shape_cast %101 : vector<128x128xf32> to vector<2x8x8x128xf32>
    %103 = arith.truncf %102 : vector<2x8x8x128xf32> to vector<2x8x8x128xbf16>
    %c0_145 = arith.constant 0 : index
    %c0_146 = arith.constant 0 : index
    %c0_147 = arith.constant 0 : index
    %c0_148 = arith.constant 0 : index
    %104 = vector.load %arg11[%c0_145, %c0_146, %c0_147, %c0_148] : memref<2x8x8x128xbf16, #tpu.memory_space<vmem>>, vector<2x8x8x128xbf16>
    tpu.vector_store %arg11[%c0_145, %c0_146, %c0_147, %c0_148], %103 {strides = array<i32>} : memref<2x8x8x128xbf16, #tpu.memory_space<vmem>>, vector<2x8x8x128xbf16>,
    return
  }
  func.func @transform_0(%arg0: i32) -> (i32, i32, i32, i32, i32) {
    %c0_i32 = arith.constant 0 : i32
    %c0_i32_0 = arith.constant 0 : i32
    %c0_i32_1 = arith.constant 0 : i32
    %c0_i32_2 = arith.constant 0 : i32
    %c0_i32_3 = arith.constant 0 : i32
    return %arg0, %c0_i32, %c0_i32_0, %c0_i32_1, %c0_i32_2 : i32, i32, i32, i32, i32
  }
  func.func @transform_1(%arg0: i32) -> (i32, i32, i32) {
    %c0_i32 = arith.constant 0 : i32
    %c0_i32_0 = arith.constant 0 : i32
    %c0_i32_1 = arith.constant 0 : i32
    %c0_i32_2 = arith.constant 0 : i32
    return %c0_i32, %c0_i32_0, %c0_i32_1 : i32, i32, i32
  }
  func.func @transform_2(%arg0: i32) -> (i32, i32) {
    %c0_i32 = arith.constant 0 : i32
    %c0_i32_0 = arith.constant 0 : i32
    %c0_i32_1 = arith.constant 0 : i32
    return %c0_i32, %c0_i32_0 : i32, i32
  }
  func.func @transform_3(%arg0: i32) -> (i32, i32) {
    %c0_i32 = arith.constant 0 : i32
    %c0_i32_0 = arith.constant 0 : i32
    %c0_i32_1 = arith.constant 0 : i32
    return %c0_i32, %c0_i32_0 : i32, i32
  }
  func.func @transform_4(%arg0: i32) -> (i32, i32, i32) {
    %c0_i32 = arith.constant 0 : i32
    %c0_i32_0 = arith.constant 0 : i32
    %c0_i32_1 = arith.constant 0 : i32
    %c0_i32_2 = arith.constant 0 : i32
    return %c0_i32, %c0_i32_0, %c0_i32_1 : i32, i32, i32
  }
  func.func @transform_5(%arg0: i32) -> (i32, i32) {
    %c0_i32 = arith.constant 0 : i32
    %c0_i32_0 = arith.constant 0 : i32
    %c0_i32_1 = arith.constant 0 : i32
    return %c0_i32, %c0_i32_0 : i32, i32
  }
  func.func @transform_6(%arg0: i32) -> (i32, i32) {
    %c0_i32 = arith.constant 0 : i32
    %c0_i32_0 = arith.constant 0 : i32
    %c0_i32_1 = arith.constant 0 : i32
    return %c0_i32, %c0_i32_0 : i32, i32
  }
  func.func @transform_7(%arg0: i32) -> (i32, i32) {
    %c0_i32 = arith.constant 0 : i32
    %c0_i32_0 = arith.constant 0 : i32
    %c0_i32_1 = arith.constant 0 : i32
    return %c0_i32, %c0_i32_0 : i32, i32
  }
  func.func @transform_8(%arg0: i32) -> (i32, i32) {
    %c0_i32 = arith.constant 0 : i32
    %c0_i32_0 = arith.constant 0 : i32
    %c0_i32_1 = arith.constant 0 : i32
    return %c0_i32, %c0_i32_0 : i32, i32
  }
  func.func @transform_9(%arg0: i32) -> (i32, i32) {
    %c0_i32 = arith.constant 0 : i32
    %c0_i32_0 = arith.constant 0 : i32
    %c0_i32_1 = arith.constant 0 : i32
    return %c0_i32, %c0_i32_0 : i32, i32
  }
  func.func @transform_10(%arg0: i32) -> (i32, i32, i32, i32) {
    %c0_i32 = arith.constant 0 : i32
    %c0_i32_0 = arith.constant 0 : i32
    %c0_i32_1 = arith.constant 0 : i32
    %c0_i32_2 = arith.constant 0 : i32
    return %arg0, %c0_i32, %c0_i32_0, %c0_i32_1 : i32, i32, i32, i32
  }
}

</mosaic_0001>

<bundles_post_ra>
// kernel: basic_block_forward.1
= control target key start
LH: loop header
LB: loop body
LE: loop exit
PB: predicated region body
PF: predicated region fallthrough
CT: control target
= control target key end

     0   :  { %vm2296_vm0 = vcmask 1040384   ;;  %vm2297_vm1 = vsmask.f32 256  ;;  %vm2359_vm2 = vsmask.f32 7938  ;;  %vm2646_vm5 = vcmask 1043456   ;;  %s9761_s1 = inlined_call_operand.vmem [shape: bf16[3,384,128], index: 1, kind: input, shape index: {}]   ;;  %s9762_s0 = inlined_call_operand.vmem [shape: bf16[2,4,9,9,128], index: 0, kind: input, shape index: {}]   ;;  %s9763_s4 = inlined_call_operand.vmem [shape: bf16[3,384,128], index: 4, kind: input, shape index: {}]   ;;  %s9764_s2 = inlined_call_operand.vmem [shape: f32[1,128], index: 2, kind: input, shape index: {}]   ;;  %s9765_s3 = inlined_call_operand.vmem [shape: f32[1,128], index: 3, kind: input, shape index: {}]   ;;  %s9766_s7 = inlined_call_operand.vmem [shape: bf16[128,128], index: 7, kind: input, shape index: {}]   ;;  %s9767_s5 = inlined_call_operand.vmem [shape: f32[1,128], index: 5, kind: input, shape index: {}]   ;;  %s9768_s8 = inlined_call_operand.vmem [shape: f32[1,128], index: 8, kind: input, shape index: {}]   ;;  %s9769_s6 = inlined_call_operand.vmem [shape: f32[1,128], index: 6, kind: input, shape index: {}]   ;;  %s9770_s9 = inlined_call_operand.vmem [shape: f32[1,128], index: 9, kind: input, shape index: {}]   ;;  %s9771_s10 = inlined_call_operand.vmem [shape: bf16[2,8,8,128], index: 10, kind: output, shape index: {}]  }
   0x1   :  { %v7192_v0 = vld [vmem:[%s9761_s1 + $0x100] sm:$0xff]   ;;  %v7195_v3 = vld [vmem:[%s9761_s1 + $0x108] sm:$0xff]   ;;  %v7198_v6 = vld [vmem:[%s9761_s1 + $0x110] sm:$0xff]  }
   0x2   :  { %v7193_v1 = vld [vmem:[%s9761_s1 + $0x140] sm:$0xff]   ;;  %6311 = vmatprep.subr.bf16.mxu0 %v7192_v0  ;;  %v7196_v4 = vld [vmem:[%s9761_s1 + $0x148] sm:$0xff]   ;;  %v7199_v7 = vld [vmem:[%s9761_s1 + $0x150] sm:$0xff]  }
   0x3   :  { %v7194_v2 = vld [vmem:[%s9761_s1 + $0xc0] sm:$0xff]   ;;  %6807 = vmatprep.subr.bf16.mxu1 %v7193_v1  ;;  %v7197_v5 = vld [vmem:[%s9761_s1 + $0xc8] sm:$0xff]   ;;  %v7200_v8 = vld [vmem:[%s9761_s1 + $0xd0] sm:$0xff]  }
   0x4   :  { %6312 = vmatpush3.bf16.msra.mxu0 %v7194_v2  ;;  %6808 = vmatpush3.bf16.msra.mxu1 %v7193_v1  ;;  %v7201_v9 = vld [vmem:[%s9761_s1 + $0x118] sm:$0xff]   ;;  %v7204_v12 = vld [vmem:[%s9761_s1 + $0x120] sm:$0xff]   ;;  %v7207_v15 = vld [vmem:[%s9761_s1 + $0x128] sm:$0xff]  }
   0x5   :  { %6313 = vmatprep.subr.bf16.mxu0 %v7195_v3  ;;  %6809 = vmatprep.subr.bf16.mxu1 %v7196_v4  ;;  %v7202_v10 = vld [vmem:[%s9761_s1 + $0x158] sm:$0xff]   ;;  %v7205_v13 = vld [vmem:[%s9761_s1 + $0x160] sm:$0xff]   ;;  %v7208_v16 = vld [vmem:[%s9761_s1 + $0x168] sm:$0xff]  }
   0x6   :  { %v7203_v11 = vld [vmem:[%s9761_s1 + $0xd8] sm:$0xff]   ;;  %v7206_v14 = vld [vmem:[%s9761_s1 + $0xe0] sm:$0xff]   ;;  %v7209_v17 = vld [vmem:[%s9761_s1 + $0xe8] sm:$0xff]  }
   0x7   :  { %v7210_v18 = vld [vmem:[%s9761_s1 + $0x130] sm:$0xff]   ;;  %v7213_v21 = vld [vmem:[%s9761_s1 + $0x138] sm:$0xff]   ;;  %v7711_v29 = vld [vmem:[%s9762_s0 + $0xa0] sm:$0xf] }
   0x8   :  { %6314 = vmatpush3.bf16.msra.mxu0 %v7197_v5  ;;  %6810 = vmatpush3.bf16.msra.mxu1 %v7196_v4  ;;  %v7211_v19 = vld [vmem:[%s9761_s1 + $0x170] sm:$0xff]   ;;  %v7214_v22 = vld [vmem:[%s9761_s1 + $0x178] sm:$0xff]   ;;  %v7716_v30 = vld [vmem:[%s9762_s0 + $0xa8] sm:$0xf] }
   0x9   :  { %6315 = vmatprep.subr.bf16.mxu0 %v7198_v6  ;;  %6811 = vmatprep.subr.bf16.mxu1 %v7199_v7  ;;  %v7212_v20 = vld [vmem:[%s9761_s1 + $0xf0] sm:$0xff]   ;;  %v7216_v23 = vld [vmem:[%s9762_s0 + $0xd8] ss:$8 sps:$4 sm:$0xff]   ;;  %v5523_v27 = vld [vmem:[%s9762_s0 + $0x9c] sm:$0x1]  ;;  %v5605_v6 = vcombine.low %v7711_v29, %v7716_v30 }
   0xa   :  { %v5490_v24 = vld [vmem:[%s9762_s0 + $0x90] sm:$0xf]  ;;  %v5491_v25 = vld [vmem:[%s9762_s0 + $0x98] sm:$0xf]  ;;  %v5522_v26 = vld [vmem:[%s9762_s0 + $0x94] sm:$0x1]  ;;  %936 = vmatprep.mubr.bf16.mxu0 %v7216_v23 }
   0xb   :  { %v5538_v28 = vcombine.low %v5490_v24, %v5522_v26  ;;  %v5539_v31 = vcombine.low %v5491_v25, %v5523_v27  ;;  %v5524_v32 = vld [vmem:[%s9762_s0 + $0xa4] sm:$0x1]  ;;  %v5525_v33 = vld [vmem:[%s9762_s0 + $0xac] sm:$0x1]  ;;  %v7215_v34 = vld [vmem:[%s9761_s1 + $0xf8] sm:$0xff]   ;;  %v5602_v46 = vcombine.low %v5490_v24, %v5491_v25 }
   0xc   :  { %6316 = vmatpush3.bf16.msra.mxu0 %v7200_v8  ;;  %6812 = vmatpush3.bf16.msra.mxu1 %v7199_v7  ;;  %v5540_v37 = vcombine.low %v7711_v29, %v5524_v32  ;;  %v5541_v38 = vcombine.low %v7716_v30, %v5525_v33  ;;  %v7222_v39 = vld [vmem:[%s9761_s1 + $0x40] sm:$0xff]   ;;  %v7226_v55 = vld [vmem:[%s9762_s0 + $0xe8] ss:$8 sps:$4 sm:$0xff]   ;;  %v7746_v57 = vld [vmem:[%s9762_s0 + $0xb8] sm:$0xf] }
   0xd   :  { %6317 = vmatprep.subr.bf16.mxu0 %v7201_v9  ;;  %6813 = vmatprep.subr.bf16.mxu1 %v7202_v10  ;;  %v504_v35 = vshrl.u32 %v5538_v28, 16  ;;  %v506_v36 = vshll.u32 %v5538_v28, 16  ;;  %v511_v40 = vshrl.u32 %v5539_v31, 16  ;;  %v513_v41 = vshll.u32 %v5539_v31, 16  ;;  %v7223_v54 = vld [vmem:[%s9761_s1] sm:$0xff]   ;;  %v7224_v60 = vld [vmem:[%s9761_s1 + $0x48] sm:$0xff]   ;;  %vm8473_vm3 = vmand %vm2296_vm0, %vm2297_vm1 }
   0xe   :  { %v518_v43 = vshrl.u32 %v5540_v37, 16  ;;  %v520_v44 = vshll.u32 %v5540_v37, 16  ;;  %v525_v47 = vshrl.u32 %v5541_v38, 16  ;;  %v527_v48 = vshll.u32 %v5541_v38, 16  ;;  %v7741_v56 = vld [vmem:[%s9762_s0 + $0xb0] sm:$0xf]  ;;  %vm8480_vm4 = vmand %vm2296_vm0, %vm2359_vm2 }
   0xf   :  { %v508_v42 = vrot.slane %v506_v36, 1  ;;  %v515_v45 = vrot.slane %v513_v41, 1  ;;  %v5526_v61 = vld [vmem:[%s9762_s0 + $0xb4] sm:$0x1]  ;;  %v5527_v62 = vld [vmem:[%s9762_s0 + $0xbc] sm:$0x1]  ;;  %vm8750_vm6 = vmand %vm2646_vm5, %vm2359_vm2 }
  0x10   :  { %6318 = vmatpush3.bf16.msra.mxu0 %v7203_v11  ;;  %6814 = vmatpush3.bf16.msra.mxu1 %v7202_v10  ;;  %v522_v50 = vrot.slane %v520_v44, 1  ;;  %v529_v52 = vrot.slane %v527_v48, 1  ;;  %v7760_v63 = vld [vmem:[%s9762_s0 + $0xc0] sm:$0xf]  ;;  %v5542_v0 = vcombine.low %v7741_v56, %v5526_v61  ;;  %v5543_v1 = vcombine.low %v7746_v57, %v5527_v62  ;;  %v7767_v2 = vld [vmem:[%s9762_s0 + $0xc8] sm:$0xf] }
  0x11   :  { %6319 = vmatprep.subr.bf16.mxu0 %v7204_v12  ;;  %6815 = vmatprep.subr.bf16.mxu1 %v7205_v13  ;;  %v509_v49 = vor.u32 %v508_v42, %v504_v35  ;;  %v516_v51 = vor.u32 %v515_v45, %v511_v40  ;;  %v5528_v3 = vld [vmem:[%s9762_s0 + $0xc4] sm:$0x1]  ;;  %v5529_v4 = vld [vmem:[%s9762_s0 + $0xcc] sm:$0x1]  ;;  %v7233_v25 = vld [vmem:[%s9761_s1 + $0x10] sm:$0xff]   ;;  %v5608_v48 = vcombine.low %v7741_v56, %v7746_v57 }
  0x12   :  { %v523_v53 = vor.u32 %v522_v50, %v518_v43  ;;  %v530_v59 = vor.u32 %v529_v52, %v525_v47  ;;  %v5544_v7 = vcombine.low %v7760_v63, %v5528_v3  ;;  %v5545_v8 = vcombine.low %v7767_v2, %v5529_v4  ;;  %v7236_v26 = vld [vmem:[%s9762_s0 + $0xf8] ss:$8 sps:$4 sm:$0xff]   ;;  %v7797_v30 = vld [vmem:[%s9762_s0 + $0x1b0] sm:$0xf]  ;;  %v5530_v32 = vld [vmem:[%s9762_s0 + $0x1b4] sm:$0x1] }
  0x13   :  { %v5604_v58 = vcombine.low %v509_v49, %v516_v51  ;;  %v532_v9 = vshrl.u32 %v5542_v0, 16  ;;  %v534_v10 = vshll.u32 %v5542_v0, 16  ;;  %v539_v11 = vshrl.u32 %v5543_v1, 16  ;;  %v7234_v29 = vld [vmem:[%s9761_s1 + $0x58] sm:$0xff]   ;;  %v7814_v36 = vld [vmem:[%s9762_s0 + $0x1c0] sm:$0xf] }
  0x14   :  { %6320 = vmatpush3.bf16.msra.mxu0 %v7206_v14  ;;  %6816 = vmatpush3.bf16.msra.mxu1 %v7205_v13  ;;  %v5607_v5 = vcombine.low %v523_v53, %v530_v59  ;;  %v541_v12 = vshll.u32 %v5543_v1, 16  ;;  %v546_v13 = vshrl.u32 %v5544_v7, 16  ;;  %v548_v14 = vshll.u32 %v5544_v7, 16  ;;  %v7802_v31 = vld [vmem:[%s9762_s0 + $0x1b8] sm:$0xf]  ;;  %v7243_v56 = vld [vmem:[%s9761_s1 + $0x20] sm:$0xff]  }
  0x15   :  { %6321 = vmatprep.subr.bf16.mxu0 %v7207_v15  ;;  %6817 = vmatprep.subr.bf16.mxu1 %v7208_v16  ;;  %v553_v15 = vshrl.u32 %v5545_v8, 16  ;;  %v5546_v35 = vcombine.low %v7797_v30, %v5530_v32  ;;  %v7819_v37 = vld [vmem:[%s9762_s0 + $0x1c8] sm:$0xf]  ;;  %v5532_v40 = vld [vmem:[%s9762_s0 + $0x1c4] sm:$0x1]  ;;  %v7235_v49 = vld [vmem:[%s9761_s1 + $0x18] sm:$0xff]  }
  0x16   :  { %6823 = vmatprep.mubr.bf16.mxu1 %v5604_v58  ;;  %v5533_v41 = vld [vmem:[%s9762_s0 + $0x1cc] sm:$0x1]  ;;  %v5548_v44 = vcombine.low %v7814_v36, %v5532_v40  ;;  %v7242_v58 = vld [vmem:[%s9761_s1 + $0x60] sm:$0xff]   ;;  %v7246_v1 = vld [vmem:[%s9762_s0 + $0x108] ss:$8 sps:$4 sm:$0xff]  }
  0x17   :  { %v560_v42 = vshrl.u32 %v5546_v35, 16  ;;  %v562_v43 = vshll.u32 %v5546_v35, 16  ;;  %v5549_v45 = vcombine.low %v7819_v37, %v5533_v41  ;;  %v7244_v62 = vld [vmem:[%s9761_s1 + $0x68] sm:$0xff]   ;;  %v7850_v3 = vld [vmem:[%s9762_s0 + $0x1d0] sm:$0xf] }
  0x18   :  { %6322 = vmatpush3.bf16.msra.mxu0 %v7209_v17  ;;  %6818 = vmatpush3.bf16.msra.mxu1 %v7208_v16  ;;  %v555_v16 = vshll.u32 %v5545_v8, 16  ;;  %v7225_v17 = vld [vmem:[%s9761_s1 + $0x8] sm:$0xff]   ;;  %v574_v51 = vshrl.u32 %v5548_v44, 16  ;;  %v576_v52 = vshll.u32 %v5548_v44, 16  ;;  %v7855_v4 = vld [vmem:[%s9762_s0 + $0x1d8] sm:$0xf] }
  0x19   :  { %6323 = vmatprep.subr.bf16.mxu0 %v7210_v18  ;;  %6819 = vmatprep.subr.bf16.mxu1 %v7211_v19  ;;  %v536_v18 = vrot.slane %v534_v10, 1  ;;  %v564_v50 = vrot.slane %v562_v43, 1  ;;  %v5534_v7 = vld [vmem:[%s9762_s0 + $0x1d4] sm:$0x1]  ;;  %v5535_v8 = vld [vmem:[%s9762_s0 + $0x1dc] sm:$0x1] }
  0x1a   :  { %v7245_v10 = vld [vmem:[%s9761_s1 + $0x28] sm:$0xff]   ;;  %v7258_v44 = vld [vmem:[%s9761_s1 + $0x1c0] sm:$0xff]  }
  0x1b   :  { %v537_v23 = vor.u32 %v536_v18, %v532_v9  ;;  %v565_v59 = vor.u32 %v564_v50, %v560_v42  ;;  %v7866_v9 = vld [vmem:[%s9762_s0 + $0x1e0] sm:$0xf]  ;;  %v7257_v42 = vld [vmem:[%s9762_s0 + $0x48] ss:$8 sps:$4 sm:$0xff]  }
  0x1c   :  { %6324 = vmatpush3.bf16.msra.mxu0 %v7212_v20  ;;  %6820 = vmatpush3.bf16.msra.mxu1 %v7211_v19  ;;  %v543_v19 = vrot.slane %v541_v12, 1  ;;  %v7232_v20 = vld [vmem:[%s9761_s1 + $0x50] sm:$0xff]   ;;  %v5551_v12 = vcombine.low %v7855_v4, %v5535_v8  ;;  %v7261_v50 = vld [vmem:[%s9761_s1 + $0x80] sm:$0xff]   ;;  %v7285_v8 = vld [vmem:[%s9761_s1 + $0x1e8] sm:$0xff]  }
  0x1d   :  { %6325 = vmatprep.subr.bf16.mxu0 %v7213_v21  ;;  %6821 = vmatprep.subr.bf16.mxu1 %v7214_v22  ;;  %v550_v21 = vrot.slane %v548_v14, 1  ;;  %v5536_v14 = vld [vmem:[%s9762_s0 + $0x1e4] sm:$0x1] }
  0x1e   :  { %v544_v24 = vor.u32 %v543_v19, %v539_v11  ;;  %v5550_v11 = vcombine.low %v7850_v3, %v5534_v7  ;;  %v5552_v18 = vcombine.low %v7866_v9, %v5536_v14  ;;  %v7283_v7 = vld [vmem:[%s9761_s1 + $0x1e0] sm:$0xff]  }
  0x1f   :  { %v551_v27 = vor.u32 %v550_v21, %v546_v13  ;;  %v7876_v13 = vld [vmem:[%s9762_s0 + $0x1e8] sm:$0xf]  ;;  %v7288_v14 = vld [vmem:[%s9762_s0 + $0x78] ss:$8 sps:$4 sm:$0xff]  }
  0x20   :  { %6326 = vmatpush3.bf16.msra.mxu0 %v7215_v34  ;;  %6822 = vmatpush3.bf16.msra.mxu1 %v7214_v22  ;;  %v557_v22 = vrot.slane %v555_v16, 1  ;;  %v5610_v33 = vcombine.low %v537_v23, %v544_v24  ;;  %v5531_v34 = vld [vmem:[%s9762_s0 + $0x1bc] sm:$0x1]  ;;  %v588_v21 = vshrl.u32 %v5550_v11, 16  ;;  %v595_v23 = vshrl.u32 %v5551_v12, 16 }
  0x21   :  { %6391 = vmatprep.subr.bf16.mxu1 %v7222_v39  ;;  %v5547_v39 = vcombine.low %v7802_v31, %v5531_v34  ;;  %v597_v24 = vshll.u32 %v5551_v12, 16  ;;  %v7254_v34 = vld [vmem:[%s9761_s1 + $0x78] sm:$0xff]   ;;  %6471 = vmatprep.subr.bf16.mxu0 %v7258_v44  ;;  %v7287_v12 = vld [vmem:[%s9762_s0 + $0x228] ss:$8 sps:$4 sm:$0xff]  }
  0x22   :  { %v558_v28 = vor.u32 %v557_v22, %v553_v15  ;;  %v5537_v15 = vld [vmem:[%s9762_s0 + $0x1ec] sm:$0x1]  ;;  %v590_v22 = vshll.u32 %v5550_v11, 16  ;;  %v8114_v44 = vld [vmem:[%s9762_s0 + $0x138] sm:$0xf] }
  0x23   :  { %937 = vmatmul.mubr.bf16.vlgmr.msra.gmra.mrb[0].mxu0 %v5602_v46  ;;  %6824 = vmatmul.mubr.bf16.vlgmr.msra.gmra.mrb[0].mxu1 %v5607_v5  ;;  %v567_v46 = vshrl.u32 %v5547_v39, 16  ;;  %v569_v47 = vshll.u32 %v5547_v39, 16  ;;  %v5553_v19 = vcombine.low %v7876_v13, %v5537_v15  ;;  %v7256_v39 = vld [vmem:[%s9762_s0 + $0x1f8] ss:$8 sps:$4 sm:$0xff]   ;;  %v7286_v11 = vld [vmem:[%s9761_s1 + $0x1a8] sm:$0xff]   ;;  %v5623_v15 = vcombine.low %v7866_v9, %v7876_v13  ;;  %v7294_v9 = vld [vmem:[%s9761_s1 + $0x1f0] sm:$0xff]  }
  0x24   :  { %944 = vmatprep.mubr.bf16.mxu0 %v7226_v55  ;;  %6392 = vmatpush3.bf16.msra.mxu1 %v7223_v54  ;;  %v5613_v38 = vcombine.low %v551_v27, %v558_v28  ;;  %v581_v54 = vshrl.u32 %v5549_v45, 16  ;;  %v583_v55 = vshll.u32 %v5549_v45, 16  ;;  %v7295_v13 = vld [vmem:[%s9761_s1 + $0x1b0] sm:$0xff]  }
  0x25   :  { %6393 = vmatprep.subr.bf16.mxu1 %v7224_v60  ;;  %6827 = vmatprep.mubr.bf16.mxu1 %v5610_v33  ;;  %v571_v53 = vrot.slane %v569_v47, 1  ;;  %v578_v60 = vrot.slane %v576_v52, 1  ;;  %v609_v27 = vshrl.u32 %v5553_v19, 16  ;;  %v611_v28 = vshll.u32 %v5553_v19, 16  ;;  %v7265_v52 = vld [vmem:[%s9762_s0 + $0x208] ss:$8 sps:$4 sm:$0xff]  }
  0x26   :  { %v585_v61 = vrot.slane %v583_v55, 1  ;;  %v5614_v47 = vcombine.low %v7797_v30, %v7802_v31  ;;  %v7262_v30 = vld [vmem:[%s9761_s1 + $0x180] sm:$0xff]   ;;  %v7263_v31 = vld [vmem:[%s9761_s1 + $0x1c8] sm:$0xff]   ;;  %v5617_v55 = vcombine.low %v7814_v36, %v7819_v37  ;;  %v7273_v36 = vld [vmem:[%s9761_s1 + $0x190] sm:$0xff]  }
  0x27   :  { %v572_v57 = vor.u32 %v571_v53, %v567_v46  ;;  %v579_v0 = vor.u32 %v578_v60, %v574_v51  ;;  %v613_v33 = vrot.slane %v611_v28, 1  ;;  %v7255_v46 = vld [vmem:[%s9761_s1 + $0x38] sm:$0xff]   ;;  %v7264_v51 = vld [vmem:[%s9761_s1 + $0x188] sm:$0xff]   ;;  %6472 = vmatpush3.bf16.msra.mxu0 %v7262_v30  ;;  %v7952_v60 = vld [vmem:[%s9762_s0 + $0x10] sm:$0xf] }
  0x28   :  { %6394 = vmatpush3.bf16.msra.mxu1 %v7225_v17  ;;  %v5611_v17 = vcombine.low %v7760_v63, %v7767_v2  ;;  %v592_v63 = vrot.slane %v590_v22, 1  ;;  %v599_v2 = vrot.slane %v597_v24, 1  ;;  %6473 = vmatprep.subr.bf16.mxu0 %v7263_v31  ;;  %v7274_v37 = vld [vmem:[%s9761_s1 + $0x1d8] sm:$0xff]   ;;  %v7298_v22 = vld [vmem:[%s9762_s0 + $0x168] ss:$8 sps:$4 sm:$0xff]  }
  0x29   :  { %6395 = vmatprep.subr.bf16.mxu1 %v7232_v20  ;;  %v5616_v5 = vcombine.low %v565_v59, %v572_v57  ;;  %v7252_v20 = vld [vmem:[%s9761_s1 + $0x70] sm:$0xff]   ;;  %v614_v41 = vor.u32 %v613_v33, %v609_v27  ;;  %v7275_v57 = vld [vmem:[%s9761_s1 + $0x198] sm:$0xff]   ;;  %v8049_v24 = vld [vmem:[%s9762_s0 + $0x120] sm:$0xf] }
  0x2a   :  { %v593_v35 = vor.u32 %v592_v63, %v588_v21  ;;  %v7272_v59 = vld [vmem:[%s9761_s1 + $0x1d0] sm:$0xff]   ;;  %v7296_v19 = vld [vmem:[%s9761_s1 + $0x1f8] sm:$0xff]   ;;  %v8062_v27 = vld [vmem:[%s9762_s0 + $0x8] sm:$0xf] }
  0x2b   :  { %945 = vmatmul.mubr.bf16.gmra.mrb[4].mxu0 %v5605_v6  ;;  %6828 = vmatmul.mubr.bf16.gmra.mrb[4].mxu1 %v5613_v38  ;;  %v586_v6 = vor.u32 %v585_v61, %v581_v54  ;;  %v600_v38 = vor.u32 %v599_v2, %v595_v23  ;;  %v7266_v54 = vld [vmem:[%s9762_s0 + $0x58] ss:$8 sps:$4 sm:$0xff]   ;;  %v8067_v28 = vld [vmem:[%s9762_s0 + $0x10] sm:$0xf]  ;;  %v74_v30 = vld [vmem:[%s9762_s0 + $0x2c] sm:$0x1] }
  0x2c   :  { %952 = vmatprep.mubr.bf16.mxu0 %v7236_v26  ;;  %6396 = vmatpush3.bf16.msra.mxu1 %v7233_v25  ;;  %v602_v25 = vshrl.u32 %v5552_v18, 16  ;;  %v604_v26 = vshll.u32 %v5552_v18, 16  ;;  %v7293_v18 = vld [vmem:[%s9761_s1 + $0x98] sm:$0xff]   ;;  %v5810_v63 = vcombine.low %v8062_v27, %v8067_v28  ;;  %v7306_v2 = vld [vmem:[%s9762_s0 + $0x60] ss:$8 sps:$4 sm:$0xff]  }
  0x2d   :  { %6397 = vmatprep.subr.bf16.mxu1 %v7234_v29  ;;  %6831 = vmatprep.mubr.bf16.mxu1 %v5616_v5  ;;  %v5619_v16 = vcombine.low %v579_v0, %v586_v6  ;;  %v7253_v29 = vld [vmem:[%s9761_s1 + $0x30] sm:$0xff]   ;;  %v5622_v43 = vcombine.low %v593_v35, %v600_v38  ;;  %v7981_v5 = vld [vmem:[%s9762_s0 + $0x20] sm:$0xf]  ;;  %v7297_v21 = vld [vmem:[%s9761_s1 + $0x1b8] sm:$0xff]  }
  0x2e   :  { %v606_v32 = vrot.slane %v604_v26, 1  ;;  %6474 = vmatpush3.bf16.msra.mxu0 %v7264_v51  ;;  %v7277_v0 = vld [vmem:[%s9762_s0 + $0x68] ss:$8 sps:$4 sm:$0xff]   ;;  %v7303_v26 = vld [vmem:[%s9761_s1 + $0xa0] sm:$0xff]   ;;  %v8088_v35 = vld [vmem:[%s9762_s0 + $0x18] sm:$0xf] }
  0x2f   :  { %6475 = vmatprep.subr.bf16.mxu0 %v7272_v59  ;;  %v7282_v6 = vld [vmem:[%s9761_s1 + $0x90] sm:$0xff]   ;;  %v7305_v33 = vld [vmem:[%s9762_s0 + $0x178] ss:$8 sps:$4 sm:$0xff]  }
  0x30   :  { %6398 = vmatpush3.bf16.msra.mxu1 %v7235_v49  ;;  %v607_v40 = vor.u32 %v606_v32, %v602_v25  ;;  %v7919_v49 = vld [vmem:[%s9762_s0 + $0x8] sm:$0xf]  ;;  %v7299_v23 = vld [vmem:[%s9762_s0 + $0x50] ss:$8 sps:$4 sm:$0xff]   ;;  %v71_v32 = vld [vmem:[%s9762_s0 + $0x14] sm:$0x1] }
  0x31   :  { %6399 = vmatprep.subr.bf16.mxu1 %v7242_v58  ;;  %v7271_v58 = vld [vmem:[%s9761_s1 + $0x88] sm:$0xff]   ;;  %v8093_v38 = vld [vmem:[%s9762_s0 + $0x20] sm:$0xf] }
  0x32   :  { %v5625_v45 = vcombine.low %v607_v40, %v614_v41  ;;  %6476 = vmatpush3.bf16.msra.mxu0 %v7273_v36  ;;  %v8054_v25 = vld [vmem:[%s9762_s0 + $0x128] sm:$0xf]  ;;  %v73_v40 = vld [vmem:[%s9762_s0 + $0x24] sm:$0x1]  ;;  %v7319_v41 = vld [vmem:[%s9761_s1 + $0xb0] sm:$0xff]  }
  0x33   :  { %953 = vmatmul.mubr.bf16.gmra.mrb[8].mxu0 %v5608_v48  ;;  %6832 = vmatmul.mubr.bf16.gmra.mrb[8].mxu1 %v5619_v16  ;;  %v7914_v48 = vld [vmem:[%s9762_s0] sm:$0xf]  ;;  %v8016_v16 = vld [vmem:[%s9762_s0 + $0x30] sm:$0xf]  ;;  %v8132_v31 = vcombine.low %v7981_v5, %v73_v40 }
  0x34   :  { %960 = vmatprep.mubr.bf16.mxu0 %v7246_v1  ;;  %6400 = vmatpush3.bf16.msra.mxu1 %v7243_v56  ;;  %v5650_v53 = vcombine.low %v7914_v48, %v7919_v49  ;;  %v7957_v56 = vld [vmem:[%s9762_s0 + $0x18] sm:$0xf]  ;;  %v5620_v1 = vcombine.low %v7850_v3, %v7855_v4  ;;  %v7992_v3 = vld [vmem:[%s9762_s0 + $0x28] sm:$0xf]  ;;  %v7284_v4 = vld [vmem:[%s9761_s1 + $0x1a0] sm:$0xff]  }
  0x35   :  { %6401 = vmatprep.subr.bf16.mxu1 %v7244_v62  ;;  %6835 = vmatprep.mubr.bf16.mxu1 %v5622_v43  ;;  %v5653_v61 = vcombine.low %v7952_v60, %v7957_v56  ;;  %v7276_v62 = vld [vmem:[%s9762_s0 + $0x218] ss:$8 sps:$4 sm:$0xff]   ;;  %v5813_v43 = vcombine.low %v8088_v35, %v8093_v38  ;;  %v8152_v59 = vcombine.low %v7992_v3, %v74_v30 }
  0x36   :  { %6477 = vmatprep.subr.bf16.mxu0 %v7274_v37 }
  0x37   :  { %6478 = vmatpush3.bf16.msra.mxu0 %v7275_v57  ;;  %v8166_v57 = vld [vmem:[%s9762_s0 + $0x140] sm:$0xf]  ;;  %v201_v40 = vshrl.u32 %v8152_v59, 16 }
  0x38   :  { %6402 = vmatpush3.bf16.msra.mxu1 %v7245_v10  ;;  %6479 = vmatprep.subr.bf16.mxu0 %v7283_v7  ;;  %v5656_v10 = vcombine.low %v7981_v5, %v7992_v3  ;;  %v194_v7 = vshrl.u32 %v8132_v31, 16 }
  0x39   :  { %6403 = vmatprep.subr.bf16.mxu1 %v7252_v20 }
  0x3b   :  { %961 = vmatmul.mubr.bf16.gmra.mrb[12].mxu0 %v5611_v17  ;;  %6836 = vmatmul.mubr.bf16.gmra.mrb[12].mxu1 %v5625_v45  ;;  %v8021_v17 = vld [vmem:[%s9762_s0 + $0x38] sm:$0xf]  ;;  %v8117_v45 = vcombine.low %v7952_v60, %v71_v32  ;;  %v8157_v60 = vld [vmem:[%s9761_s1 + $0x200] sm:$0xff]  }
  0x3c   :  { %968 = vmatprep.mubr.bf16.mxu0 %v7256_v39  ;;  %6404 = vmatpush3.bf16.msra.mxu1 %v7253_v29  ;;  %v5659_v20 = vcombine.low %v8016_v16, %v8021_v17  ;;  %v5662_v29 = vcombine.low %v8049_v24, %v8054_v25  ;;  %v72_v39 = vld [vmem:[%s9762_s0 + $0x1c] sm:$0x1] }
  0x3d   :  { %6405 = vmatprep.subr.bf16.mxu1 %v7254_v34  ;;  %1322 = vmatprep.mubr.bf16.mxu1 %v7257_v42  ;;  %v7310_v34 = vld [vmem:[%s9761_s1 + $0xa8] sm:$0xff]   ;;  %v8107_v42 = vld [vmem:[%s9762_s0 + $0x130] sm:$0xf]  ;;  %v180_v36 = vshrl.u32 %v8117_v45, 16 }
  0x3e   :  { %6480 = vmatpush3.bf16.msra.mxu0 %v7284_v4  ;;  %v5665_v51 = vcombine.low %v8107_v42, %v8114_v44  ;;  %v75_v4 = vld [vmem:[%s9762_s0 + $0x34] sm:$0x1] }
  0x3f   :  { %6481 = vmatprep.subr.bf16.mxu0 %v7285_v8 }
  0x40   :  { %6406 = vmatpush3.bf16.msra.mxu1 %v7255_v46  ;;  %v8120_v46 = vcombine.low %v7957_v56, %v72_v39  ;;  %v196_v56 = vshll.u32 %v8132_v31, 16 }
  0x41   :  { %6839 = vmatprep.subr.bf16.mxu1 %v7261_v50 }
  0x42   :  { %6482 = vmatpush3.bf16.msra.mxu0 %v7286_v11  ;;  %v198_v3 = vrot.slane %v196_v56, 1  ;;  %v8193_v11 = vld [vmem:[%s9762_s0 + $0x40] sm:$0xf] }
  0x43   :  { %969 = vmatmul.mubr.bf16.gmra.mrb[16].mxu0 %v5614_v47  ;;  %1323 = vmatmul.mubr.bf16.vlgmr.msra.gmra.mrb[16].mxu1 %v5650_v53  ;;  %v7315_v47 = vld [vmem:[%s9762_s0 + $0x70] ss:$8 sps:$4 sm:$0xff]   ;;  %v8142_v53 = vld [vmem:[%s9762_s0 + $0x28] sm:$0xf] }
  0x44   :  { %976 = vmatprep.mubr.bf16.mxu0 %v7265_v52  ;;  %6840 = vmatpush3.bf16.msra.mxu1 %v7261_v50  ;;  %v7328_v50 = vld [vmem:[%s9761_s1 + $0xb8] sm:$0xff]   ;;  %v7314_v52 = vld [vmem:[%s9762_s0 + $0x188] ss:$8 sps:$4 sm:$0xff]  }
  0x45   :  { %1330 = vmatprep.mubr.bf16.mxu1 %v7266_v54  ;;  %6841 = vmatprep.subr.bf16.mxu1 %v7271_v58  ;;  %v8147_v54 = vld [vmem:[%s9762_s0 + $0x30] sm:$0xf] }
  0x46   :  { %6483 = vmatprep.subr.bf16.mxu0 %v7294_v9  ;;  %v5816_v37 = vcombine.low %v8142_v53, %v8147_v54 }
  0x47   :  { %6484 = vmatpush3.bf16.msra.mxu0 %v7295_v13 }
  0x48   :  { %6842 = vmatpush3.bf16.msra.mxu1 %v7271_v58  ;;  %6485 = vmatprep.subr.bf16.mxu0 %v7296_v19  ;;  %v189_v58 = vshll.u32 %v8120_v46, 16  ;;  %v77_v19 = vld [vmem:[%s9762_s0 + $0x124] sm:$0x1] }
  0x49   :  { %6843 = vmatprep.subr.bf16.mxu1 %v7282_v6  ;;  %v8233_v39 = vcombine.low %v8049_v24, %v77_v19  ;;  %v8250_v24 = vld [vmem:[%s9762_s0 + $0x130] sm:$0xf] }
  0x4a   :  { %v191_v5 = vrot.slane %v189_v58, 1  ;;  %v199_v58 = vor.u32 %v198_v3, %v194_v7 }
  0x4b   :  { %977 = vmatmul.mubr.bf16.gmra.mrb[20].mxu0 %v5617_v55  ;;  %1331 = vmatmul.mubr.bf16.gmra.mrb[20].mxu1 %v5653_v61  ;;  %v182_v55 = vshll.u32 %v8117_v45, 16  ;;  %v8171_v61 = vld [vmem:[%s9762_s0 + $0x148] sm:$0xf] }
  0x4c   :  { %984 = vmatprep.mubr.bf16.mxu0 %v7276_v62  ;;  %1338 = vmatprep.mubr.bf16.mxu1 %v7277_v0  ;;  %v7324_v62 = vld [vmem:[%s9762_s0 + $0x80] ss:$8 sps:$4 sm:$0xff]   ;;  %v5668_v8 = vcombine.low %v8166_v57, %v8171_v61 }
  0x4d   :  { %6844 = vmatpush3.bf16.msra.mxu1 %v7282_v6  ;;  %6486 = vmatpush3.bf16.msra.mxu0 %v7297_v21  ;;  %v184_v0 = vrot.slane %v182_v55, 1  ;;  %v203_v6 = vshll.u32 %v8152_v59, 16  ;;  %v8218_v21 = vld [vmem:[%s9762_s0 + $0x150] sm:$0xf]  ;;  %v224_v59 = vshll.u32 %v8233_v39, 16 }
  0x4e   :  { %6845 = vmatprep.subr.bf16.mxu1 %v7293_v18 }
  0x51   :  { %6846 = vmatpush3.bf16.msra.mxu1 %v7293_v18  ;;  %v76_v18 = vld [vmem:[%s9762_s0 + $0x3c] sm:$0x1] }
  0x52   :  { %6847 = vmatprep.subr.bf16.mxu1 %v7303_v26 }
  0x53   :  { %985 = vmatmul.mubr.bf16.gmra.mrb[24].mxu0 %v5620_v1  ;;  %1339 = vmatmul.mubr.bf16.gmra.mrb[24].mxu1 %v5656_v10  ;;  %v187_v1 = vshrl.u32 %v8120_v46, 16  ;;  %v8188_v10 = vld [vmem:[%s9762_s0 + $0x38] sm:$0xf] }
  0x54   :  { %992 = vmatprep.mubr.bf16.mxu0 %v7287_v12  ;;  %1346 = vmatprep.mubr.bf16.mxu1 %v7288_v14  ;;  %v7323_v12 = vld [vmem:[%s9762_s0 + $0x198] ss:$8 sps:$4 sm:$0xff]   ;;  %v69_v14 = vld [vmem:[%s9762_s0 + $0x4] sm:$0x1] }
  0x55   :  { %6848 = vmatpush3.bf16.msra.mxu1 %v7303_v26  ;;  %v5474_v9 = vcombine.low %v7914_v48, %v69_v14  ;;  %v8225_v48 = vld [vmem:[%s9762_s0 + $0x158] sm:$0xf]  ;;  %v192_v31 = vor.u32 %v191_v5, %v187_v1 }
  0x56   :  { %6849 = vmatprep.subr.bf16.mxu1 %v7310_v34  ;;  %v5671_v45 = vcombine.low %v8218_v21, %v8225_v48 }
  0x59   :  { %6850 = vmatpush3.bf16.msra.mxu1 %v7310_v34  ;;  %v5481_v34 = vcombine.low %v8021_v17, %v76_v18  ;;  %v8245_v17 = vld [vmem:[%s9762_s0 + $0x128] sm:$0xf]  ;;  %v8288_v18 = vld [vmem:[%s9762_s0 + $0x140] sm:$0xf] }
  0x5a   :  { %6851 = vmatprep.subr.bf16.mxu1 %v7319_v41 }
  0x5b   :  { %993 = vmatmul.mubr.bf16.gmra.mrb[28].mxu0 %v5623_v15  ;;  %1347 = vmatmul.mubr.bf16.gmra.mrb[28].mxu1 %v5659_v20  ;;  %v70_v15 = vld [vmem:[%s9762_s0 + $0xc] sm:$0x1]  ;;  %v215_v7 = vshrl.u32 %v5481_v34, 16 }
  0x5c   :  { %1354 = vmatprep.mubr.bf16.mxu1 %v7298_v22  ;;  %2047 = vmatprep.mubr.bf16.mxu0 %v7299_v23  ;;  %v5475_v13 = vcombine.low %v7919_v49, %v70_v15  ;;  %v78_v20 = vld [vmem:[%s9762_s0 + $0x12c] sm:$0x1]  ;;  %v5819_v22 = vcombine.low %v8188_v10, %v8193_v11  ;;  %v166_v49 = vshrl.u32 %v5474_v9, 16  ;;  %v168_v23 = vshll.u32 %v5474_v9, 16 }
  0x5d   :  { %6852 = vmatpush3.bf16.msra.mxu1 %v7319_v41  ;;  %v205_v41 = vrot.slane %v203_v6, 1  ;;  %v226_v9 = vrot.slane %v224_v59, 1 }
  0x5e   :  { %6853 = vmatprep.subr.bf16.mxu1 %v7328_v50  ;;  %v173_v26 = vshrl.u32 %v5475_v13, 16  ;;  %v170_v32 = vrot.slane %v168_v23, 1  ;;  %v83_v23 = vld [vmem:[%s9762_s0 + $0x154] sm:$0x1] }
  0x60   :  { %v171_v46 = vor.u32 %v170_v32, %v166_v49 }
  0x61   :  { %6854 = vmatpush3.bf16.msra.mxu1 %v7328_v50 }
  0x62   :  { %6871 = vmatprep.subr.bf16.mxu1 %v8157_v60 }
  0x63   :  { %2048 = vmatmul.mubr.bf16.vlgmr.msra.gmra.mrb[32].mxu0 %v5810_v63  ;;  %1355 = vmatmul.mubr.bf16.gmra.mrb[32].mxu1 %v5662_v29  ;;  %v175_v63 = vshll.u32 %v5475_v13, 16  ;;  %v7334_v29 = vld [vmem:[%s9762_s0 + $0x170] ss:$8 sps:$4 sm:$0xff]  }
  0x64   :  { %2055 = vmatprep.mubr.bf16.mxu0 %v7306_v2  ;;  %1362 = vmatprep.mubr.bf16.mxu1 %v7305_v33  ;;  %v5480_v2 = vcombine.low %v8016_v16, %v75_v4  ;;  %v79_v16 = vld [vmem:[%s9762_s0 + $0x134] sm:$0x1] }
  0x65   :  { %v177_v33 = vrot.slane %v175_v63, 1  ;;  %v8256_v55 = vcombine.low %v8107_v42, %v79_v16  ;;  %v7340_v42 = vld [vmem:[%s9762_s0 + $0x180] ss:$8 sps:$4 sm:$0xff]   ;;  %v84_v63 = vld [vmem:[%s9762_s0 + $0x15c] sm:$0x1]  ;;  %v8317_v16 = vcombine.low %v8218_v21, %v83_v23 }
  0x66   :  { %v210_v50 = vshll.u32 %v5480_v2, 16  ;;  %v208_v5 = vshrl.u32 %v5480_v2, 16  ;;  %v5731_v21 = vld [vmem:[%s9762_s0 + $0x14] sm:$0x1] }
  0x67   :  { %v238_v3 = vshll.u32 %v8256_v55, 16  ;;  %v5747_v59 = vcombine.low %v8067_v28, %v5731_v21  ;;  %v7356_v21 = vld [vmem:[%s9761_s1 + $0x230] sm:$0xff]  }
  0x68   :  { %v212_v6 = vrot.slane %v210_v50, 1  ;;  %v8324_v50 = vcombine.low %v8225_v48, %v84_v63  ;;  %v8337_v48 = vld [vmem:[%s9762_s0 + $0x148] sm:$0xf] }
  0x69   :  { %v1622_v63 = vshrl.u32 %v5747_v59, 16 }
  0x6a   :  { %v213_v2 = vor.u32 %v212_v6, %v208_v5  ;;  %v273_v28 = vshll.u32 %v8324_v50, 16  ;;  %v7350_v6 = vld [vmem:[%s9761_s1 + $0x220] sm:$0xff]  }
  0x6b   :  { %2056 = vmatmul.mubr.bf16.gmra.mrb[36].mxu0 %v5813_v43  ;;  %1363 = vmatmul.mubr.bf16.gmra.mrb[36].mxu1 %v5665_v51  ;;  %v5483_v43 = vcombine.low %v8054_v25, %v78_v20  ;;  %v185_v25 = vor.u32 %v184_v0, %v180_v36  ;;  %v217_v51 = vshll.u32 %v5481_v34, 16  ;;  %v5822_v36 = vcombine.low %v8245_v17, %v8250_v24  ;;  %v82_v0 = vld [vmem:[%s9762_s0 + $0x14c] sm:$0x1]  ;;  %v7346_v34 = vld [vmem:[%s9762_s0 + $0x190] ss:$8 sps:$4 sm:$0xff]  }
  0x6c   :  { %2063 = vmatprep.mubr.bf16.mxu0 %v7315_v47  ;;  %1370 = vmatprep.mubr.bf16.mxu1 %v7314_v52  ;;  %v178_v47 = vor.u32 %v177_v33, %v173_v26  ;;  %v80_v52 = vld [vmem:[%s9762_s0 + $0x13c] sm:$0x1]  ;;  %v8283_v14 = vcombine.low %v8171_v61, %v82_v0  ;;  %v7339_v61 = vld [vmem:[%s9761_s1 + $0x208] sm:$0xff]   ;;  %v7344_v33 = vld [vmem:[%s9761_s1 + $0x210] sm:$0xff]  }
  0x6d   :  { %v231_v56 = vshll.u32 %v5483_v43, 16  ;;  %v8271_v1 = vcombine.low %v8114_v44, %v80_v52  ;;  %v5655_v15 = vcombine.low %v185_v25, %v192_v31  ;;  %v229_v13 = vshrl.u32 %v5483_v43, 16  ;;  %v5734_v0 = vld [vmem:[%s9762_s0 + $0x2c] sm:$0x1] }
  0x6e   :  { %v5652_v30 = vcombine.low %v171_v46, %v178_v47  ;;  %v259_v26 = vshll.u32 %v8283_v14, 16  ;;  %v240_v43 = vrot.slane %v238_v3, 1 }
  0x6f   :  { %v233_v19 = vrot.slane %v231_v56, 1  ;;  %v245_v20 = vshll.u32 %v8271_v1, 16  ;;  %v5733_v56 = vld [vmem:[%s9762_s0 + $0x24] sm:$0x1] }
  0x71   :  { %v247_v46 = vrot.slane %v245_v20, 1  ;;  %v8378_v20 = vcombine.low %v8142_v53, %v5734_v0  ;;  %v7351_v53 = vld [vmem:[%s9761_s1 + $0x228] sm:$0xff]  }
  0x73   :  { %2064 = vmatmul.mubr.bf16.gmra.mrb[40].mxu0 %v5816_v37  ;;  %1371 = vmatmul.mubr.bf16.gmra.mrb[40].mxu1 %v5668_v8  ;;  %v81_v37 = vld [vmem:[%s9762_s0 + $0x144] sm:$0x1]  ;;  %v219_v8 = vrot.slane %v217_v51, 1  ;;  %v257_v51 = vshrl.u32 %v8283_v14, 16  ;;  %v1624_v14 = vshll.u32 %v5747_v59, 16 }
  0x74   :  { %2071 = vmatprep.mubr.bf16.mxu0 %v7324_v62  ;;  %1378 = vmatprep.mubr.bf16.mxu1 %v7323_v12  ;;  %v206_v62 = vor.u32 %v205_v41, %v201_v40  ;;  %v8275_v4 = vcombine.low %v8166_v57, %v81_v37  ;;  %v8280_v12 = vld [vmem:[%s9762_s0 + $0x138] sm:$0xf]  ;;  %v222_v57 = vshrl.u32 %v8233_v39, 16  ;;  %v234_v40 = vor.u32 %v233_v19, %v229_v13 }
  0x75   :  { %v5825_v32 = vcombine.low %v8280_v12, %v8288_v18  ;;  %v236_v41 = vshrl.u32 %v8256_v55, 16  ;;  %v8342_v55 = vld [vmem:[%s9762_s0 + $0x150] sm:$0xf]  ;;  %v266_v37 = vshll.u32 %v8317_v16, 16  ;;  %v275_v13 = vrot.slane %v273_v28, 1 }
  0x76   :  { %v5658_v44 = vcombine.low %v199_v58, %v206_v62  ;;  %v252_v49 = vshll.u32 %v8275_v4, 16  ;;  %v227_v39 = vor.u32 %v226_v9, %v222_v57  ;;  %v5828_v5 = vcombine.low %v8337_v48, %v8342_v55  ;;  %v8375_v19 = vld [vmem:[%s9762_s0 + $0x158] sm:$0xf] }
  0x77   :  { %v268_v57 = vrot.slane %v266_v37, 1  ;;  %v271_v9 = vshrl.u32 %v8324_v50, 16 }
  0x78   :  { %v254_v25 = vrot.slane %v252_v49, 1  ;;  %v5664_v52 = vcombine.low %v227_v39, %v234_v40  ;;  %v8386_v49 = vld [vmem:[%s9762_s0 + $0x160] sm:$0xf]  ;;  %v1645_v40 = vshll.u32 %v8378_v20, 16 }
  0x79   :  { %v5831_v39 = vcombine.low %v8375_v19, %v8386_v49 }
  0x7b   :  { %2072 = vmatmul.mubr.bf16.gmra.mrb[44].mxu0 %v5819_v22  ;;  %1379 = vmatmul.mubr.bf16.gmra.mrb[44].mxu1 %v5671_v45  ;;  %v5732_v22 = vld [vmem:[%s9762_s0 + $0x1c] sm:$0x1]  ;;  %v243_v45 = vshrl.u32 %v8271_v1, 16 }
  0x7c   :  { %2079 = vmatprep.mubr.bf16.mxu0 %v7334_v29  ;;  %6855 = vmatprep.mubr.bf16.mxu1 %v5652_v30  ;;  %v220_v29 = vor.u32 %v219_v8, %v215_v7  ;;  %v8321_v47 = vcombine.low %v8088_v35, %v5732_v22  ;;  %v5730_v30 = vld [vmem:[%s9762_s0 + $0xc] sm:$0x1]  ;;  %v261_v35 = vrot.slane %v259_v26, 1 }
  0x7d   :  { %v5746_v58 = vcombine.low %v8062_v27, %v5730_v30  ;;  %v5735_v27 = vld [vmem:[%s9762_s0 + $0x34] sm:$0x1]  ;;  %v248_v1 = vor.u32 %v247_v46, %v243_v45 }
  0x7e   :  { %v5661_v31 = vcombine.low %v213_v2, %v220_v29  ;;  %v1631_v62 = vshll.u32 %v8321_v47, 16  ;;  %v262_v3 = vor.u32 %v261_v35, %v257_v51  ;;  %v1626_v2 = vrot.slane %v1624_v14, 1 }
  0x7f   :  { %v1617_v8 = vshll.u32 %v5746_v58, 16  ;;  %v1615_v23 = vshrl.u32 %v5746_v58, 16  ;;  %v1629_v50 = vshrl.u32 %v8321_v47, 16  ;;  %v1643_v47 = vshrl.u32 %v8378_v20, 16 }
  0x80   :  { %v1627_v46 = vor.u32 %v1626_v2, %v1622_v63 }
  0x81   :  { %v1619_v26 = vrot.slane %v1617_v8, 1 }
  0x83   :  { %2080 = vmatmul.mubr.bf16.gmra.mrb[48].mxu0 %v5822_v36  ;;  %6856 = vmatmul.mubr.bf16.vlgmr.msra.gmra.mrb[0].mxu1 %v5655_v15  ;;  %v7345_v36 = vld [vmem:[%s9761_s1 + $0x218] sm:$0xff]   ;;  %v5749_v15 = vcombine.low %v8093_v38, %v5733_v56  ;;  %v1620_v45 = vor.u32 %v1619_v26, %v1615_v23  ;;  %v1647_v56 = vrot.slane %v1645_v40, 1 }
  0x84   :  { %2087 = vmatprep.mubr.bf16.mxu0 %v7340_v42  ;;  %6872 = vmatpush3.bf16.msra.mxu1 %v8157_v60  ;;  %v250_v60 = vshrl.u32 %v8275_v4, 16  ;;  %v241_v42 = vor.u32 %v240_v43, %v236_v41  ;;  %v7352_v4 = vld [vmem:[%s9762_s0 + $0x1a0] ss:$8 sps:$4 sm:$0xff]   ;;  %v5738_v43 = vld [vmem:[%s9762_s0 + $0x12c] sm:$0x1] }
  0x85   :  { %6859 = vmatprep.mubr.bf16.mxu1 %v5658_v44  ;;  %6873 = vmatprep.subr.bf16.mxu1 %v7339_v61  ;;  %v264_v44 = vshrl.u32 %v8317_v16, 16  ;;  %v1638_v29 = vshll.u32 %v5749_v15, 16  ;;  %v5739_v16 = vld [vmem:[%s9762_s0 + $0x134] sm:$0x1]  ;;  %v5754_v35 = vcombine.low %v8245_v17, %v5738_v43  ;;  %v5812_v59 = vcombine.low %v1620_v45, %v1627_v46 }
  0x86   :  { %v255_v7 = vor.u32 %v254_v25, %v250_v60  ;;  %v5667_v22 = vcombine.low %v241_v42, %v248_v1  ;;  %v1633_v60 = vrot.slane %v1631_v62, 1  ;;  %v1636_v25 = vshrl.u32 %v5749_v15, 16  ;;  %v5741_v42 = vld [vmem:[%s9762_s0 + $0x144] sm:$0x1]  ;;  %v5742_v1 = vld [vmem:[%s9762_s0 + $0x14c] sm:$0x1] }
  0x87   :  { %v1640_v30 = vrot.slane %v1638_v29, 1  ;;  %v1671_v20 = vshrl.u32 %v5754_v35, 16  ;;  %v5744_v29 = vld [vmem:[%s9762_s0 + $0x15c] sm:$0x1] }
  0x88   :  { %6874 = vmatpush3.bf16.msra.mxu1 %v7339_v61  ;;  %v8381_v61 = vcombine.low %v8147_v54, %v5735_v27  ;;  %v5670_v38 = vcombine.low %v255_v7, %v262_v3  ;;  %v5736_v54 = vld [vmem:[%s9762_s0 + $0x3c] sm:$0x1]  ;;  %v1634_v62 = vor.u32 %v1633_v60, %v1629_v50  ;;  %v1673_v27 = vshll.u32 %v5754_v35, 16 }
  0x89   :  { %6875 = vmatprep.subr.bf16.mxu1 %v7344_v33  ;;  %v1641_v0 = vor.u32 %v1640_v30, %v1636_v25 }
  0x8a   :  { %v1652_v41 = vshll.u32 %v8381_v61, 16  ;;  %v1650_v37 = vshrl.u32 %v8381_v61, 16 }
  0x8b   :  { %2088 = vmatmul.mubr.bf16.gmra.mrb[52].mxu0 %v5825_v32  ;;  %6860 = vmatmul.mubr.bf16.gmra.mrb[4].mxu1 %v5661_v31  ;;  %v5737_v32 = vld [vmem:[%s9762_s0 + $0x44] sm:$0x1]  ;;  %v5752_v31 = vcombine.low %v8188_v10, %v5736_v54  ;;  %v7357_v10 = vld [vmem:[%s9761_s1 + $0x238] sm:$0xff]  }
  0x8c   :  { %2095 = vmatprep.mubr.bf16.mxu0 %v7346_v34  ;;  %6876 = vmatpush3.bf16.msra.mxu1 %v7344_v33  ;;  %v269_v33 = vor.u32 %v268_v57, %v264_v44  ;;  %v276_v34 = vor.u32 %v275_v13, %v271_v9  ;;  %v5753_v51 = vcombine.low %v8193_v11, %v5737_v32 }
  0x8d   :  { %6863 = vmatprep.mubr.bf16.mxu1 %v5664_v52  ;;  %6877 = vmatprep.subr.bf16.mxu1 %v7345_v36  ;;  %v5755_v52 = vcombine.low %v8250_v24, %v5739_v16  ;;  %v1659_v11 = vshll.u32 %v5752_v31, 16  ;;  %v5740_v24 = vld [vmem:[%s9762_s0 + $0x13c] sm:$0x1]  ;;  %v1657_v8 = vshrl.u32 %v5752_v31, 16  ;;  %v5757_v57 = vcombine.low %v8288_v18, %v5741_v42  ;;  %v5745_v18 = vld [vmem:[%s9762_s0 + $0x164] sm:$0x1] }
  0x8e   :  { %v5673_v58 = vcombine.low %v269_v33, %v276_v34  ;;  %v1666_v17 = vshll.u32 %v5753_v51, 16  ;;  %v5756_v3 = vcombine.low %v8280_v12, %v5740_v24  ;;  %v1664_v15 = vshrl.u32 %v5753_v51, 16  ;;  %v7365_v24 = vld [vmem:[%s9763_s4 + $0xd0] sm:$0xff]  }
  0x8f   :  { %v1680_v28 = vshll.u32 %v5755_v52, 16  ;;  %v1661_v14 = vrot.slane %v1659_v11, 1  ;;  %v5758_v9 = vcombine.low %v8337_v48, %v5742_v1  ;;  %v1694_v2 = vshll.u32 %v5757_v57, 16  ;;  %v7363_v11 = vld [vmem:[%s9763_s4 + $0xc8] sm:$0xff]  }
  0x90   :  { %6878 = vmatpush3.bf16.msra.mxu1 %v7345_v36  ;;  %v1654_v36 = vrot.slane %v1652_v41, 1  ;;  %v1668_v44 = vrot.slane %v1666_v17, 1  ;;  %v1687_v63 = vshll.u32 %v5756_v3, 16  ;;  %v5760_v32 = vcombine.low %v8375_v19, %v5744_v29  ;;  %v7364_v17 = vld [vmem:[%s9763_s4 + $0x110] sm:$0xff]  }
  0x91   :  { %6879 = vmatprep.subr.bf16.mxu1 %v7350_v6  ;;  %v1682_v23 = vrot.slane %v1680_v28, 1  ;;  %v1662_v26 = vor.u32 %v1661_v14, %v1657_v8  ;;  %v1701_v48 = vshll.u32 %v5758_v9, 16  ;;  %v5761_v33 = vcombine.low %v8386_v49, %v5745_v18 }
  0x92   :  { %v1655_v7 = vor.u32 %v1654_v36, %v1650_v37  ;;  %v1669_v12 = vor.u32 %v1668_v44, %v1664_v15  ;;  %v1689_v40 = vrot.slane %v1687_v63, 1  ;;  %v1692_v41 = vshrl.u32 %v5757_v57, 16  ;;  %v2311_v63 = vld [vmem:[#allocation2 + $0x20] sm:$0x1]  ;;  %v7405_v57 = vld [vmem:[%s9763_s4 + $0x90] sm:$0xff]  }
  0x93   :  { %2096 = vmatmul.mubr.bf16.gmra.mrb[56].mxu0 %v5828_v5  ;;  %6864 = vmatmul.mubr.bf16.gmra.mrb[8].mxu1 %v5667_v22  ;;  %v5743_v5 = vld [vmem:[%s9762_s0 + $0x154] sm:$0x1]  ;;  %v1675_v22 = vrot.slane %v1673_v27, 1  ;;  %v1696_v43 = vrot.slane %v1694_v2, 1  ;;  %v1699_v16 = vshrl.u32 %v5758_v9, 16  ;;  %v1703_v46 = vrot.slane %v1701_v48, 1 }
  0x94   :  { %2103 = vmatprep.mubr.bf16.mxu0 %v7352_v4  ;;  %6880 = vmatpush3.bf16.msra.mxu1 %v7350_v6  ;;  %v1648_v6 = vor.u32 %v1647_v56, %v1643_v47  ;;  %v5815_v4 = vcombine.low %v1634_v62, %v1641_v0  ;;  %v5759_v13 = vcombine.low %v8342_v55, %v5743_v5  ;;  %v1715_v25 = vshll.u32 %v5760_v32, 16  ;;  %v7360_v62 = vld [vmem:[%s9763_s4 + $0x100] sm:$0xff]   ;;  %v2308_v9 = vld [vmem:[#allocation2 + $0x18] sm:$0x1]  ;;  %v7370_v2 = vld [vmem:[%s9763_s4 + $0x148] sm:$0xff]  }
  0x95   :  { %6867 = vmatprep.mubr.bf16.mxu1 %v5670_v38  ;;  %6881 = vmatprep.subr.bf16.mxu1 %v7351_v53  ;;  %v1678_v38 = vshrl.u32 %v5755_v52, 16  ;;  %v5821_v34 = vcombine.low %v1662_v26, %v1669_v12  ;;  %v1722_v30 = vshll.u32 %v5761_v33, 16  ;;  %v1697_v31 = vor.u32 %v1696_v43, %v1692_v41  ;;  %v7361_v0 = vld [vmem:[%s9763_s4 + $0xc0] sm:$0xff]  }
  0x96   :  { %v5818_v61 = vcombine.low %v1648_v6, %v1655_v7  ;;  %v1708_v55 = vshll.u32 %v5759_v13, 16  ;;  %v1706_v50 = vshrl.u32 %v5759_v13, 16  ;;  %v1704_v51 = vor.u32 %v1703_v46, %v1699_v16  ;;  %6551 = vmatprep.subr.bf16.mxu0 %v7360_v62  ;;  %v2370_v13 = vld [vmem:[#allocation2 + $0x1c] sm:$0x1]  ;;  %v2373_v48 = vld [vmem:[#allocation2 + $0x24] sm:$0x1] }
  0x97   :  { %v1683_v54 = vor.u32 %v1682_v23, %v1678_v38  ;;  %v1713_v35 = vshrl.u32 %v5760_v32, 16  ;;  %v1717_v52 = vrot.slane %v1715_v25, 1  ;;  %v1724_v47 = vrot.slane %v1722_v30, 1  ;;  %6552 = vmatpush3.bf16.msra.mxu0 %v7361_v0  ;;  %v2364_v38 = vld [vmem:[#allocation2 + $0xc] sm:$0x1]  ;;  %v7366_v25 = vld [vmem:[%s9763_s4 + $0x118] sm:$0xff]  }
  0x98   :  { %6882 = vmatpush3.bf16.msra.mxu1 %v7351_v53  ;;  %v1676_v53 = vor.u32 %v1675_v22, %v1671_v20  ;;  %v1710_v60 = vrot.slane %v1708_v55, 1  ;;  %v2309_v20 = vsel %vm8473_vm3, 0, %v2308_v9  ;;  %v2302_v22 = vld [vmem:[#allocation2 + $0x8] sm:$0x1]  ;;  %v2371_v23 = vsel %vm8480_vm4, 0, %v2370_v13 }
  0x99   :  { %6883 = vmatprep.subr.bf16.mxu1 %v7356_v21  ;;  %v1718_v56 = vor.u32 %v1717_v52, %v1713_v35  ;;  %2310 = vst [vmem:[#allocation2 + $0x18] sm:$0x1] %v2309_v20  ;;  %v2303_v26 = vsel %vm8473_vm3, 0, %v2302_v22  ;;  %v2365_v12 = vsel %vm8480_vm4, 0, %v2364_v38  ;;  %2372 = vst [vmem:[#allocation2 + $0x1c] sm:$0x1] %v2371_v23 }
  0x9a   :  { %v5824_v45 = vcombine.low %v1676_v53, %v1683_v54  ;;  %v1711_v19 = vor.u32 %v1710_v60, %v1706_v50  ;;  %2304 = vst [vmem:[#allocation2 + $0x8] sm:$0x1] %v2303_v26  ;;  %2366 = vst [vmem:[#allocation2 + $0xc] sm:$0x1] %v2365_v12  ;;  %v2312_v18 = vsel %vm8473_vm3, 0, %v2311_v63  ;;  %v2374_v54 = vsel %vm8480_vm4, 0, %v2373_v48 }
  0x9b   :  { %2104 = vmatmul.mubr.bf16.gmra.mrb[60].mxu0 %v5831_v39  ;;  %6868 = vmatmul.mubr.bf16.gmra.mrb[12].mxu1 %v5673_v58  ;;  %v1685_v39 = vshrl.u32 %v5756_v3, 16  ;;  %v1720_v58 = vshrl.u32 %v5761_v33, 16  ;;  %v7368_v3 = vld [vmem:[%s9763_s4 + $0x140] sm:$0xff]   ;;  %v2305_v55 = vld [vmem:[#allocation2 + $0x10] sm:$0x1]  ;;  %v7378_v12 = vld [vmem:[%s9763_s4 + $0x168] sm:$0xff]  }
  0x9c   :  { %6884 = vmatpush3.bf16.msra.mxu1 %v7356_v21  ;;  %6887 = vmatprep.mubr.bf16.mxu1 %v5812_v59  ;;  %v5830_v59 = vcombine.low %v1704_v51, %v1711_v19  ;;  %2313 = vst [vmem:[#allocation2 + $0x20] sm:$0x1] %v2312_v18  ;;  %v2306_v32 = vsel %vm8473_vm3, 0, %v2305_v55  ;;  %v2367_v33 = vld [vmem:[#allocation2 + $0x14] sm:$0x1] }
  0x9d   :  { %6885 = vmatprep.subr.bf16.mxu1 %v7357_v10  ;;  %v1690_v21 = vor.u32 %v1689_v40, %v1685_v39  ;;  %v1725_v37 = vor.u32 %v1724_v47, %v1720_v58  ;;  %2375 = vst [vmem:[#allocation2 + $0x24] sm:$0x1] %v2374_v54  ;;  %2307 = vst [vmem:[#allocation2 + $0x10] sm:$0x1] %v2306_v32  ;;  %v2368_v40 = vsel %vm8480_vm4, 0, %v2367_v33  ;;  %v7372_v47 = vld [vmem:[%s9763_s4 + $0x150] sm:$0xff]  }
  0x9e   :  { %2369 = vst [vmem:[#allocation2 + $0x14] sm:$0x1] %v2368_v40  ;;  %v2320_v16 = vld [vmem:[#allocation2 + $0x38] sm:$0x1]  ;;  %v2314_v30 = vld [vmem:[#allocation2 + $0x28] sm:$0x1] }
  0x9f   :  { %v5827_v49 = vcombine.low %v1690_v21, %v1697_v31  ;;  %v5833_v36 = vcombine.low %v1718_v56, %v1725_v37  ;;  %v2321_v46 = vsel %vm8473_vm3, 0, %v2320_v16  ;;  %v7367_v31 = vld [vmem:[%s9763_s4 + $0xd8] sm:$0xff]   ;;  %v2315_v35 = vsel %vm8473_vm3, 0, %v2314_v30  ;;  %v7369_v37 = vld [vmem:[%s9763_s4 + $0x120] sm:$0xff]   ;;  %v2338_v13 = vld [vmem:[#allocation2 + $0x68] sm:$0x1] }
  0xa0   :  { %6886 = vmatpush3.bf16.msra.mxu1 %v7357_v10  ;;  %v7362_v10 = vld [vmem:[%s9763_s4 + $0x108] sm:$0xff]   ;;  %2322 = vst [vmem:[#allocation2 + $0x38] sm:$0x1] %v2321_v46  ;;  %2316 = vst [vmem:[#allocation2 + $0x28] sm:$0x1] %v2315_v35  ;;  %v7374_v56 = vld [vmem:[%s9763_s4 + $0x158] sm:$0xff]  }
  0xa1   :  { %6553 = vmatprep.subr.bf16.mxu0 %v7362_v10  ;;  %6903 = vmatprep.subr.bf16.mxu1 %v7368_v3  ;;  %v2323_v0 = vld [vmem:[#allocation2 + $0x40] sm:$0x1]  ;;  %v2400_v20 = vld [vmem:[#allocation2 + $0x6c] sm:$0x1]  ;;  %v2339_v38 = vsel %vm8473_vm3, 0, %v2338_v13 }
  0xa2   :  { %6554 = vmatpush3.bf16.msra.mxu0 %v7363_v11  ;;  %v2324_v11 = vsel %vm8473_vm3, 0, %v2323_v0  ;;  %v2401_v23 = vsel %vm8480_vm4, 0, %v2400_v20  ;;  %v2332_v26 = vld [vmem:[#allocation2 + $0x58] sm:$0x1]  ;;  %2340 = vst [vmem:[#allocation2 + $0x68] sm:$0x1] %v2339_v38 }
  0xa3   :  { %6888 = vmatmul.mubr.bf16.vlgmr.msra.gmra.mrb[0].mxu1 %v5815_v4  ;;  %6555 = vmatprep.subr.bf16.mxu0 %v7364_v17  ;;  %v2385_v17 = vld [vmem:[#allocation2 + $0x44] sm:$0x1]  ;;  %2325 = vst [vmem:[#allocation2 + $0x40] sm:$0x1] %v2324_v11  ;;  %2402 = vst [vmem:[#allocation2 + $0x6c] sm:$0x1] %v2401_v23 }
  0xa4   :  { %6891 = vmatprep.mubr.bf16.mxu1 %v5818_v61  ;;  %6904 = vmatpush3.bf16.msra.mxu1 %v7368_v3  ;;  %v2379_v3 = vld [vmem:[#allocation2 + $0x34] sm:$0x1]  ;;  %v2333_v18 = vsel %vm8473_vm3, 0, %v2332_v26  ;;  %v2394_v48 = vld [vmem:[#allocation2 + $0x5c] sm:$0x1]  ;;  %v7373_v54 = vld [vmem:[%s9763_s4 + $0x128] sm:$0xff]  }
  0xa5   :  { %6905 = vmatprep.subr.bf16.mxu1 %v7370_v2  ;;  %2334 = vst [vmem:[#allocation2 + $0x58] sm:$0x1] %v2333_v18  ;;  %v2395_v32 = vsel %vm8480_vm4, 0, %v2394_v48  ;;  %v7375_v16 = vld [vmem:[%s9763_s4 + $0xe8] sm:$0xff]   ;;  %v2341_v46 = vld [vmem:[#allocation2 + $0x70] sm:$0x1] }
  0xa6   :  { %6556 = vmatpush3.bf16.msra.mxu0 %v7365_v24  ;;  %v2317_v24 = vld [vmem:[#allocation2 + $0x30] sm:$0x1]  ;;  %2396 = vst [vmem:[#allocation2 + $0x5c] sm:$0x1] %v2395_v32 }
  0xa7   :  { %6557 = vmatprep.subr.bf16.mxu0 %v7366_v25 }
  0xa8   :  { %6906 = vmatpush3.bf16.msra.mxu1 %v7370_v2 }
  0xa9   :  { %6907 = vmatprep.subr.bf16.mxu1 %v7372_v47 }
  0xaa   :  { %6558 = vmatpush3.bf16.msra.mxu0 %v7367_v31 }
  0xab   :  { %6892 = vmatmul.mubr.bf16.gmra.mrb[4].mxu1 %v5821_v34  ;;  %6559 = vmatprep.subr.bf16.mxu0 %v7369_v37  ;;  %v2350_v37 = vld [vmem:[#allocation2 + $0x88] sm:$0x1] }
  0xac   :  { %6895 = vmatprep.mubr.bf16.mxu1 %v5824_v45  ;;  %v2382_v45 = vld [vmem:[#allocation2 + $0x3c] sm:$0x1]  ;;  %6908 = vmatpush3.bf16.msra.mxu1 %v7372_v47  ;;  %v2351_v0 = vsel %vm8473_vm3, 0, %v2350_v37  ;;  %v8646_v37 = vld [vmem:[%s9763_s4 + $0x80] sm:$0xff]  }
  0xad   :  { %v2383_v50 = vsel %vm8480_vm4, 0, %v2382_v45  ;;  %6909 = vmatprep.subr.bf16.mxu1 %v7374_v56  ;;  %2352 = vst [vmem:[#allocation2 + $0x88] sm:$0x1] %v2351_v0 }
  0xae   :  { %2384 = vst [vmem:[#allocation2 + $0x3c] sm:$0x1] %v2383_v50  ;;  %v2403_v50 = vld [vmem:[#allocation2 + $0x74] sm:$0x1] }
  0xaf   :  { %v2404_v30 = vsel %vm8480_vm4, 0, %v2403_v50 }
  0xb0   :  { %6910 = vmatpush3.bf16.msra.mxu1 %v7374_v56  ;;  %2405 = vst [vmem:[#allocation2 + $0x74] sm:$0x1] %v2404_v30 }
  0xb3   :  { %6896 = vmatmul.mubr.bf16.gmra.mrb[8].mxu1 %v5827_v49  ;;  %v2376_v49 = vld [vmem:[#allocation2 + $0x2c] sm:$0x1] }
  0xb4   :  { %6899 = vmatprep.mubr.bf16.mxu1 %v5830_v59  ;;  %v2377_v58 = vsel %vm8480_vm4, 0, %v2376_v49 }
  0xb5   :  { %2378 = vst [vmem:[#allocation2 + $0x2c] sm:$0x1] %v2377_v58 }
  0xbb   :  { %6900 = vmatmul.mubr.bf16.gmra.mrb[12].mxu1 %v5833_v36  ;;  %v7371_v36 = vld [vmem:[%s9763_s4 + $0xe0] sm:$0xff]  }
  0xbc   :  { %6560 = vmatpush3.bf16.msra.mxu0 %v7371_v36 }
  0xbd   :  { %6561 = vmatprep.subr.bf16.mxu0 %v7373_v54 }
  0xc0   :  { %6562 = vmatpush3.bf16.msra.mxu0 %v7375_v16  ;;  %v2347_v16 = vld [vmem:[#allocation2 + $0x80] sm:$0x1] }
  0xf6   :  { %v6327_v27 = vpop.f32.mrb[0].mxu0 }
  0xf7   :  { %v6328_v28 = vpop.f32.mrb[1].mxu0 }
  0xf8   :  { %v8462_v42 = vadd.f32 %v6328_v28, %v6327_v27  ;;  %v6330_v1 = vpop.f32.mrb[2].mxu0 }
  0xf9   :  { %v6331_v5 = vpop.f32.mrb[3].mxu0 }
  0xfa   :  { %v8464_v6 = vadd.f32 %v6331_v5, %v6330_v1  ;;  %v2386_v1 = vsel %vm8480_vm4, 0, %v2385_v17  ;;  %v2318_v5 = vsel %vm8473_vm3, 0, %v2317_v24 }
  0xfb   :  { %2387 = vst [vmem:[#allocation2 + $0x44] sm:$0x1] %v2386_v1  ;;  %2319 = vst [vmem:[#allocation2 + $0x30] sm:$0x1] %v2318_v5  ;;  %v2412_v1 = vld [vmem:[#allocation2 + $0x8c] sm:$0x1] }
  0xfc   :  { %v2344_v5 = vld [vmem:[#allocation2 + $0x78] sm:$0x1] }
  0xfe   :  { %v6333_v7 = vpop.f32.mrb[4].mxu0 }
  0xff   :  { %v6334_v4 = vpop.f32.mrb[5].mxu0 }
 0x100   :  { %v8469_v8 = vadd.f32 %v6334_v4, %v6333_v7  ;;  %v6336_v14 = vpop.f32.mrb[6].mxu0  ;;  %v7376_v4 = vld [vmem:[%s9763_s4 + $0x160] sm:$0xff]  }
 0x101   :  { %v6337_v15 = vpop.f32.mrb[7].mxu0  ;;  %6911 = vmatprep.subr.bf16.mxu1 %v7376_v4 }
 0x102   :  { %v8471_v44 = vadd.f32 %v6337_v15, %v6336_v14  ;;  %v2380_v15 = vsel %vm8480_vm4, 0, %v2379_v3  ;;  %6912 = vmatpush3.bf16.msra.mxu1 %v7376_v4  ;;  %v2413_v4 = vsel %vm8480_vm4, 0, %v2412_v1 }
 0x103   :  { %2381 = vst [vmem:[#allocation2 + $0x34] sm:$0x1] %v2380_v15  ;;  %6913 = vmatprep.subr.bf16.mxu1 %v7378_v12  ;;  %v2345_v15 = vsel %vm8473_vm3, 0, %v2344_v5  ;;  %2414 = vst [vmem:[#allocation2 + $0x8c] sm:$0x1] %v2413_v4 }
 0x104   :  { %2346 = vst [vmem:[#allocation2 + $0x78] sm:$0x1] %v2345_v15 }
 0x106   :  { %v6339_v29 = vpop.f32.mrb[8].mxu0  ;;  %6914 = vmatpush3.bf16.msra.mxu1 %v7378_v12 }
 0x107   :  { %v6340_v53 = vpop.f32.mrb[9].mxu0 }
 0x108   :  { %v8499_v34 = vadd.f32 %v6340_v53, %v6339_v29  ;;  %v6342_v39 = vpop.f32.mrb[10].mxu0 }
 0x109   :  { %v6343_v41 = vpop.f32.mrb[11].mxu0 }
 0x10a   :  { %v8503_v43 = vadd.f32 %v6343_v41, %v6342_v39 }
 0x10e   :  { %v6345_v60 = vpop.f32.mrb[12].mxu0 }
 0x10f   :  { %v6346_v21 = vpop.f32.mrb[13].mxu0 }
 0x110   :  { %v8515_v51 = vadd.f32 %v6346_v21, %v6345_v60  ;;  %v6348_v19 = vpop.f32.mrb[14].mxu0  ;;  %v2335_v21 = vld [vmem:[#allocation2 + $0x60] sm:$0x1] }
 0x111   :  { %v6349_v52 = vpop.f32.mrb[15].mxu0  ;;  %v2336_v31 = vsel %vm8473_vm3, 0, %v2335_v21 }
 0x112   :  { %v8524_v59 = vadd.f32 %v6349_v52, %v6348_v19  ;;  %v2397_v19 = vld [vmem:[#allocation2 + $0x64] sm:$0x1]  ;;  %2337 = vst [vmem:[#allocation2 + $0x60] sm:$0x1] %v2336_v31  ;;  %v7377_v52 = vld [vmem:[%s9763_s4 + $0x130] sm:$0xff]   ;;  %v7383_v31 = vld [vmem:[%s9763_s4 + $0xf8] sm:$0xff]  }
 0x113   :  { %6563 = vmatprep.subr.bf16.mxu0 %v7377_v52 }
 0x116   :  { %v6351_v62 = vpop.f32.mrb[16].mxu0  ;;  %v6407_v9 = vpop.f32.mrb[16].mxu1 }
 0x117   :  { %v6352_v10 = vpop.f32.mrb[17].mxu0  ;;  %v6408_v22 = vpop.f32.mrb[17].mxu1 }
 0x118   :  { %v8537_v27 = vadd.f32 %v6352_v10, %v6351_v62  ;;  %v6354_v28 = vpop.f32.mrb[18].mxu0  ;;  %v6409_v63 = vadd.f32 %v6408_v22, %v6407_v9  ;;  %v6410_v2 = vpop.f32.mrb[18].mxu1  ;;  %v7379_v10 = vld [vmem:[%s9763_s4 + $0xf0] sm:$0xff]   ;;  %v7568_v22 = vmov 0  }
 0x119   :  { %v6355_v7 = vpop.f32.mrb[19].mxu0  ;;  %v6411_v55 = vpop.f32.mrb[19].mxu1  ;;  %6564 = vmatpush3.bf16.msra.mxu0 %v7379_v10  ;;  %2287 = vst [vmem:[#allocation2] sm:$0xf] %v7568_v22  ;;  %2288 = vst [vmem:[#allocation2 + $0x4] sm:$0x1] %v7568_v22 }
 0x11a   :  { %v8546_v14 = vadd.f32 %v6355_v7, %v6354_v28  ;;  %v8565_v33 = vadd.f32 %v6409_v63, %v8462_v42  ;;  %v6412_v39 = vadd.f32 %v6411_v55, %v6410_v2  ;;  %v2342_v42 = vsel %vm8473_vm3, 0, %v2341_v46  ;;  %v7380_v7 = vld [vmem:[%s9763_s4 + $0x170] sm:$0xff]   ;;  %2289 = vst [vmem:[#allocation2 + $0x50] sm:$0xf] %v7568_v22  ;;  %2290 = vst [vmem:[#allocation2 + $0x54] sm:$0x1] %v7568_v22 }
 0x11b   :  { %2343 = vst [vmem:[#allocation2 + $0x70] sm:$0x1] %v2342_v42  ;;  %6915 = vmatprep.subr.bf16.mxu1 %v7380_v7  ;;  %2292 = vst [vmem:[#allocation2 + $0x48] sm:$0xf] %v7568_v22  ;;  %v2353_v2 = vld [vmem:[#allocation2 + $0x90] sm:$0x1] }
 0x11c   :  { %v8573_v60 = vadd.f32 %v6412_v39, %v8464_v6  ;;  %v2398_v6 = vsel %vm8480_vm4, 0, %v2397_v19  ;;  %2293 = vst [vmem:[#allocation2 + $0x4c] sm:$0x1] %v7568_v22  ;;  %2294 = vst [vmem:[#allocation2 + $0x98] sm:$0xf] %v7568_v22  ;;  %6916 = vmatpush3.bf16.msra.mxu1 %v7380_v7  ;;  %v2354_v55 = vsel %vm8473_vm3, 0, %v2353_v2 }
 0x11d   :  { %2399 = vst [vmem:[#allocation2 + $0x64] sm:$0x1] %v2398_v6  ;;  %2295 = vst [vmem:[#allocation2 + $0x9c] sm:$0x1] %v7568_v22  ;;  %v7381_v46 = vld [vmem:[%s9763_s4 + $0x138] sm:$0xff]   ;;  %v2348_v42 = vsel %vm8473_vm3, 0, %v2347_v16 }
 0x11e   :  { %v6357_v29 = vpop.f32.mrb[20].mxu0  ;;  %v6413_v35 = vpop.f32.mrb[20].mxu1  ;;  %2355 = vst [vmem:[#allocation2 + $0x90] sm:$0x1] %v2354_v55  ;;  %2349 = vst [vmem:[#allocation2 + $0x80] sm:$0x1] %v2348_v42  ;;  %6565 = vmatprep.subr.bf16.mxu0 %v7381_v46 }
 0x11f   :  { %v6358_v53 = vpop.f32.mrb[21].mxu0  ;;  %v6414_v49 = vpop.f32.mrb[21].mxu1  ;;  %6566 = vmatpush3.bf16.msra.mxu0 %v7383_v31 }
 0x120   :  { %v8567_v40 = vadd.f32 %v6358_v53, %v6357_v29  ;;  %v6360_v41 = vpop.f32.mrb[22].mxu0  ;;  %v6415_v58 = vadd.f32 %v6414_v49, %v6413_v35  ;;  %v6416_v47 = vpop.f32.mrb[22].mxu1  ;;  %v2415_v29 = vld [vmem:[#allocation2 + $0x94] sm:$0x1]  ;;  %v2299_v19 = vld [vmem:[#allocation2] sm:$0x1] }
 0x121   :  { %v6361_v45 = vpop.f32.mrb[23].mxu0  ;;  %v6417_v36 = vpop.f32.mrb[23].mxu1  ;;  %v2416_v53 = vsel %vm8480_vm4, 0, %v2415_v29  ;;  %v2300_v35 = vsel %vm8473_vm3, 0, %v2299_v19  ;;  %v2361_v6 = vld [vmem:[#allocation2 + $0x4] sm:$0x1] }
 0x122   :  { %v8575_v25 = vadd.f32 %v6361_v45, %v6360_v41  ;;  %v8594_v11 = vadd.f32 %v6415_v58, %v8469_v8  ;;  %v6418_v17 = vadd.f32 %v6417_v36, %v6416_v47  ;;  %v2406_v8 = vld [vmem:[#allocation2 + $0x7c] sm:$0x1]  ;;  %2417 = vst [vmem:[#allocation2 + $0x94] sm:$0x1] %v2416_v53  ;;  %v2409_v45 = vld [vmem:[#allocation2 + $0x84] sm:$0x1] }
 0x123   :  { %v2407_v20 = vsel %vm8480_vm4, 0, %v2406_v8  ;;  %v2410_v21 = vsel %vm8480_vm4, 0, %v2409_v45  ;;  %2301 = vst [vmem:[#allocation2] sm:$0x1] %v2300_v35 }
 0x124   :  { %v8606_v9 = vadd.f32 %v6418_v17, %v8471_v44  ;;  %2408 = vst [vmem:[#allocation2 + $0x7c] sm:$0x1] %v2407_v20  ;;  %v7382_v44 = vld [vmem:[%s9763_s4 + $0x178] sm:$0xff]   ;;  %2411 = vst [vmem:[#allocation2 + $0x84] sm:$0x1] %v2410_v21 }
 0x125   :  { %6917 = vmatprep.subr.bf16.mxu1 %v7382_v44 }
 0x126   :  { %v6363_v56 = vpop.f32.mrb[24].mxu0  ;;  %v6419_v38 = vpop.f32.mrb[24].mxu1  ;;  %6918 = vmatpush3.bf16.msra.mxu1 %v7382_v44 }
 0x127   :  { %v6364_v62 = vpop.f32.mrb[25].mxu0  ;;  %v6420_v23 = vpop.f32.mrb[25].mxu1  ;;  %6935 = vmatprep.subr.bf16.mxu1 %v8646_v37 }
 0x128   :  { %v8596_v24 = vadd.f32 %v6364_v62, %v6363_v56  ;;  %v6366_v28 = vpop.f32.mrb[26].mxu0  ;;  %v6421_v26 = vadd.f32 %v6420_v23, %v6419_v38  ;;  %v6422_v12 = vpop.f32.mrb[26].mxu1 }
 0x129   :  { %v6367_v3 = vpop.f32.mrb[27].mxu0  ;;  %v6423_v18 = vpop.f32.mrb[27].mxu1 }
 0x12a   :  { %v8608_v13 = vadd.f32 %v6367_v3, %v6366_v28  ;;  %v8620_v54 = vadd.f32 %v6421_v26, %v8499_v34  ;;  %v6424_v32 = vadd.f32 %v6423_v18, %v6422_v12 }
 0x12c   :  { %v8630_v30 = vadd.f32 %v6424_v32, %v8503_v43  ;;  %v2362_v43 = vsel %vm8480_vm4, 0, %v2361_v6 }
 0x12d   :  { %2363 = vst [vmem:[#allocation2 + $0x4] sm:$0x1] %v2362_v43 }
 0x12e   :  { %v6369_v63 = vpop.f32.mrb[28].mxu0  ;;  %v6425_v49 = vpop.f32.mrb[28].mxu1 }
 0x12f   :  { %v6370_v48 = vpop.f32.mrb[29].mxu0  ;;  %v6426_v52 = vpop.f32.mrb[29].mxu1 }
 0x130   :  { %v8622_v39 = vadd.f32 %v6370_v48, %v6369_v63  ;;  %v6372_v41 = vpop.f32.mrb[30].mxu0  ;;  %v6427_v58 = vadd.f32 %v6426_v52, %v6425_v49  ;;  %v6428_v47 = vpop.f32.mrb[30].mxu1 }
 0x131   :  { %v6373_v50 = vpop.f32.mrb[31].mxu0  ;;  %v6429_v56 = vpop.f32.mrb[31].mxu1 }
 0x132   :  { %v8632_v34 = vadd.f32 %v6373_v50, %v6372_v41  ;;  %v8649_v36 = vadd.f32 %v6427_v58, %v8515_v51  ;;  %v6430_v62 = vadd.f32 %v6429_v56, %v6428_v47  ;;  %v7392_v51 = vld [vmem:[%s9763_s4 + $0x40] sm:$0xff]  }
 0x133   :  { %6631 = vmatprep.subr.bf16.mxu0 %v7392_v51 }
 0x134   :  { %v8653_v17 = vadd.f32 %v6430_v62, %v8524_v59 }
 0x136   :  { %v6487_v0 = vpop.f32.mrb[32].mxu0  ;;  %v6431_v7 = vpop.f32.mrb[32].mxu1 }
 0x137   :  { %v6488_v10 = vpop.f32.mrb[33].mxu0  ;;  %v6432_v15 = vpop.f32.mrb[33].mxu1 }
 0x138   :  { %v6489_v28 = vadd.f32 %v6488_v10, %v6487_v0  ;;  %v6490_v1 = vpop.f32.mrb[34].mxu0  ;;  %v6433_v8 = vadd.f32 %v6432_v15, %v6431_v7  ;;  %v6434_v20 = vpop.f32.mrb[34].mxu1  ;;  %v2329_v10 = vld [vmem:[#allocation2 + $0x50] sm:$0x1] }
 0x139   :  { %v6491_v5 = vpop.f32.mrb[35].mxu0  ;;  %v6435_v59 = vpop.f32.mrb[35].mxu1 }
 0x13a   :  { %v6492_v3 = vadd.f32 %v6491_v5, %v6490_v1  ;;  %v8656_v4 = vadd.f32 %v8565_v33, %v6489_v28  ;;  %v8665_v44 = vadd.f32 %v6433_v8, %v8537_v27  ;;  %v6436_v38 = vadd.f32 %v6435_v59, %v6434_v20 }
 0x13c   :  { %v8662_v22 = vadd.f32 %v8573_v60, %v6492_v3  ;;  %v7064_v33 = vadd.f32 %v6436_v38, %v8546_v14 }
 0x13e   :  { %v6493_v23 = vpop.f32.mrb[36].mxu0  ;;  %v6437_v29 = vpop.f32.mrb[36].mxu1 }
 0x13f   :  { %v6494_v26 = vpop.f32.mrb[37].mxu0  ;;  %v6438_v60 = vpop.f32.mrb[37].mxu1 }
 0x140   :  { %v6495_v12 = vadd.f32 %v6494_v26, %v6493_v23  ;;  %v6496_v63 = vpop.f32.mrb[38].mxu0  ;;  %v6439_v55 = vadd.f32 %v6438_v60, %v6437_v29  ;;  %v6440_v53 = vpop.f32.mrb[38].mxu1 }
 0x141   :  { %v6497_v2 = vpop.f32.mrb[39].mxu0  ;;  %v6441_v27 = vpop.f32.mrb[39].mxu1 }
 0x142   :  { %v6498_v18 = vadd.f32 %v6497_v2, %v6496_v63  ;;  %v8669_v48 = vadd.f32 %v8594_v11, %v6495_v12  ;;  %v7055_v41 = vadd.f32 %v6439_v55, %v8567_v40  ;;  %v6442_v16 = vadd.f32 %v6441_v27, %v6440_v53 }
 0x144   :  { %v8672_v32 = vadd.f32 %v8606_v9, %v6498_v18  ;;  %v7061_v46 = vadd.f32 %v6442_v16, %v8575_v25 }
 0x146   :  { %v6499_v45 = vpop.f32.mrb[40].mxu0  ;;  %v6443_v31 = vpop.f32.mrb[40].mxu1 }
 0x147   :  { %v6500_v14 = vpop.f32.mrb[41].mxu0  ;;  %v6444_v35 = vpop.f32.mrb[41].mxu1 }
 0x148   :  { %v6501_v50 = vadd.f32 %v6500_v14, %v6499_v45  ;;  %v6502_v42 = vpop.f32.mrb[42].mxu0  ;;  %v6445_v6 = vadd.f32 %v6444_v35, %v6443_v31  ;;  %v6446_v9 = vpop.f32.mrb[42].mxu1  ;;  %v2326_v45 = vld [vmem:[#allocation2 + $0x48] sm:$0x1]  ;;  %v2388_v14 = vld [vmem:[#allocation2 + $0x4c] sm:$0x1] }
 0x149   :  { %v6503_v21 = vpop.f32.mrb[43].mxu0  ;;  %v6447_v40 = vpop.f32.mrb[43].mxu1 }
 0x14a   :  { %v6504_v11 = vadd.f32 %v6503_v21, %v6502_v42  ;;  %v8677_v19 = vadd.f32 %v8620_v54, %v6501_v50  ;;  %v7070_v43 = vadd.f32 %v6445_v6, %v8596_v24  ;;  %v6448_v52 = vadd.f32 %v6447_v40, %v6446_v9  ;;  %v2391_v54 = vld [vmem:[#allocation2 + $0x54] sm:$0x1] }
 0x14b   :  { %v2392_v24 = vsel %vm8480_vm4, 0, %v2391_v54  ;;  %v2356_v54 = vld [vmem:[#allocation2 + $0x98] sm:$0x1] }
 0x14c   :  { %v8680_v49 = vadd.f32 %v8630_v30, %v6504_v11  ;;  %v7076_v47 = vadd.f32 %v6448_v52, %v8608_v13  ;;  %v2330_v30 = vsel %vm8473_vm3, 0, %v2329_v10  ;;  %2393 = vst [vmem:[#allocation2 + $0x54] sm:$0x1] %v2392_v24 }
 0x14d   :  { %2331 = vst [vmem:[#allocation2 + $0x50] sm:$0x1] %v2330_v30 }
 0x14e   :  { %v6505_v58 = vpop.f32.mrb[44].mxu0  ;;  %v6449_v28 = vpop.f32.mrb[44].mxu1 }
 0x14f   :  { %v6506_v25 = vpop.f32.mrb[45].mxu0  ;;  %v6450_v7 = vpop.f32.mrb[45].mxu1 }
 0x150   :  { %v6507_v56 = vadd.f32 %v6506_v25, %v6505_v58  ;;  %v6508_v62 = vpop.f32.mrb[46].mxu0  ;;  %v6451_v13 = vadd.f32 %v6450_v7, %v6449_v28  ;;  %v6452_v3 = vpop.f32.mrb[46].mxu1  ;;  %v2418_v28 = vld [vmem:[#allocation2 + $0x9c] sm:$0x1] }
 0x151   :  { %v6509_v0 = vpop.f32.mrb[47].mxu0  ;;  %v6453_v15 = vpop.f32.mrb[47].mxu1 }
 0x152   :  { %v6510_v1 = vadd.f32 %v6509_v0, %v6508_v62  ;;  %v8685_v5 = vadd.f32 %v8649_v36, %v6507_v56  ;;  %v7067_v8 = vadd.f32 %v6451_v13, %v8622_v39  ;;  %v6454_v20 = vadd.f32 %v6453_v15, %v6452_v3  ;;  %v8720_v0 = vld [vmem:[%s9764_s2] ss:$0 sm:$0xff] }
 0x154   :  { %v8692_v51 = vadd.f32 %v8653_v17, %v6510_v1  ;;  %v7073_v38 = vadd.f32 %v6454_v20, %v8632_v34 }
 0x156   :  { %v6511_v36 = vpop.f32.mrb[48].mxu0 }
 0x157   :  { %v6512_v59 = vpop.f32.mrb[49].mxu0 }
 0x158   :  { %v6513_v23 = vadd.f32 %v6512_v59, %v6511_v36  ;;  %v6514_v26 = vpop.f32.mrb[50].mxu0  ;;  %v2419_v59 = vsel %vm8480_vm4, 0, %v2418_v28 }
 0x159   :  { %v6515_v12 = vpop.f32.mrb[51].mxu0  ;;  %2420 = vst [vmem:[#allocation2 + $0x9c] sm:$0x1] %v2419_v59 }
 0x15a   :  { %v6516_v63 = vadd.f32 %v6515_v12, %v6514_v26  ;;  %v8697_v2 = vadd.f32 %v8665_v44, %v6513_v23  ;;  %v2327_v44 = vsel %vm8473_vm3, 0, %v2326_v45 }
 0x15b   :  { %2328 = vst [vmem:[#allocation2 + $0x48] sm:$0x1] %v2327_v44  ;;  %v2660_v44 = vld [vmem:[#allocation2 + $0x18] sm:$0xf] }
 0x15c   :  { %v8699_v29 = vadd.f32 %v7064_v33, %v6516_v63  ;;  %v2389_v33 = vsel %vm8480_vm4, 0, %v2388_v14 }
 0x15d   :  { %2390 = vst [vmem:[#allocation2 + $0x4c] sm:$0x1] %v2389_v33  ;;  %v2663_v33 = vld [vmem:[#allocation2 + $0x1c] sm:$0x1] }
 0x15e   :  { %v6517_v18 = vpop.f32.mrb[52].mxu0 }
 0x15f   :  { %v6518_v17 = vpop.f32.mrb[53].mxu0 }
 0x160   :  { %v6519_v60 = vadd.f32 %v6518_v17, %v6517_v18  ;;  %v6520_v55 = vpop.f32.mrb[54].mxu0 }
 0x161   :  { %v6521_v53 = vpop.f32.mrb[55].mxu0 }
 0x162   :  { %v6522_v39 = vadd.f32 %v6521_v53, %v6520_v55  ;;  %v8701_v27 = vadd.f32 %v7055_v41, %v6519_v60 }
 0x164   :  { %v8703_v16 = vadd.f32 %v7061_v46, %v6522_v39 }
 0x166   :  { %v6523_v34 = vpop.f32.mrb[56].mxu0 }
 0x167   :  { %v6524_v50 = vpop.f32.mrb[57].mxu0 }
 0x168   :  { %v6525_v42 = vadd.f32 %v6524_v50, %v6523_v34  ;;  %v6526_v21 = vpop.f32.mrb[58].mxu0 }
 0x169   :  { %v6527_v31 = vpop.f32.mrb[59].mxu0 }
 0x16a   :  { %v6528_v11 = vadd.f32 %v6527_v31, %v6526_v21  ;;  %v8709_v41 = vadd.f32 %v7070_v43, %v6525_v42  ;;  %v8725_v43 = vld [vmem:[%s9765_s3] ss:$0 sm:$0xff] }
 0x16c   :  { %v8711_v46 = vadd.f32 %v7076_v47, %v6528_v11 }
 0x16e   :  { %v6529_v35 = vpop.f32.mrb[60].mxu0 }
 0x16f   :  { %v6530_v6 = vpop.f32.mrb[61].mxu0 }
 0x170   :  { %v6531_v9 = vadd.f32 %v6530_v6, %v6529_v35  ;;  %v6532_v40 = vpop.f32.mrb[62].mxu0  ;;  %v2648_v35 = vld [vmem:[#allocation2 + $0x8] sm:$0xf] }
 0x171   :  { %v6533_v52 = vpop.f32.mrb[63].mxu0 }
 0x172   :  { %v6534_v58 = vadd.f32 %v6533_v52, %v6532_v40  ;;  %v8713_v25 = vadd.f32 %v7067_v8, %v6531_v9  ;;  %v7396_v40 = vld [vmem:[%s9763_s4] sm:$0xff]  }
 0x174   :  { %v8715_v56 = vadd.f32 %v7073_v38, %v6534_v58  ;;  %v2651_v58 = vld [vmem:[#allocation2 + $0xc] sm:$0x1] }
 0x176   :  { %v6889_v62 = vpop.f32.mrb[0].mxu1 }
 0x177   :  { %v7033_v47 = vadd.f32 %v8669_v48, %v6889_v62  ;;  %v2146_v10 = vpop.f32.mrb[1].mxu1 }
 0x178   :  { %v7036_v1 = vadd.f32 %v8656_v4, %v2146_v10  ;;  %v6890_v30 = vpop.f32.mrb[2].mxu1  ;;  %v2357_v4 = vsel %vm8473_vm3, 0, %v2356_v54 }
 0x179   :  { %v2234_v24 = vmul.f32 %v7033_v47, %v8720_v0  ;;  %v7039_v7 = vadd.f32 %v8672_v32, %v6890_v30  ;;  %v2149_v13 = vpop.f32.mrb[3].mxu1  ;;  %2358 = vst [vmem:[#allocation2 + $0x98] sm:$0x1] %v2357_v4  ;;  %v2666_v30 = vld [vmem:[#allocation2 + $0x20] sm:$0xf] }
 0x17a   :  { %v2232_v3 = vmul.f32 %v7036_v1, %v8720_v0  ;;  %v7042_v15 = vadd.f32 %v8662_v22, %v2149_v13 }
 0x17b   :  { %v2257_v8 = vadd.f32 %v8725_v43, %v2234_v24  ;;  %v2235_v20 = vmul.f32 %v7039_v7, %v8720_v0 }
 0x17c   :  { %v2255_v48 = vadd.f32 %v8725_v43, %v2232_v3  ;;  %v2233_v36 = vmul.f32 %v7042_v15, %v8720_v0  ;;  %v2669_v3 = vld [vmem:[#allocation2 + $0x24] sm:$0x1] }
 0x17d   :  { %v2273_v32 = vmax.f32 %v2257_v8, 0.0  ;;  %v2258_v38 = vadd.f32 %v8725_v43, %v2235_v20 }
 0x17e   :  { %v2271_v22 = vmax.f32 %v2255_v48, 0.0  ;;  %v2256_v23 = vadd.f32 %v8725_v43, %v2233_v36  ;;  %v6893_v26 = vpop.f32.mrb[4].mxu1 }
 0x17f   :  { %v6250_v12 = vpack.c.bf16 %v2273_v32, %v2273_v32  ;;  %v2274_v63 = vmax.f32 %v2258_v38, 0.0  ;;  %v7045_v18 = vadd.f32 %v8685_v5, %v6893_v26  ;;  %v2162_v17 = vpop.f32.mrb[5].mxu1  ;;  %v2654_v32 = vld [vmem:[#allocation2 + $0x10] sm:$0xf]  ;;  %v2657_v38 = vld [vmem:[#allocation2 + $0x14] sm:$0x1] }
 0x180   :  { %v6248_v60 = vpack.c.bf16 %v2271_v22, %v2271_v22  ;;  %v2272_v55 = vmax.f32 %v2256_v23, 0.0  ;;  %v7048_v61 = vadd.f32 %v8677_v19, %v2162_v17  ;;  %v6894_v53 = vpop.f32.mrb[6].mxu1 }
 0x181   :  { %v2502_v39 = vshrl.u32 %v6250_v12, 16  ;;  %v2505_v34 = vshll.u32 %v6250_v12, 16  ;;  %v6251_v45 = vpack.c.bf16 %v2274_v63, %v2274_v63  ;;  %v2238_v14 = vmul.f32 %v7045_v18, %v8720_v0  ;;  %v2165_v50 = vpop.f32.mrb[7].mxu1 }
 0x182   :  { %v2486_v42 = vshrl.u32 %v6248_v60, 16  ;;  %v2489_v21 = vshll.u32 %v6248_v60, 16  ;;  %v6249_v31 = vpack.c.bf16 %v2272_v55, %v2272_v55  ;;  %v2236_v5 = vmul.f32 %v7048_v61, %v8720_v0 }
 0x183   :  { %v2504_v11 = vrot.slane %v2502_v39, 7  ;;  %v2510_v6 = vshrl.u32 %v6251_v45, 16  ;;  %v2513_v9 = vshll.u32 %v6251_v45, 16  ;;  %v2261_v19 = vadd.f32 %v8725_v43, %v2238_v14 }
 0x184   :  { %v2488_v52 = vrot.slane %v2486_v42, 7  ;;  %v2494_v62 = vshrl.u32 %v6249_v31, 16  ;;  %v2497_v47 = vshll.u32 %v6249_v31, 16  ;;  %v2259_v10 = vadd.f32 %v8725_v43, %v2236_v5 }
 0x185   :  { %v2507_v54 = vor.u32 %v2505_v34, %v2504_v11  ;;  %v2508_v28 = vrot.slane %v2504_v11, 4  ;;  %v2512_v1 = vrot.slane %v2510_v6, 7  ;;  %v2277_v24 = vmax.f32 %v2261_v19, 0.0  ;;  %v2684_v19 = vld [vmem:[#allocation2 + $0x38] sm:$0xf] }
 0x186   :  { %v2491_v7 = vor.u32 %v2489_v21, %v2488_v52  ;;  %v2492_v13 = vrot.slane %v2488_v52, 4  ;;  %v2496_v15 = vrot.slane %v2494_v62, 7  ;;  %v2275_v8 = vmax.f32 %v2259_v10, 0.0  ;;  %v6897_v20 = vpop.f32.mrb[8].mxu1  ;;  %v2687_v52 = vld [vmem:[#allocation2 + $0x3c] sm:$0x1] }
 0x187   :  { %v2661_v48 = vsel %vm8750_vm6, %v2507_v54, %v2660_v44  ;;  %v2664_v36 = vsel %vm8473_vm3, %v2508_v28, %v2663_v33  ;;  %v2515_v4 = vor.u32 %v2513_v9, %v2512_v1  ;;  %v2516_v59 = vrot.slane %v2512_v1, 4  ;;  %v2178_v22 = vpop.f32.mrb[9].mxu1 }
 0x188   :  { %2662 = vst [vmem:[#allocation2 + $0x18] sm:$0xf] %v2661_v48  ;;  %2665 = vst [vmem:[#allocation2 + $0x1c] sm:$0x1] %v2664_v36  ;;  %v2649_v23 = vsel %vm8750_vm6, %v2491_v7, %v2648_v35  ;;  %v2652_v26 = vsel %vm8473_vm3, %v2492_v13, %v2651_v58  ;;  %v2499_v12 = vor.u32 %v2497_v47, %v2496_v15  ;;  %v2500_v63 = vrot.slane %v2496_v15, 4  ;;  %v6898_v18 = vpop.f32.mrb[10].mxu1 }
 0x189   :  { %2650 = vst [vmem:[#allocation2 + $0x8] sm:$0xf] %v2649_v23  ;;  %2653 = vst [vmem:[#allocation2 + $0xc] sm:$0x1] %v2652_v26  ;;  %v2667_v17 = vsel %vm8750_vm6, %v2515_v4, %v2666_v30  ;;  %v2670_v60 = vsel %vm8473_vm3, %v2516_v59, %v2669_v3  ;;  %v6254_v55 = vpack.c.bf16 %v2277_v24, %v2277_v24  ;;  %v2181_v39 = vpop.f32.mrb[11].mxu1 }
 0x18a   :  { %v6252_v61 = vpack.c.bf16 %v2275_v8, %v2275_v8  ;;  %2668 = vst [vmem:[#allocation2 + $0x20] sm:$0xf] %v2667_v17  ;;  %2671 = vst [vmem:[#allocation2 + $0x24] sm:$0x1] %v2670_v60  ;;  %v2655_v34 = vsel %vm8750_vm6, %v2499_v12, %v2654_v32  ;;  %v2658_v45 = vsel %vm8473_vm3, %v2500_v63, %v2657_v38  ;;  %v2675_v58 = vld [vmem:[#allocation2 + $0x2c] sm:$0x1] }
 0x18b   :  { %v7051_v14 = vadd.f32 %v8692_v51, %v6894_v53  ;;  %v7054_v44 = vadd.f32 %v8680_v49, %v2165_v50  ;;  %2656 = vst [vmem:[#allocation2 + $0x10] sm:$0xf] %v2655_v34  ;;  %2659 = vst [vmem:[#allocation2 + $0x14] sm:$0x1] %v2658_v45  ;;  %v2534_v33 = vshrl.u32 %v6254_v55, 16  ;;  %v2537_v42 = vshll.u32 %v6254_v55, 16 }
 0x18c   :  { %v2518_v21 = vshrl.u32 %v6252_v61, 16  ;;  %v2521_v31 = vshll.u32 %v6252_v61, 16  ;;  %v7057_v35 = vadd.f32 %v8701_v27, %v6897_v20  ;;  %v7060_v6 = vadd.f32 %v8697_v2, %v2178_v22  ;;  %v2672_v50 = vld [vmem:[#allocation2 + $0x28] sm:$0xf]  ;;  %v2690_v55 = vld [vmem:[#allocation2 + $0x40] sm:$0xf] }
 0x18d   :  { %v2239_v5 = vmul.f32 %v7051_v14, %v8720_v0  ;;  %v2237_v11 = vmul.f32 %v7054_v44, %v8720_v0  ;;  %v2536_v9 = vrot.slane %v2534_v33, 7  ;;  %v7063_v49 = vadd.f32 %v8703_v16, %v6898_v18  ;;  %v2693_v44 = vld [vmem:[#allocation2 + $0x44] sm:$0x1] }
 0x18e   :  { %v2520_v51 = vrot.slane %v2518_v21, 7  ;;  %v7066_v53 = vadd.f32 %v8699_v29, %v2181_v39  ;;  %v2242_v10 = vmul.f32 %v7057_v35, %v8720_v0  ;;  %v2240_v27 = vmul.f32 %v7060_v6, %v8720_v0  ;;  %v6901_v54 = vpop.f32.mrb[12].mxu1 }
 0x18f   :  { %v2262_v62 = vadd.f32 %v8725_v43, %v2239_v5  ;;  %v2260_v47 = vadd.f32 %v8725_v43, %v2237_v11  ;;  %v2539_v2 = vor.u32 %v2537_v42, %v2536_v9  ;;  %v2540_v28 = vrot.slane %v2536_v9, 4  ;;  %v2194_v24 = vpop.f32.mrb[13].mxu1  ;;  %v2678_v42 = vld [vmem:[#allocation2 + $0x30] sm:$0xf] }
 0x190   :  { %v2523_v1 = vor.u32 %v2521_v31, %v2520_v51  ;;  %v2524_v30 = vrot.slane %v2520_v51, 4  ;;  %v2265_v29 = vadd.f32 %v8725_v43, %v2242_v10  ;;  %v2263_v13 = vadd.f32 %v8725_v43, %v2240_v27  ;;  %v8785_v3 = vpop.f32.mrb[14].mxu1 }
 0x191   :  { %v2278_v7 = vmax.f32 %v2262_v62, 0.0  ;;  %v2276_v16 = vmax.f32 %v2260_v47, 0.0  ;;  %v2685_v15 = vsel %vm8750_vm6, %v2539_v2, %v2684_v19  ;;  %v2688_v8 = vsel %vm8473_vm3, %v2540_v28, %v2687_v52  ;;  %v8795_v36 = vpop.f32.mrb[15].mxu1  ;;  %v2696_v2 = vld [vmem:[#allocation2 + $0x58] sm:$0xf] }
 0x192   :  { %v2673_v20 = vsel %vm8750_vm6, %v2523_v1, %v2672_v50  ;;  %v2676_v48 = vsel %vm8473_vm3, %v2524_v30, %v2675_v58  ;;  %2686 = vst [vmem:[#allocation2 + $0x38] sm:$0xf] %v2685_v15  ;;  %2689 = vst [vmem:[#allocation2 + $0x3c] sm:$0x1] %v2688_v8  ;;  %v2281_v32 = vmax.f32 %v2265_v29, 0.0  ;;  %v2279_v38 = vmax.f32 %v2263_v13, 0.0 }
 0x193   :  { %2674 = vst [vmem:[#allocation2 + $0x28] sm:$0xf] %v2673_v20  ;;  %2677 = vst [vmem:[#allocation2 + $0x2c] sm:$0x1] %v2676_v48  ;;  %v6255_v4 = vpack.c.bf16 %v2278_v7, %v2278_v7  ;;  %v6253_v59 = vpack.c.bf16 %v2276_v16, %v2276_v16  ;;  %v2243_v22 = vmul.f32 %v7063_v49, %v8720_v0  ;;  %v2708_v49 = vld [vmem:[#allocation2 + $0x68] sm:$0xf] }
 0x194   :  { %v2241_v23 = vmul.f32 %v7066_v53, %v8720_v0  ;;  %v7069_v26 = vadd.f32 %v8713_v25, %v6901_v54  ;;  %v7072_v12 = vadd.f32 %v8709_v41, %v2194_v24  ;;  %v6258_v61 = vpack.c.bf16 %v2281_v32, %v2281_v32  ;;  %v2681_v41 = vld [vmem:[#allocation2 + $0x34] sm:$0x1]  ;;  %v2711_v54 = vld [vmem:[#allocation2 + $0x6c] sm:$0x1]  ;;  %v2699_v28 = vld [vmem:[#allocation2 + $0x5c] sm:$0x1] }
 0x195   :  { %v2542_v63 = vshrl.u32 %v6255_v4, 16  ;;  %v2545_v18 = vshll.u32 %v6255_v4, 16  ;;  %v2526_v17 = vshrl.u32 %v6253_v59, 16  ;;  %v2529_v60 = vshll.u32 %v6253_v59, 16  ;;  %v8823_v59 = vld [vmem:[#allocation2 + $0x8] sm:$0xf] }
 0x196   :  { %v6256_v39 = vpack.c.bf16 %v2279_v38, %v2279_v38  ;;  %v2266_v34 = vadd.f32 %v8725_v43, %v2243_v22  ;;  %v2264_v45 = vadd.f32 %v8725_v43, %v2241_v23  ;;  %v2246_v21 = vmul.f32 %v7069_v26, %v8720_v0  ;;  %v8825_v32 = vld [vmem:[#allocation2 + $0xc] sm:$0x1]  ;;  %v2714_v26 = vld [vmem:[#allocation2 + $0x70] sm:$0xf] }
 0x197   :  { %v2544_v14 = vrot.slane %v2542_v63, 7  ;;  %v2528_v33 = vrot.slane %v2526_v17, 7  ;;  %v2244_v25 = vmul.f32 %v7072_v12, %v8720_v0  ;;  %v2566_v31 = vshrl.u32 %v6258_v61, 16  ;;  %v2717_v12 = vld [vmem:[#allocation2 + $0x74] sm:$0x1] }
 0x198   :  { %v2569_v5 = vshll.u32 %v6258_v61, 16  ;;  %v2550_v11 = vshrl.u32 %v6256_v39, 16  ;;  %v2553_v35 = vshll.u32 %v6256_v39, 16  ;;  %v2282_v50 = vmax.f32 %v2266_v34, 0.0  ;;  %v2702_v63 = vld [vmem:[#allocation2 + $0x60] sm:$0xf] }
 0x199   :  { %v2547_v6 = vor.u32 %v2545_v18, %v2544_v14  ;;  %v2548_v9 = vrot.slane %v2544_v14, 4  ;;  %v2531_v19 = vor.u32 %v2529_v60, %v2528_v33  ;;  %v2532_v52 = vrot.slane %v2528_v33, 4 }
 0x19a   :  { %v2568_v51 = vrot.slane %v2566_v31, 7  ;;  %v2552_v53 = vrot.slane %v2550_v11, 7  ;;  %v2280_v58 = vmax.f32 %v2264_v45, 0.0  ;;  %v6259_v16 = vpack.c.bf16 %v2282_v50, %v2282_v50  ;;  %v2705_v45 = vld [vmem:[#allocation2 + $0x64] sm:$0x1] }
 0x19b   :  { %v2691_v62 = vsel %vm8750_vm6, %v2547_v6, %v2690_v55  ;;  %v2694_v47 = vsel %vm8473_vm3, %v2548_v9, %v2693_v44  ;;  %v2679_v10 = vsel %vm8750_vm6, %v2531_v19, %v2678_v42  ;;  %v2682_v27 = vsel %vm8473_vm3, %v2532_v52, %v2681_v41  ;;  %v3161_v11 = vld [vmem:[#allocation2 + $0x10] sm:$0xe]  ;;  %v3162_v52 = vld [vmem:[#allocation2 + $0x18] sm:$0xe] }
 0x19c   :  { %2692 = vst [vmem:[#allocation2 + $0x40] sm:$0xf] %v2691_v62  ;;  %2695 = vst [vmem:[#allocation2 + $0x44] sm:$0x1] %v2694_v47  ;;  %v2571_v1 = vor.u32 %v2569_v5, %v2568_v51  ;;  %v2572_v30 = vrot.slane %v2568_v51, 4  ;;  %v2555_v24 = vor.u32 %v2553_v35, %v2552_v53  ;;  %v2556_v7 = vrot.slane %v2552_v53, 4 }
 0x19d   :  { %2680 = vst [vmem:[#allocation2 + $0x30] sm:$0xf] %v2679_v10  ;;  %2683 = vst [vmem:[#allocation2 + $0x34] sm:$0x1] %v2682_v27  ;;  %v6257_v29 = vpack.c.bf16 %v2280_v58, %v2280_v58  ;;  %v2269_v13 = vadd.f32 %v8725_v43, %v2246_v21  ;;  %v2267_v15 = vadd.f32 %v8725_v43, %v2244_v25  ;;  %v2574_v38 = vshrl.u32 %v6259_v16, 16 }
 0x19e   :  { %v2709_v8 = vsel %vm8750_vm6, %v2571_v1, %v2708_v49  ;;  %v2712_v20 = vsel %vm8473_vm3, %v2572_v30, %v2711_v54  ;;  %v2697_v48 = vsel %vm8750_vm6, %v2555_v24, %v2696_v2  ;;  %v2700_v4 = vsel %vm8473_vm3, %v2556_v7, %v2699_v28  ;;  %v8837_v25 = vld [vmem:[#allocation2 + $0x10] sm:$0xf]  ;;  %v3145_v5 = vld [vmem:[#allocation2 + $0x14] sm:$0x1]  ;;  %v2732_v58 = vld [vmem:[#allocation2 + $0x88] sm:$0xf] }
 0x19f   :  { %2710 = vst [vmem:[#allocation2 + $0x68] sm:$0xf] %v2709_v8  ;;  %2713 = vst [vmem:[#allocation2 + $0x6c] sm:$0x1] %v2712_v20  ;;  %v2577_v22 = vshll.u32 %v6259_v16, 16  ;;  %v2558_v23 = vshrl.u32 %v6257_v29, 16  ;;  %v7075_v60 = vadd.f32 %v8715_v56, %v8785_v3  ;;  %v7078_v55 = vadd.f32 %v8711_v46, %v8795_v36 }
 0x1a0   :  { %2698 = vst [vmem:[#allocation2 + $0x58] sm:$0xf] %v2697_v48  ;;  %2701 = vst [vmem:[#allocation2 + $0x5c] sm:$0x1] %v2700_v4  ;;  %v2285_v18 = vmax.f32 %v2269_v13, 0.0  ;;  %v2283_v17 = vmax.f32 %v2267_v15, 0.0  ;;  %v8833_v14 = vcombine.low %v8823_v59, %v8825_v32  ;;  %v8852_v28 = vcombine.low %v8837_v25, %v3145_v5 }
 0x1a1   :  { %v2576_v61 = vrot.slane %v2574_v38, 7  ;;  %v2560_v39 = vrot.slane %v2558_v23, 7  ;;  %v2561_v34 = vshll.u32 %v6257_v29, 16  ;;  %v2247_v42 = vmul.f32 %v7075_v60, %v8720_v0  ;;  %v3160_v56 = vld [vmem:[#allocation2 + $0x8] sm:$0xe] }
 0x1a2   :  { %v6262_v44 = vpack.c.bf16 %v2285_v18, %v2285_v18  ;;  %v6260_v33 = vpack.c.bf16 %v2283_v17, %v2283_v17  ;;  %v2245_v21 = vmul.f32 %v7078_v55, %v8720_v0  ;;  %v8839_v3 = vld [vmem:[#allocation2 + $0x1c] sm:$0x1]  ;;  %v2735_v27 = vld [vmem:[#allocation2 + $0x8c] sm:$0x1]  ;;  %v2720_v54 = vld [vmem:[#allocation2 + $0x78] sm:$0xf]  ;;  %v5924_v1 = vcombine.low %v3160_v56, %v8825_v32 }
 0x1a3   :  { %v2579_v46 = vor.u32 %v2577_v22, %v2576_v61  ;;  %v2580_v36 = vrot.slane %v2576_v61, 4  ;;  %v2563_v41 = vor.u32 %v2561_v34, %v2560_v39  ;;  %v2564_v31 = vrot.slane %v2560_v39, 4  ;;  %v2723_v2 = vld [vmem:[#allocation2 + $0x7c] sm:$0x1]  ;;  %v3147_v15 = vld [vmem:[#allocation2 + $0x24] sm:$0x1] }
 0x1a4   :  { %v2598_v35 = vshrl.u32 %v6262_v44, 16  ;;  %v2601_v6 = vshll.u32 %v6262_v44, 16  ;;  %v2582_v9 = vshrl.u32 %v6260_v33, 16  ;;  %v2585_v19 = vshll.u32 %v6260_v33, 16  ;;  %v3163_v8 = vld [vmem:[#allocation2 + $0x20] sm:$0xe] }
 0x1a5   :  { %v2715_v51 = vsel %vm8750_vm6, %v2579_v46, %v2714_v26  ;;  %v2718_v0 = vsel %vm8473_vm3, %v2580_v36, %v2717_v12  ;;  %v2703_v49 = vsel %vm8750_vm6, %v2563_v41, %v2702_v63  ;;  %v2706_v53 = vsel %vm8473_vm3, %v2564_v31, %v2705_v45  ;;  %v8864_v17 = vld [vmem:[#allocation2 + $0x18] sm:$0xf]  ;;  %v8866_v60 = vld [vmem:[#allocation2 + $0x20] sm:$0xf]  ;;  %v8870_v34 = vld [vmem:[#allocation2 + $0x28] sm:$0xf] }
 0x1a6   :  { %2716 = vst [vmem:[#allocation2 + $0x70] sm:$0xf] %v2715_v51  ;;  %2719 = vst [vmem:[#allocation2 + $0x74] sm:$0x1] %v2718_v0  ;;  %v2600_v50 = vrot.slane %v2598_v35, 7  ;;  %v2584_v62 = vrot.slane %v2582_v9, 7  ;;  %v2270_v47 = vadd.f32 %v8725_v43, %v2247_v42  ;;  %v2268_v10 = vadd.f32 %v8725_v43, %v2245_v21 }
 0x1a7   :  { %2704 = vst [vmem:[#allocation2 + $0x60] sm:$0xf] %v2703_v49  ;;  %2707 = vst [vmem:[#allocation2 + $0x64] sm:$0x1] %v2706_v53  ;;  %v5925_v30 = vcombine.low %v3161_v11, %v3145_v5  ;;  %v5926_v24 = vcombine.low %v3162_v52, %v8839_v3  ;;  %v3416_v43 = vrot.slane %v5924_v1, 1  ;;  %v5927_v18 = vcombine.low %v3163_v8, %v3147_v15  ;;  %v7393_v49 = vld [vmem:[%s9763_s4 + $0x88] sm:$0xff]  }
 0x1a8   :  { %v2603_v7 = vor.u32 %v2601_v6, %v2600_v50  ;;  %v2604_v16 = vrot.slane %v2600_v50, 4  ;;  %v2587_v29 = vor.u32 %v2585_v19, %v2584_v62  ;;  %v2588_v13 = vrot.slane %v2584_v62, 4  ;;  %v8873_v21 = vld [vmem:[#allocation2 + $0x2c] sm:$0x1]  ;;  %v2738_v56 = vld [vmem:[#allocation2 + $0x90] sm:$0xf] }
 0x1a9   :  { %v2286_v20 = vmax.f32 %v2270_v47, 0.0  ;;  %v2284_v48 = vmax.f32 %v2268_v10, 0.0  ;;  %v3417_v4 = vrot.slane %v5925_v30, 1  ;;  %v3418_v55 = vrot.slane %v5926_v24, 1  ;;  %v2741_v46 = vld [vmem:[#allocation2 + $0x94] sm:$0x1] }
 0x1aa   :  { %v2733_v38 = vsel %vm8750_vm6, %v2603_v7, %v2732_v58  ;;  %v2736_v22 = vsel %vm8473_vm3, %v2604_v16, %v2735_v27  ;;  %v2721_v32 = vsel %vm8750_vm6, %v2587_v29, %v2720_v54  ;;  %v2724_v23 = vsel %vm8473_vm3, %v2588_v13, %v2723_v2  ;;  %v2726_v6 = vld [vmem:[#allocation2 + $0x80] sm:$0xf]  ;;  %v2729_v19 = vld [vmem:[#allocation2 + $0x84] sm:$0x1]  ;;  %v3164_v53 = vld [vmem:[#allocation2 + $0x28] sm:$0xe] }
 0x1ab   :  { %2734 = vst [vmem:[#allocation2 + $0x88] sm:$0xf] %v2733_v38  ;;  %2737 = vst [vmem:[#allocation2 + $0x8c] sm:$0x1] %v2736_v22  ;;  %v6263_v26 = vpack.c.bf16 %v2286_v20, %v2286_v20  ;;  %v6261_v12 = vpack.c.bf16 %v2284_v48, %v2284_v48  ;;  %v5990_v63 = vcombine.low %v3416_v43, %v3417_v4  ;;  %v3257_v61 = vshrl.u32 %v8833_v14, 16 }
 0x1ac   :  { %2722 = vst [vmem:[#allocation2 + $0x78] sm:$0xf] %v2721_v32  ;;  %2725 = vst [vmem:[#allocation2 + $0x7c] sm:$0x1] %v2724_v23  ;;  %v3259_v39 = vshll.u32 %v8833_v14, 16  ;;  %v3264_v42 = vshrl.u32 %v8852_v28, 16  ;;  %v5910_v5 = vcombine.low %v8864_v17, %v8839_v3  ;;  %v5911_v9 = vcombine.low %v8866_v60, %v3147_v15 }
 0x1ad   :  { %v2606_v45 = vshrl.u32 %v6263_v26, 16  ;;  %v2609_v44 = vshll.u32 %v6263_v26, 16  ;;  %v2590_v33 = vshrl.u32 %v6261_v12, 16  ;;  %6919 = vmatprep.mubr.bf16.mxu1 %v5990_v63  ;;  %v3419_v36 = vrot.slane %v5927_v18, 1  ;;  %v8886_v10 = vld [vmem:[#allocation2 + $0x30] sm:$0xf] }
 0x1ae   :  { %v3261_v41 = vrot.slane %v3259_v39, 1  ;;  %v3266_v31 = vshll.u32 %v8852_v28, 16  ;;  %v2593_v35 = vshll.u32 %v6261_v12, 16  ;;  %v8884_v50 = vcombine.low %v8870_v34, %v8873_v21  ;;  %v3149_v27 = vld [vmem:[#allocation2 + $0x34] sm:$0x1]  ;;  %v7407_v12 = vld [vmem:[%s9763_s4 + $0x48] sm:$0xff]  }
 0x1af   :  { %v2608_v14 = vrot.slane %v2606_v45, 7  ;;  %v2592_v11 = vrot.slane %v2590_v33, 7  ;;  %v5993_v52 = vcombine.low %v3418_v55, %v3419_v36  ;;  %v3150_v54 = vld [vmem:[#allocation2 + $0x3c] sm:$0x1]  ;;  %v3271_v28 = vshrl.u32 %v5910_v5, 16 }
 0x1b0   :  { %v3262_v51 = vor.u32 %v3261_v41, %v3257_v61  ;;  %v3268_v0 = vrot.slane %v3266_v31, 1  ;;  %v3273_v1 = vshll.u32 %v5910_v5, 16  ;;  %v3280_v30 = vshll.u32 %v5911_v9, 16  ;;  %v3165_v24 = vld [vmem:[#allocation2 + $0x30] sm:$0xe]  ;;  %v7408_v41 = vld [vmem:[%s9763_s4 + $0x98] sm:$0xff]  }
 0x1b1   :  { %v2611_v3 = vor.u32 %v2609_v44, %v2608_v14  ;;  %v2612_v58 = vrot.slane %v2608_v14, 4  ;;  %v2595_v62 = vor.u32 %v2593_v35, %v2592_v11  ;;  %v2596_v47 = vrot.slane %v2592_v11, 4  ;;  %6920 = vmatmul.mubr.bf16.vlgmr.msra.gmra.mrb[48].mxu1 %v5993_v52  ;;  %v3151_v15 = vld [vmem:[#allocation2 + $0x44] sm:$0x1]  ;;  %v3166_v8 = vld [vmem:[#allocation2 + $0x38] sm:$0xe] }
 0x1b2   :  { %v3269_v2 = vor.u32 %v3268_v0, %v3264_v42  ;;  %6936 = vmatpush3.bf16.msra.mxu1 %v8646_v37  ;;  %v3167_v20 = vld [vmem:[#allocation2 + $0x40] sm:$0xe]  ;;  %v3275_v43 = vrot.slane %v3273_v1, 1  ;;  %v3278_v4 = vshrl.u32 %v5911_v9, 16  ;;  %v3282_v38 = vrot.slane %v3280_v30, 1 }
 0x1b3   :  { %v2739_v7 = vsel %vm8750_vm6, %v2611_v3, %v2738_v56  ;;  %v2742_v16 = vsel %vm8473_vm3, %v2612_v58, %v2741_v46  ;;  %v2727_v29 = vsel %vm8750_vm6, %v2595_v62, %v2726_v6  ;;  %v2730_v13 = vsel %vm8473_vm3, %v2596_v47, %v2729_v19  ;;  %6937 = vmatprep.subr.bf16.mxu1 %v7393_v49  ;;  %v8907_v26 = vld [vmem:[#allocation2 + $0x38] sm:$0xf]  ;;  %v8912_v55 = vld [vmem:[#allocation2 + $0x40] sm:$0xf]  ;;  %v8914_v45 = vld [vmem:[#allocation2 + $0x5c] sm:$0x1] }
 0x1b4   :  { %2740 = vst [vmem:[#allocation2 + $0x90] sm:$0xf] %v2739_v7  ;;  %2743 = vst [vmem:[#allocation2 + $0x94] sm:$0x1] %v2742_v16  ;;  %v5989_v48 = vcombine.low %v3262_v51, %v3269_v2  ;;  %v5988_v37 = vcombine.low %v8823_v59, %v8837_v25  ;;  %v5913_v22 = vcombine.low %v8886_v10, %v3149_v27  ;;  %v3168_v59 = vld [vmem:[#allocation2 + $0x58] sm:$0xe] }
 0x1b5   :  { %2728 = vst [vmem:[#allocation2 + $0x80] sm:$0xf] %v2727_v29  ;;  %2731 = vst [vmem:[#allocation2 + $0x84] sm:$0x1] %v2730_v13  ;;  %v5928_v32 = vcombine.low %v3164_v53, %v8873_v21  ;;  %v5929_v23 = vcombine.low %v3165_v24, %v3149_v27  ;;  %v3276_v63 = vor.u32 %v3275_v43, %v3271_v28  ;;  %v8916_v33 = vld [vmem:[#allocation2 + $0x64] sm:$0x1] }
 0x1b6   :  { %3737 = vmatprep.mubr.bf16.mxu0 %v5989_v48  ;;  %v3283_v18 = vor.u32 %v3282_v38, %v3278_v4  ;;  %v5930_v61 = vcombine.low %v3166_v8, %v3150_v54  ;;  %v5931_v39 = vcombine.low %v3167_v20, %v3151_v15  ;;  %6938 = vmatpush3.bf16.msra.mxu1 %v7393_v49  ;;  %v8918_v42 = vld [vmem:[#allocation2 + $0x6c] sm:$0x1]  ;;  %v3170_v21 = vld [vmem:[#allocation2 + $0x68] sm:$0xe]  ;;  %v3287_v31 = vshll.u32 %v8884_v50, 16  ;;  %v7420_v53 = vld [vmem:[%s9763_s4 + $0x50] sm:$0xff]  }
 0x1b7   :  { %3738 = vmatmul.mubr.bf16.vlgmr.msra.gmra.mrb[64].mxu0 %v5988_v37  ;;  %v3420_v25 = vrot.slane %v5928_v32, 1  ;;  %v3421_v44 = vrot.slane %v5929_v23, 1  ;;  %6939 = vmatprep.subr.bf16.mxu1 %v7405_v57  ;;  %v3169_v5 = vld [vmem:[#allocation2 + $0x60] sm:$0xe]  ;;  %v8925_v11 = vcombine.low %v8907_v26, %v3150_v54  ;;  %v3294_v35 = vshll.u32 %v5913_v22, 16  ;;  %v7409_v6 = vld [vmem:[%s9763_s4 + $0x8] sm:$0xff]  }
 0x1b8   :  { %v5992_v56 = vcombine.low %v3276_v63, %v3283_v18  ;;  %6632 = vmatpush3.bf16.msra.mxu0 %v7396_v40  ;;  %v3422_v46 = vrot.slane %v5930_v61, 1  ;;  %v3423_v36 = vrot.slane %v5931_v39, 1  ;;  %v8930_v9 = vld [vmem:[#allocation2 + $0x74] sm:$0x1]  ;;  %v3171_v19 = vld [vmem:[#allocation2 + $0x70] sm:$0xe]  ;;  %v8933_v52 = vcombine.low %v8912_v55, %v3151_v15 }
 0x1b9   :  { %v5996_v14 = vcombine.low %v3420_v25, %v3421_v44  ;;  %6633 = vmatprep.subr.bf16.mxu0 %v7407_v12  ;;  %v3289_v0 = vrot.slane %v3287_v31, 1  ;;  %v5932_v49 = vcombine.low %v3168_v59, %v8914_v45  ;;  %v3285_v3 = vshrl.u32 %v8884_v50, 16  ;;  %v8941_v27 = vld [vmem:[#allocation2 + $0x4] sm:$0x1]  ;;  %v8943_v54 = vld [vmem:[#allocation2] sm:$0xe] }
 0x1ba   :  { %3745 = vmatprep.mubr.bf16.mxu0 %v5992_v56  ;;  %v5999_v51 = vcombine.low %v3422_v46, %v3423_v36  ;;  %6940 = vmatpush3.bf16.msra.mxu1 %v7405_v57  ;;  %v3292_v58 = vshrl.u32 %v5913_v22, 16  ;;  %v3296_v62 = vrot.slane %v3294_v35, 1  ;;  %v5933_v47 = vcombine.low %v3169_v5, %v8916_v33  ;;  %v8947_v28 = vld [vmem:[#allocation2 + $0x58] sm:$0xf]  ;;  %v7418_v50 = vld [vmem:[%s9763_s4 + $0xa0] sm:$0xff]   ;;  %v7422_v24 = vld [vmem:[%s9763_s4 + $0x10] sm:$0xff]  }
 0x1bb   :  { %6923 = vmatprep.mubr.bf16.mxu1 %v5996_v14  ;;  %v5991_v2 = vcombine.low %v8864_v17, %v8866_v60  ;;  %6941 = vmatprep.subr.bf16.mxu1 %v7408_v41  ;;  %v5934_v1 = vcombine.low %v3170_v21, %v8918_v42  ;;  %v5935_v30 = vcombine.low %v3171_v19, %v8930_v9  ;;  %v8957_v29 = vld [vmem:[#allocation2 + $0x60] sm:$0xf]  ;;  %v3424_v17 = vrot.slane %v5932_v49, 1  ;;  %v8959_v13 = vld [vmem:[#allocation2 + $0x7c] sm:$0x1]  ;;  %v7421_v20 = vld [vmem:[%s9763_s4 + $0xa8] sm:$0xff]  }
 0x1bc   :  { %6924 = vmatmul.mubr.bf16.gmra.mrb[52].mxu1 %v5999_v51  ;;  %v3290_v7 = vor.u32 %v3289_v0, %v3285_v3  ;;  %v3297_v16 = vor.u32 %v3296_v62, %v3292_v58  ;;  %6634 = vmatpush3.bf16.msra.mxu0 %v7409_v6  ;;  %v3425_v60 = vrot.slane %v5933_v47, 1  ;;  %v3172_v15 = vld [vmem:[#allocation2 + $0x78] sm:$0xe]  ;;  %v3301_v48 = vshll.u32 %v8925_v11, 16  ;;  %v8965_v43 = vld [vmem:[#allocation2 + $0x84] sm:$0x1] }
 0x1bd   :  { %v3427_v8 = vrot.slane %v5935_v30, 1  ;;  %6635 = vmatprep.subr.bf16.mxu0 %v7420_v53  ;;  %v3173_v4 = vld [vmem:[#allocation2 + $0x80] sm:$0xe]  ;;  %v3308_v57 = vshll.u32 %v8933_v52, 16  ;;  %v8968_v37 = vld [vmem:[#allocation2 + $0x94] sm:$0x1]  ;;  %v5936_v63 = vcombine.low %v3172_v15, %v8959_v13  ;;  %v5892_v39 = vcombine.low %v8943_v54, %v8941_v27 }
 0x1be   :  { %v5995_v38 = vcombine.low %v3290_v7, %v3297_v16  ;;  %6942 = vmatpush3.bf16.msra.mxu1 %v7408_v41  ;;  %v6002_v40 = vcombine.low %v3424_v17, %v3425_v60  ;;  %v3175_v22 = vld [vmem:[#allocation2 + $0x90] sm:$0xe]  ;;  %v7438_v32 = vld [vmem:[%s9763_s4 + $0x58] sm:$0xff]   ;;  %v3426_v23 = vrot.slane %v5934_v1, 1  ;;  %v3303_v12 = vrot.slane %v3301_v48, 1  ;;  %v7450_v58 = vld [vmem:[%s9763_s4 + $0x60] sm:$0xff]  }
 0x1bf   :  { %3746 = vmatmul.mubr.bf16.gmra.mrb[68].mxu0 %v5991_v2  ;;  %6943 = vmatprep.subr.bf16.mxu1 %v7418_v50  ;;  %v8974_v18 = vld [vmem:[#allocation2 + $0xc] sm:$0x1]  ;;  %v2777_v61 = vld [vmem:[#allocation2 + $0x8] sm:$0xe]  ;;  %v8980_v59 = vcombine.low %v8947_v28, %v8914_v45  ;;  %v3306_v25 = vshrl.u32 %v8933_v52, 16  ;;  %v3310_v44 = vrot.slane %v3308_v57, 1  ;;  %v5937_v21 = vcombine.low %v3173_v4, %v8965_v43 }
 0x1c0   :  { %3753 = vmatprep.mubr.bf16.mxu0 %v5995_v38  ;;  %6927 = vmatprep.mubr.bf16.mxu1 %v6002_v40  ;;  %v8984_v56 = vld [vmem:[#allocation2 + $0x8c] sm:$0x1]  ;;  %v3174_v46 = vld [vmem:[#allocation2 + $0x88] sm:$0xe]  ;;  %v5917_v36 = vcombine.low %v8957_v29, %v8916_v33  ;;  %v6005_v41 = vcombine.low %v3426_v23, %v3427_v8  ;;  %v3299_v31 = vshrl.u32 %v8925_v11, 16  ;;  %v5939_v5 = vcombine.low %v3175_v22, %v8968_v37  ;;  %v7440_v45 = vld [vmem:[%s9763_s4 + $0x18] sm:$0xff]  }
 0x1c1   :  { %6636 = vmatpush3.bf16.msra.mxu0 %v7422_v24  ;;  %v3311_v14 = vor.u32 %v3310_v44, %v3306_v25  ;;  %v3428_v35 = vrot.slane %v5936_v63, 1  ;;  %v3429_v6 = vrot.slane %v5937_v21, 1  ;;  %v5893_v19 = vcombine.low %v2777_v61, %v8974_v18  ;;  %v8994_v52 = vld [vmem:[#allocation2 + $0x68] sm:$0xf]  ;;  %v8996_v33 = vld [vmem:[#allocation2 + $0x70] sm:$0xf] }
 0x1c2   :  { %6944 = vmatpush3.bf16.msra.mxu1 %v7418_v50  ;;  %6637 = vmatprep.subr.bf16.mxu0 %v7438_v32  ;;  %v3304_v11 = vor.u32 %v3303_v12, %v3299_v31  ;;  %v5938_v51 = vcombine.low %v3174_v46, %v8984_v56  ;;  %v5994_v0 = vcombine.low %v8870_v34, %v8886_v10  ;;  %v7431_v53 = vld [vmem:[%s9763_s4 + $0xb0] sm:$0xff]   ;;  %v3032_v3 = vrot.slane %v5892_v39, 1  ;;  %v7439_v54 = vld [vmem:[%s9763_s4 + $0xb8] sm:$0xff]   ;;  %v7452_v10 = vld [vmem:[%s9763_s4 + $0x20] sm:$0xff]  }
 0x1c3   :  { %6945 = vmatprep.subr.bf16.mxu1 %v7421_v20  ;;  %v6008_v49 = vcombine.low %v3428_v35, %v3429_v6  ;;  %v3431_v47 = vrot.slane %v5939_v5, 1  ;;  %v3315_v2 = vshll.u32 %v8980_v59, 16  ;;  %v3322_v1 = vshll.u32 %v5917_v36, 16  ;;  %v9011_v34 = vld [vmem:[#allocation2 + $0x14] sm:$0x1]  ;;  %v7465_v17 = vld [vmem:[%s9763_s4 + $0x68] sm:$0xff]  }
 0x1c4   :  { %6928 = vmatmul.mubr.bf16.gmra.mrb[56].mxu1 %v6005_v41  ;;  %v5998_v62 = vcombine.low %v3304_v11, %v3311_v14  ;;  %v9018_v30 = vcombine.low %v8994_v52, %v8918_v42  ;;  %v9022_v50 = vcombine.low %v8996_v33, %v8930_v9  ;;  %v3033_v24 = vrot.slane %v5893_v19, 1  ;;  %v2778_v7 = vld [vmem:[#allocation2 + $0x10] sm:$0xe]  ;;  %v9024_v16 = vld [vmem:[#allocation2 + $0x2c] sm:$0x1]  ;;  %v7443_v25 = vld [vmem:[%s9763_s4 + $0x1c0] sm:$0xff]  }
 0x1c5   :  { %6638 = vmatpush3.bf16.msra.mxu0 %v7440_v45  ;;  %6931 = vmatprep.mubr.bf16.mxu1 %v6008_v49  ;;  %v3430_v60 = vrot.slane %v5938_v51, 1  ;;  %v3317_v15 = vrot.slane %v3315_v2, 1  ;;  %v3320_v42 = vshrl.u32 %v5917_v36, 16  ;;  %v3324_v8 = vrot.slane %v3322_v1, 1  ;;  %v2781_v48 = vld [vmem:[#allocation2 + $0x28] sm:$0xe] }
 0x1c6   :  { %6946 = vmatpush3.bf16.msra.mxu1 %v7421_v20  ;;  %v9029_v9 = vld [vmem:[#allocation2 + $0x1c] sm:$0x1]  ;;  %v2779_v4 = vld [vmem:[#allocation2 + $0x18] sm:$0xe]  ;;  %6639 = vmatprep.subr.bf16.mxu0 %v7450_v58  ;;  %v3313_v38 = vshrl.u32 %v8980_v59, 16  ;;  %v5894_v57 = vcombine.low %v2778_v7, %v9011_v34  ;;  %v7467_v23 = vld [vmem:[%s9763_s4 + $0x28] sm:$0xff]   ;;  %v6038_v63 = vcombine.low %v3032_v3, %v3033_v24  ;;  %v5897_v61 = vcombine.low %v2781_v48, %v9024_v16 }
 0x1c7   :  { %3754 = vmatmul.mubr.bf16.gmra.mrb[72].mxu0 %v5994_v0  ;;  %6947 = vmatprep.subr.bf16.mxu1 %v7431_v53  ;;  %v6011_v20 = vcombine.low %v3430_v60, %v3431_v47  ;;  %v3325_v40 = vor.u32 %v3324_v8, %v3320_v42  ;;  %v9033_v22 = vld [vmem:[#allocation2 + $0x24] sm:$0x1]  ;;  %v2780_v32 = vld [vmem:[#allocation2 + $0x20] sm:$0xe]  ;;  %v5895_v59 = vcombine.low %v2779_v4, %v9029_v9  ;;  %v3329_v44 = vshll.u32 %v9018_v30, 16  ;;  %v7480_v31 = vld [vmem:[%s9763_s4 + $0x70] sm:$0xff]  }
 0x1c8   :  { %3761 = vmatprep.mubr.bf16.mxu0 %v5998_v62  ;;  %v9038_v12 = vld [vmem:[#allocation2 + $0x80] sm:$0xf]  ;;  %v3318_v39 = vor.u32 %v3317_v15, %v3313_v38  ;;  %v3336_v21 = vshll.u32 %v9022_v50, 16  ;;  %v9047_v46 = vld [vmem:[#allocation2 + $0x78] sm:$0xf]  ;;  %v5997_v36 = vcombine.low %v8907_v26, %v8912_v55  ;;  %v5896_v41 = vcombine.low %v2780_v32, %v9033_v22  ;;  %v7482_v26 = vld [vmem:[%s9763_s4 + $0x30] sm:$0xff]  }
 0x1c9   :  { %6640 = vmatpush3.bf16.msra.mxu0 %v7452_v10  ;;  %v9057_v5 = vcombine.low %v9038_v12, %v8965_v43  ;;  %v3034_v14 = vrot.slane %v5894_v57, 1  ;;  %v9059_v6 = vld [vmem:[#allocation2 + $0x34] sm:$0x1]  ;;  %v2784_v11 = vld [vmem:[#allocation2 + $0x50] sm:$0xe]  ;;  %v3037_v55 = vrot.slane %v5897_v61, 1  ;;  %v9073_v49 = vcombine.low %v9047_v46, %v8959_v13 }
 0x1ca   :  { %6948 = vmatpush3.bf16.msra.mxu1 %v7431_v53  ;;  %6641 = vmatprep.subr.bf16.mxu0 %v7465_v17  ;;  %v6001_v45 = vcombine.low %v3318_v39, %v3325_v40  ;;  %v3338_v35 = vrot.slane %v3336_v21, 1  ;;  %v9061_v19 = vld [vmem:[#allocation2 + $0x54] sm:$0x1]  ;;  %v2782_v51 = vld [vmem:[#allocation2 + $0x30] sm:$0xe]  ;;  %v7493_v43 = vld [vmem:[%s9763_s4 + $0x78] sm:$0xff]   ;;  %v6000_v57 = vcombine.low %v8947_v28, %v8957_v29 }
 0x1cb   :  { %6949 = vmatprep.subr.bf16.mxu1 %v7439_v54  ;;  %v9066_v0 = vld [vmem:[#allocation2 + $0x5c] sm:$0x1]  ;;  %v3035_v53 = vrot.slane %v5895_v59, 1  ;;  %v7448_v3 = vld [vmem:[%s9763_s4 + $0x180] sm:$0xff]   ;;  %v3331_v58 = vrot.slane %v3329_v44, 1  ;;  %v3334_v62 = vshrl.u32 %v9022_v50, 16  ;;  %v5898_v17 = vcombine.low %v2782_v51, %v9059_v6 }
 0x1cc   :  { %6932 = vmatmul.mubr.bf16.gmra.mrb[60].mxu1 %v6011_v20  ;;  %v2785_v47 = vld [vmem:[#allocation2 + $0x58] sm:$0xe]  ;;  %v3327_v2 = vshrl.u32 %v9018_v30, 16  ;;  %v9080_v1 = vld [vmem:[#allocation2 + $0x3c] sm:$0x1]  ;;  %v7451_v24 = vld [vmem:[%s9763_s4 + $0x1c8] sm:$0xff]   ;;  %v5900_v42 = vcombine.low %v2784_v11, %v9061_v19 }
 0x1cd   :  { %6951 = vmatprep.mubr.bf16.mxu1 %v6038_v63  ;;  %6642 = vmatpush3.bf16.msra.mxu0 %v7467_v23  ;;  %v2783_v10 = vld [vmem:[#allocation2 + $0x38] sm:$0xe]  ;;  %v6041_v13 = vcombine.low %v3034_v14, %v3035_v53  ;;  %v3339_v7 = vor.u32 %v3338_v35, %v3334_v62  ;;  %v3350_v60 = vshll.u32 %v9057_v5, 16  ;;  %v9090_v30 = vld [vmem:[#allocation2 + $0x90] sm:$0xf]  ;;  %v5901_v8 = vcombine.low %v2785_v47, %v9066_v0  ;;  %v9097_v48 = vld [vmem:[%s9766_s7] sm:$0xff]  }
 0x1ce   :  { %6950 = vmatpush3.bf16.msra.mxu1 %v7439_v54  ;;  %v3036_v54 = vrot.slane %v5896_v41, 1  ;;  %6643 = vmatprep.subr.bf16.mxu0 %v7480_v31  ;;  %v7495_v50 = vld [vmem:[%s9763_s4 + $0x38] sm:$0xff]   ;;  %v3332_v4 = vor.u32 %v3331_v58, %v3327_v2  ;;  %v5899_v20 = vcombine.low %v2783_v10, %v9080_v1  ;;  %v3343_v38 = vshll.u32 %v9073_v49, 16  ;;  %v9101_v40 = vld [vmem:[#allocation2 + $0x88] sm:$0xf]  ;;  %v7458_v23 = vld [vmem:[%s9763_s4 + $0x1d0] sm:$0xff]  }
 0x1cf   :  { %3762 = vmatmul.mubr.bf16.gmra.mrb[76].mxu0 %v5997_v36  ;;  %6711 = vmatprep.subr.bf16.mxu1 %v7443_v25  ;;  %v7453_v32 = vld [vmem:[%s9763_s4 + $0x188] sm:$0xff]   ;;  %v9113_v63 = vcombine.low %v9090_v30, %v8968_v37  ;;  %v3038_v39 = vrot.slane %v5898_v17, 1  ;;  %v3352_v59 = vrot.slane %v3350_v60, 1  ;;  %v9115_v25 = vld [vmem:[#allocation2 + $0x64] sm:$0x1]  ;;  %v3040_v21 = vrot.slane %v5900_v42, 1 }
 0x1d0   :  { %3769 = vmatprep.mubr.bf16.mxu0 %v6001_v45  ;;  %v6044_v15 = vcombine.low %v3036_v54, %v3037_v55  ;;  %v6004_v61 = vcombine.low %v3332_v4, %v3339_v7  ;;  %v9117_v44 = vld [vmem:[#allocation2 + $0x10] sm:$0xf]  ;;  %v9119_v28 = vld [vmem:[#allocation2 + $0x14] sm:$0x1]  ;;  %v9121_v29 = vld [vmem:[#allocation2] sm:$0xf]  ;;  %v9128_v37 = vcombine.low %v9101_v40, %v8984_v56 }
 0x1d1   :  { %6644 = vmatpush3.bf16.msra.mxu0 %v7482_v26  ;;  %v3041_v36 = vrot.slane %v5901_v8, 1  ;;  %v2786_v41 = vld [vmem:[#allocation2 + $0x60] sm:$0xe]  ;;  %v9123_v31 = vld [vmem:[#allocation2 + $0x7c] sm:$0x1]  ;;  %v3039_v45 = vrot.slane %v5899_v20, 1  ;;  %v9157_v7 = vcombine.low %v9121_v29, %v8941_v27 }
 0x1d2   :  { %6645 = vmatprep.subr.bf16.mxu0 %v7493_v43  ;;  %v3345_v14 = vrot.slane %v3343_v38, 1  ;;  %v3348_v35 = vshrl.u32 %v9057_v5, 16  ;;  %v2789_v11 = vld [vmem:[#allocation2 + $0x78] sm:$0xe]  ;;  %v9133_v55 = vld [vmem:[#allocation2 + $0x1c] sm:$0x1]  ;;  %v5902_v62 = vcombine.low %v2786_v41, %v9115_v25 }
 0x1d3   :  { %v9131_v26 = vld [vmem:[#allocation2 + $0x18] sm:$0xf]  ;;  %v7463_v51 = vld [vmem:[%s9763_s4 + $0x190] sm:$0xff]   ;;  %v3341_v43 = vshrl.u32 %v9073_v49, 16  ;;  %v9139_v53 = vld [vmem:[#allocation2 + $0x6c] sm:$0x1]  ;;  %v6050_v49 = vcombine.low %v3040_v21, %v3041_v36 }
 0x1d4   :  { %6952 = vmatmul.mubr.bf16.vlgmr.msra.gmra.mrb[48].mxu1 %v6041_v13  ;;  %v2787_v56 = vld [vmem:[#allocation2 + $0x68] sm:$0xe]  ;;  %v7466_v5 = vld [vmem:[%s9763_s4 + $0x1d8] sm:$0xff]   ;;  %v3353_v58 = vor.u32 %v3352_v59, %v3348_v35  ;;  %v9145_v47 = vld [vmem:[#allocation2 + $0x74] sm:$0x1]  ;;  %v3364_v2 = vshll.u32 %v9113_v63, 16  ;;  %v5905_v13 = vcombine.low %v2789_v11, %v9123_v31  ;;  %v9169_v27 = vcombine.low %v9131_v26, %v9133_v55 }
 0x1d5   :  { %6955 = vmatprep.mubr.bf16.mxu1 %v6044_v15  ;;  %6712 = vmatpush3.bf16.msra.mxu1 %v7448_v3  ;;  %v6047_v3 = vcombine.low %v3038_v39, %v3039_v45  ;;  %v2788_v54 = vld [vmem:[#allocation2 + $0x70] sm:$0xe]  ;;  %v9148_v10 = vld [vmem:[#allocation2 + $0x8] sm:$0xf]  ;;  %v3346_v17 = vor.u32 %v3345_v14, %v3341_v43  ;;  %v5903_v60 = vcombine.low %v2787_v56, %v9139_v53  ;;  %v7468_v42 = vld [vmem:[%s9763_s4 + $0x198] sm:$0xff]   ;;  %v3042_v38 = vrot.slane %v5902_v62, 1 }
 0x1d6   :  { %6713 = vmatprep.subr.bf16.mxu1 %v7451_v24  ;;  %6646 = vmatpush3.bf16.msra.mxu0 %v7495_v50  ;;  %v9153_v24 = vcombine.low %v9117_v44, %v9119_v28  ;;  %v3357_v50 = vshll.u32 %v9128_v37, 16  ;;  %v6003_v15 = vcombine.low %v8994_v52, %v8996_v33  ;;  %v5904_v8 = vcombine.low %v2788_v54, %v9145_v47  ;;  %v7473_v52 = vld [vmem:[%s9763_s4 + $0x1e0] sm:$0xff]   ;;  %v9187_v45 = vld [vmem:[#allocation2 + $0x2c] sm:$0x1] }
 0x1d7   :  { %3770 = vmatmul.mubr.bf16.gmra.mrb[80].mxu0 %v6000_v57  ;;  %6999 = vmatprep.subr.bf16.mxu0 %v9097_v48  ;;  %v9173_v4 = vcombine.low %v9148_v10, %v8974_v18  ;;  %v6007_v20 = vcombine.low %v3346_v17, %v3353_v58  ;;  %v3366_v33 = vrot.slane %v3364_v2, 1  ;;  %v9178_v57 = vld [vmem:[#allocation2 + $0x28] sm:$0xf]  ;;  %v2790_v39 = vld [vmem:[#allocation2 + $0x80] sm:$0xe]  ;;  %v3043_v59 = vrot.slane %v5903_v60, 1 }
 0x1d8   :  { %3777 = vmatprep.mubr.bf16.mxu0 %v6004_v61  ;;  %v9182_v61 = vld [vmem:[#allocation2 + $0x8c] sm:$0x1]  ;;  %v4417_v18 = vshll.u32 %v9153_v24, 16  ;;  %v3359_v21 = vrot.slane %v3357_v50, 1  ;;  %v3362_v36 = vshrl.u32 %v9113_v63, 16  ;;  %v2875_v41 = vshll.u32 %v9157_v7, 16 }
 0x1d9   :  { %6714 = vmatpush3.bf16.msra.mxu1 %v7453_v32  ;;  %v3045_v32 = vrot.slane %v5905_v13, 1  ;;  %v3044_v14 = vrot.slane %v5904_v8, 1  ;;  %v7478_v35 = vld [vmem:[%s9763_s4 + $0x1a0] sm:$0xff]   ;;  %v3355_v11 = vshrl.u32 %v9128_v37, 16  ;;  %v4424_v43 = vshll.u32 %v9169_v27, 16  ;;  %v7481_v63 = vld [vmem:[%s9763_s4 + $0x1e8] sm:$0xff]  }
 0x1da   :  { %6715 = vmatprep.subr.bf16.mxu1 %v7458_v23  ;;  %v9180_v23 = vld [vmem:[#allocation2 + $0x84] sm:$0x1]  ;;  %v6053_v56 = vcombine.low %v3042_v38, %v3043_v59  ;;  %v2882_v58 = vshll.u32 %v9173_v4, 16  ;;  %v9199_v62 = vld [vmem:[#allocation2 + $0x20] sm:$0xf]  ;;  %v4419_v37 = vrot.slane %v4417_v18, 1 }
 0x1db   :  { %v9201_v54 = vld [vmem:[#allocation2 + $0x24] sm:$0x1]  ;;  %v6056_v2 = vcombine.low %v3044_v14, %v3045_v32  ;;  %v9207_v13 = vld [vmem:[#allocation2 + $0x10] sm:$0xf]  ;;  %v3360_v17 = vor.u32 %v3359_v21, %v3355_v11  ;;  %v2873_v50 = vshrl.u32 %v9157_v7, 16  ;;  %v7483_v8 = vld [vmem:[%s9763_s4 + $0x1a8] sm:$0xff]  }
 0x1dc   :  { %6956 = vmatmul.mubr.bf16.gmra.mrb[52].mxu1 %v6047_v3  ;;  %v3367_v3 = vor.u32 %v3366_v33, %v3362_v36  ;;  %v4426_v38 = vrot.slane %v4424_v43, 1  ;;  %v9221_v33 = vld [vmem:[#allocation2 + $0x18] sm:$0xf]  ;;  %v4422_v18 = vshrl.u32 %v9169_v27, 16  ;;  %v2880_v36 = vshrl.u32 %v9173_v4, 16 }
 0x1dd   :  { %6959 = vmatprep.mubr.bf16.mxu1 %v6050_v49  ;;  %6716 = vmatpush3.bf16.msra.mxu1 %v7463_v51  ;;  %v2791_v51 = vld [vmem:[#allocation2 + $0x88] sm:$0xe]  ;;  %v9205_v49 = vcombine.low %v9178_v57, %v9187_v45  ;;  %v9235_v14 = vld [vmem:[#allocation2 + $0x30] sm:$0xf]  ;;  %v7494_v4 = vld [vmem:[%s9763_s4 + $0x1f8] sm:$0xff]  }
 0x1de   :  { %6717 = vmatprep.subr.bf16.mxu1 %v7466_v5  ;;  %v5906_v5 = vcombine.low %v2790_v39, %v9180_v23  ;;  %v5907_v60 = vcombine.low %v2791_v51, %v9182_v61  ;;  %v6010_v7 = vcombine.low %v3360_v17, %v3367_v3  ;;  %v5878_v39 = vcombine.low %v9207_v13, %v9011_v34  ;;  %v7489_v34 = vld [vmem:[%s9763_s4 + $0x1b0] sm:$0xff]   ;;  %v9248_v3 = vld [vmem:[#allocation2 + $0x3c] sm:$0x1] }
 0x1df   :  { %3778 = vmatmul.mubr.bf16.gmra.mrb[84].mxu0 %v6003_v15  ;;  %v2877_v15 = vrot.slane %v2875_v41, 1  ;;  %v4438_v59 = vshll.u32 %v9205_v49, 16  ;;  %v9233_v41 = vcombine.low %v9221_v33, %v9029_v9  ;;  %v4427_v27 = vor.u32 %v4426_v38, %v4422_v18  ;;  %v9279_v18 = vld [vmem:[#allocation2 + $0x40] sm:$0xf] }
 0x1e0   :  { %3785 = vmatprep.mubr.bf16.mxu0 %v6007_v20  ;;  %v4415_v20 = vshrl.u32 %v9153_v24, 16  ;;  %v3046_v32 = vrot.slane %v5906_v5, 1  ;;  %v3047_v21 = vrot.slane %v5907_v60, 1  ;;  %v9250_v5 = vld [vmem:[#allocation2 + $0x28] sm:$0xf]  ;;  %v4436_v38 = vshrl.u32 %v9205_v49, 16 }
 0x1e1   :  { %6718 = vmatpush3.bf16.msra.mxu1 %v7468_v42  ;;  %v6006_v42 = vcombine.low %v9047_v46, %v9038_v12  ;;  %v7488_v12 = vld [vmem:[%s9763_s4 + $0x1f0] sm:$0xff]   ;;  %v2884_v46 = vrot.slane %v2882_v58, 1  ;;  %v2878_v9 = vor.u32 %v2877_v15, %v2873_v50  ;;  %v2896_v17 = vshll.u32 %v9233_v41, 16  ;;  %v9255_v60 = vld [vmem:[#allocation2 + $0x48] sm:$0xf] }
 0x1e2   :  { %6719 = vmatprep.subr.bf16.mxu1 %v7473_v52  ;;  %v9219_v52 = vcombine.low %v9199_v62, %v9201_v54  ;;  %v4420_v24 = vor.u32 %v4419_v37, %v4415_v20  ;;  %v6059_v51 = vcombine.low %v3046_v32, %v3047_v21  ;;  %v9259_v50 = vld [vmem:[#allocation2 + $0x20] sm:$0xf]  ;;  %v6009_v15 = vcombine.low %v9101_v40, %v9090_v30 }
 0x1e3   :  { %v2885_v43 = vor.u32 %v2884_v46, %v2880_v36  ;;  %v9273_v32 = vcombine.low %v9250_v5, %v9024_v16  ;;  %v7502_v30 = vld [vmem:[%s9763_s4 + $0x200] sm:$0xff]   ;;  %v9289_v21 = vcombine.low %v9259_v50, %v9033_v22  ;;  %v2887_v36 = vshrl.u32 %v5878_v39, 16 }
 0x1e4   :  { %6960 = vmatmul.mubr.bf16.gmra.mrb[56].mxu1 %v6053_v56  ;;  %v4431_v11 = vshll.u32 %v9219_v52, 16  ;;  %v2889_v56 = vshll.u32 %v5878_v39, 16  ;;  %v6165_v58 = vcombine.low %v4420_v24, %v4427_v27  ;;  %v4429_v46 = vshrl.u32 %v9219_v52, 16 }
 0x1e5   :  { %6963 = vmatprep.mubr.bf16.mxu1 %v6056_v2  ;;  %6720 = vmatpush3.bf16.msra.mxu1 %v7478_v35  ;;  %v9237_v35 = vld [vmem:[#allocation2 + $0x34] sm:$0x1]  ;;  %v4440_v2 = vrot.slane %v4438_v59, 1  ;;  %v9281_v59 = vld [vmem:[#allocation2 + $0x44] sm:$0x1]  ;;  %v6164_v52 = vcombine.low %v9117_v44, %v9131_v26  ;;  %v2910_v22 = vshll.u32 %v9273_v32, 16 }
 0x1e6   :  { %6721 = vmatprep.subr.bf16.mxu1 %v7481_v63  ;;  %v9246_v63 = vld [vmem:[#allocation2 + $0x38] sm:$0xf]  ;;  %v6088_v37 = vcombine.low %v9235_v14, %v9237_v35  ;;  %v4433_v20 = vrot.slane %v4431_v11, 1  ;;  %v2891_v40 = vrot.slane %v2889_v56, 1  ;;  %v9301_v39 = vcombine.low %v9279_v18, %v9281_v59 }
 0x1e7   :  { %3786 = vmatmul.mubr.bf16.gmra.mrb[88].mxu0 %v6006_v42  ;;  %v9257_v42 = vld [vmem:[#allocation2 + $0x4c] sm:$0x1]  ;;  %v4441_v24 = vor.u32 %v4440_v2, %v4436_v38  ;;  %v6036_v2 = vcombine.low %v9121_v29, %v9148_v10  ;;  %v7515_v29 = vld [vmem:[%s9763_s4 + $0x210] sm:$0xff]  }
 0x1e8   :  { %3793 = vmatprep.mubr.bf16.mxu0 %v6010_v7  ;;  %v9269_v7 = vcombine.low %v9246_v63, %v9248_v3  ;;  %v4445_v49 = vshll.u32 %v6088_v37, 16  ;;  %v9285_v16 = vcombine.low %v9255_v60, %v9257_v42  ;;  %v4434_v27 = vor.u32 %v4433_v20, %v4429_v46  ;;  %v7511_v20 = vld [vmem:[%s9766_s7 + $0x8] sm:$0xff]   ;;  %v9322_v10 = vld [vmem:[#allocation2 + $0x50] sm:$0xf] }
 0x1e9   :  { %6722 = vmatpush3.bf16.msra.mxu1 %v7483_v8  ;;  %v7496_v8 = vld [vmem:[%s9763_s4 + $0x1b8] sm:$0xff]   ;;  %v4459_v46 = vshll.u32 %v9301_v39, 16 }
 0x1ea   :  { %6723 = vmatprep.subr.bf16.mxu1 %v7488_v12  ;;  %v6037_v12 = vcombine.low %v2878_v9, %v2885_v43  ;;  %v4452_v11 = vshll.u32 %v9269_v7, 16  ;;  %v7509_v9 = vld [vmem:[%s9763_s4 + $0x208] sm:$0xff]   ;;  %v9303_v43 = vld [vmem:[#allocation2 + $0x30] sm:$0xf]  ;;  %v6168_v44 = vcombine.low %v4434_v27, %v4441_v24  ;;  %v4447_v26 = vrot.slane %v4445_v49, 1 }
 0x1eb   :  { %v4466_v56 = vshll.u32 %v9285_v16, 16  ;;  %v9316_v38 = vcombine.low %v9303_v43, %v9059_v6  ;;  %v4464_v24 = vshrl.u32 %v9285_v16, 16  ;;  %v9335_v27 = vld [vmem:[#allocation2 + $0x60] sm:$0xf] }
 0x1ec   :  { %6964 = vmatmul.mubr.bf16.gmra.mrb[60].mxu1 %v6059_v51  ;;  %v2892_v51 = vor.u32 %v2891_v40, %v2887_v36  ;;  %v2912_v40 = vrot.slane %v2910_v22, 1  ;;  %v4320_v16 = vld [vmem:[#allocation2 + $0x20] sm:$0xe]  ;;  %v4461_v22 = vrot.slane %v4459_v46, 1 }
 0x1ed   :  { %6724 = vmatpush3.bf16.msra.mxu1 %v7489_v34  ;;  %4895 = vmatprep.mubr.bf16.mxu1 %v6165_v58  ;;  %v2898_v34 = vrot.slane %v2896_v17, 1  ;;  %v9309_v17 = vld [vmem:[#allocation2 + $0x38] sm:$0xf]  ;;  %v4468_v49 = vrot.slane %v4466_v56, 1 }
 0x1ee   :  { %6725 = vmatprep.subr.bf16.mxu1 %v7494_v4  ;;  %v2894_v4 = vshrl.u32 %v9233_v41, 16  ;;  %v2903_v41 = vshll.u32 %v9289_v21, 16  ;;  %v9328_v6 = vcombine.low %v9309_v17, %v9080_v1  ;;  %v6167_v1 = vcombine.low %v9199_v62, %v9178_v57  ;;  %v7521_v56 = vld [vmem:[%s9763_s4 + $0x218] sm:$0xff]  }
 0x1ef   :  { %3794 = vmatmul.mubr.bf16.gmra.mrb[92].mxu0 %v6009_v15  ;;  %v4443_v15 = vshrl.u32 %v6088_v37, 16  ;;  %v9354_v57 = vcombine.low %v9322_v10, %v9061_v19  ;;  %v6039_v19 = vcombine.low %v9207_v13, %v9221_v33  ;;  %v7527_v13 = vld [vmem:[%s9763_s4 + $0x220] sm:$0xff]  }
 0x1f0   :  { %4123 = vmatprep.mubr.bf16.mxu0 %v6037_v12  ;;  %v2899_v58 = vor.u32 %v2898_v34, %v2894_v4  ;;  %v2905_v36 = vrot.slane %v2903_v41, 1  ;;  %v2908_v34 = vshrl.u32 %v9273_v32, 16  ;;  %v2901_v32 = vshrl.u32 %v9289_v21, 16 }
 0x1f1   :  { %6726 = vmatpush3.bf16.msra.mxu1 %v7496_v8  ;;  %v4454_v8 = vrot.slane %v4452_v11, 1  ;;  %v4448_v37 = vor.u32 %v4447_v26, %v4443_v15  ;;  %v4321_v11 = vld [vmem:[#allocation2 + $0x28] sm:$0xe]  ;;  %v9345_v26 = vld [vmem:[#allocation2 + $0x6c] sm:$0x1]  ;;  %v4457_v15 = vshrl.u32 %v9301_v39, 16 }
 0x1f2   :  { %6967 = vmatprep.subr.bf16.mxu1 %v7502_v30  ;;  %v6040_v12 = vcombine.low %v2892_v51, %v2899_v58  ;;  %v2913_v4 = vor.u32 %v2912_v40, %v2908_v34  ;;  %v9350_v58 = vld [vmem:[#allocation2 + $0x58] sm:$0xf]  ;;  %v6103_v41 = vcombine.low %v4321_v11, %v9187_v45  ;;  %v6170_v11 = vcombine.low %v9235_v14, %v9246_v63  ;;  %v9403_v63 = vld [vmem:[#allocation2 + $0x70] sm:$0xf] }
 0x1f3   :  { %v7523_v45 = vld [vmem:[%s9766_s7 + $0x18] sm:$0xff]   ;;  %v9375_v39 = vcombine.low %v9350_v58, %v9066_v0  ;;  %v4462_v46 = vor.u32 %v4461_v22, %v4457_v15  ;;  %v2915_v0 = vshrl.u32 %v9316_v38, 16  ;;  %v2922_v22 = vshrl.u32 %v9328_v6, 16 }
 0x1f4   :  { %4896 = vmatmul.mubr.bf16.vlgmr.msra.gmra.mrb[64].mxu1 %v6164_v52  ;;  %v7517_v52 = vld [vmem:[%s9766_s7 + $0x10] sm:$0xff]   ;;  %v4319_v34 = vld [vmem:[#allocation2 + $0x18] sm:$0xe] }
 0x1f5   :  { %4903 = vmatprep.mubr.bf16.mxu1 %v6168_v44  ;;  %6968 = vmatpush3.bf16.msra.mxu1 %v7502_v30  ;;  %v4450_v30 = vshrl.u32 %v9269_v7, 16  ;;  %v9337_v7 = vld [vmem:[#allocation2 + $0x64] sm:$0x1]  ;;  %v2917_v44 = vshll.u32 %v9316_v38, 16  ;;  %v2938_v14 = vshll.u32 %v9375_v39, 16 }
 0x1f6   :  { %6969 = vmatprep.subr.bf16.mxu1 %v7509_v9  ;;  %v9358_v21 = vcombine.low %v9335_v27, %v9337_v7  ;;  %v7529_v38 = vld [vmem:[%s9766_s7 + $0x20] sm:$0xff]  }
 0x1f7   :  { %4124 = vmatmul.mubr.bf16.vlgmr.msra.gmra.mrb[96].mxu0 %v6036_v2  ;;  %v4455_v51 = vor.u32 %v4454_v8, %v4450_v30  ;;  %v2906_v2 = vor.u32 %v2905_v36, %v2901_v32  ;;  %v2924_v8 = vshll.u32 %v9328_v6, 16  ;;  %v4318_v30 = vld [vmem:[#allocation2 + $0x10] sm:$0xe]  ;;  %v2931_v36 = vshll.u32 %v9354_v57, 16 }
 0x1f8   :  { %4131 = vmatprep.mubr.bf16.mxu0 %v6040_v12  ;;  %7000 = vmatpush3.bf16.msra.mxu0 %v9097_v48  ;;  %v9341_v48 = vld [vmem:[#allocation2 + $0x68] sm:$0xf]  ;;  %v6102_v12 = vcombine.low %v4320_v16, %v9201_v54  ;;  %v2919_v54 = vrot.slane %v2917_v44, 1  ;;  %v4473_v33 = vshll.u32 %v9358_v21, 16  ;;  %v9405_v44 = vld [vmem:[#allocation2 + $0x74] sm:$0x1]  ;;  %v6042_v6 = vcombine.low %v9259_v50, %v9250_v5 }
 0x1f9   :  { %6970 = vmatpush3.bf16.msra.mxu1 %v7509_v9  ;;  %7001 = vmatprep.subr.bf16.mxu0 %v7511_v20  ;;  %v6171_v62 = vcombine.low %v4448_v37, %v4455_v51  ;;  %v4469_v9 = vor.u32 %v4468_v49, %v4464_v24  ;;  %v9368_v40 = vcombine.low %v9341_v48, %v9345_v26  ;;  %v9377_v37 = vld [vmem:[#allocation2 + $0x78] sm:$0xf]  ;;  %v9385_v24 = vrot.slane %v6103_v41, 1 }
 0x1fa   :  { %6971 = vmatprep.subr.bf16.mxu1 %v7515_v29  ;;  %v2926_v49 = vrot.slane %v2924_v8, 1  ;;  %v9389_v16 = vrot.slane %v6102_v12, 1  ;;  %v2929_v51 = vshrl.u32 %v9354_v57, 16  ;;  %v4475_v57 = vrot.slane %v4473_v33, 1  ;;  %v9420_v12 = vld [vmem:[#allocation2 + $0x68] sm:$0xf] }
 0x1fb   :  { %v6174_v32 = vcombine.low %v4462_v46, %v4469_v9  ;;  %v6100_v41 = vcombine.low %v4318_v30, %v9119_v28  ;;  %v6101_v9 = vcombine.low %v4319_v34, %v9133_v55  ;;  %v4471_v15 = vshrl.u32 %v9358_v21, 16  ;;  %v7535_v55 = vld [vmem:[%s9766_s7 + $0x28] sm:$0xff]   ;;  %v9451_v34 = vld [vmem:[#allocation2 + $0x84] sm:$0x1] }
 0x1fc   :  { %4904 = vmatmul.mubr.bf16.gmra.mrb[68].mxu1 %v6167_v1  ;;  %7002 = vmatpush3.bf16.msra.mxu0 %v7511_v20  ;;  %v6043_v20 = vcombine.low %v2906_v2, %v2913_v4  ;;  %v4480_v1 = vshll.u32 %v9368_v40, 16  ;;  %v2920_v4 = vor.u32 %v2919_v54, %v2915_v0  ;;  %v2927_v2 = vor.u32 %v2926_v49, %v2922_v22  ;;  %v7539_v54 = vld [vmem:[%s9763_s4 + $0x230] sm:$0xff]   ;;  %v9462_v22 = vld [vmem:[#allocation2 + $0x8c] sm:$0x1] }
 0x1fd   :  { %4911 = vmatprep.mubr.bf16.mxu1 %v6171_v62  ;;  %6972 = vmatpush3.bf16.msra.mxu1 %v7515_v29  ;;  %v9383_v29 = vld [vmem:[#allocation2 + $0x7c] sm:$0x1]  ;;  %v6169_v8 = vcombine.low %v9389_v16, %v9385_v24  ;;  %v9424_v28 = vcombine.low %v9403_v63, %v9405_v44  ;;  %v9429_v5 = vrot.slane %v6100_v41, 1  ;;  %v9431_v50 = vrot.slane %v6101_v9, 1  ;;  %v4331_v16 = vld [vmem:[#allocation2 + $0x88] sm:$0xe] }
 0x1fe   :  { %7003 = vmatprep.subr.bf16.mxu0 %v7517_v52  ;;  %6973 = vmatprep.subr.bf16.mxu1 %v7521_v56  ;;  %v9411_v62 = vcombine.low %v9377_v37, %v9383_v29  ;;  %v2940_v46 = vrot.slane %v2938_v14, 1  ;;  %v4478_v33 = vshrl.u32 %v9368_v40, 16  ;;  %v2936_v49 = vshrl.u32 %v9375_v39, 16  ;;  %v9467_v14 = vld [vmem:[#allocation2 + $0x78] sm:$0xf] }
 0x1ff   :  { %4132 = vmatmul.mubr.bf16.gmra.mrb[100].mxu0 %v6039_v19  ;;  %v4482_v19 = vrot.slane %v4480_v1, 1  ;;  %v6166_v0 = vcombine.low %v9429_v5, %v9431_v50  ;;  %v4487_v40 = vshll.u32 %v9424_v28, 16  ;;  %v7541_v1 = vld [vmem:[%s9766_s7 + $0x30] sm:$0xff]   ;;  %v6045_v9 = vcombine.low %v9303_v43, %v9309_v17 }
 0x200   :  { %4139 = vmatprep.mubr.bf16.mxu0 %v6043_v20  ;;  %7004 = vmatpush3.bf16.msra.mxu0 %v7517_v52  ;;  %v7533_v52 = vld [vmem:[%s9763_s4 + $0x228] sm:$0xff]   ;;  %v2933_v20 = vrot.slane %v2931_v36, 1  ;;  %v4494_v30 = vshll.u32 %v9411_v62, 16  ;;  %v9449_v36 = vld [vmem:[#allocation2 + $0x80] sm:$0xf]  ;;  %v4485_v43 = vshrl.u32 %v9424_v28, 16 }
 0x201   :  { %6974 = vmatpush3.bf16.msra.mxu1 %v7521_v56  ;;  %7005 = vmatprep.subr.bf16.mxu0 %v7523_v45  ;;  %v9407_v56 = vld [vmem:[#allocation2 + $0x60] sm:$0xf]  ;;  %v7551_v5 = vld [vmem:[%s9762_s0 + $0xe8] ss:$8 sps:$4 sm:$0xff]  }
 0x202   :  { %6975 = vmatprep.subr.bf16.mxu1 %v7527_v13  ;;  %v9435_v21 = vcombine.low %v9407_v56, %v9115_v25  ;;  %v9446_v25 = vcombine.low %v9420_v12, %v9139_v53  ;;  %v6173_v53 = vcombine.low %v9279_v18, %v9255_v60  ;;  %v4496_v41 = vrot.slane %v4494_v30, 1  ;;  %v9492_v30 = vld [vmem:[#allocation2 + $0x90] sm:$0xf] }
 0x203   :  { %v6096_v60 = vcombine.low %v9449_v36, %v9451_v34 }
 0x204   :  { %4912 = vmatmul.mubr.bf16.gmra.mrb[72].mxu1 %v6170_v11  ;;  %7006 = vmatpush3.bf16.msra.mxu0 %v7523_v45  ;;  %v6046_v45 = vcombine.low %v2920_v4, %v2927_v2  ;;  %v4483_v11 = vor.u32 %v4482_v19, %v4478_v33  ;;  %v2941_v4 = vor.u32 %v2940_v46, %v2936_v49  ;;  %v2945_v39 = vshll.u32 %v9435_v21, 16  ;;  %v7547_v19 = vld [vmem:[%s9766_s7 + $0x38] sm:$0xff]   ;;  %v9494_v49 = vld [vmem:[#allocation2 + $0x94] sm:$0x1] }
 0x205   :  { %4919 = vmatprep.mubr.bf16.mxu1 %v6174_v32  ;;  %6976 = vmatpush3.bf16.msra.mxu1 %v7527_v13  ;;  %v4476_v13 = vor.u32 %v4475_v57, %v4471_v15  ;;  %v2934_v32 = vor.u32 %v2933_v20, %v2929_v51  ;;  %v2952_v18 = vshll.u32 %v9446_v25, 16  ;;  %v9472_v51 = vld [vmem:[#allocation2 + $0x70] sm:$0xf]  ;;  %v4492_v2 = vshrl.u32 %v9411_v62, 16  ;;  %v9485_v46 = vld [vmem:[#allocation2 + $0x98] sm:$0xf] }
 0x206   :  { %7007 = vmatprep.subr.bf16.mxu0 %v7529_v38  ;;  %6977 = vmatprep.subr.bf16.mxu1 %v7533_v52  ;;  %v2947_v20 = vrot.slane %v2945_v39, 1  ;;  %v4501_v62 = vshll.u32 %v6096_v60, 16  ;;  %v2943_v33 = vshrl.u32 %v9435_v21, 16 }
 0x207   :  { %4140 = vmatmul.mubr.bf16.gmra.mrb[104].mxu0 %v6042_v6  ;;  %v6177_v57 = vcombine.low %v4476_v13, %v4483_v11  ;;  %v4489_v6 = vrot.slane %v4487_v40, 1  ;;  %v4497_v17 = vor.u32 %v4496_v41, %v4492_v2  ;;  %v9487_v13 = vld [vmem:[#allocation2 + $0x9c] sm:$0x1]  ;;  %v6176_v40 = vcombine.low %v9335_v27, %v9341_v48 }
 0x208   :  { %4147 = vmatprep.mubr.bf16.mxu0 %v6046_v45  ;;  %7008 = vmatpush3.bf16.msra.mxu0 %v7529_v38  ;;  %v9460_v38 = vld [vmem:[#allocation2 + $0x88] sm:$0xf]  ;;  %v6049_v45 = vcombine.low %v2934_v32, %v2941_v4  ;;  %v2950_v32 = vshrl.u32 %v9446_v25, 16  ;;  %v9499_v4 = vld [vmem:[#allocation2 + $0x80] sm:$0xf]  ;;  %v4503_v39 = vrot.slane %v4501_v62, 1  ;;  %v6048_v27 = vcombine.low %v9322_v10, %v9350_v58 }
 0x209   :  { %6978 = vmatpush3.bf16.msra.mxu1 %v7533_v52  ;;  %7009 = vmatprep.subr.bf16.mxu0 %v7535_v55  ;;  %v7545_v52 = vld [vmem:[%s9763_s4 + $0x238] sm:$0xff]   ;;  %v6097_v15 = vcombine.low %v9460_v38, %v9462_v22  ;;  %v4490_v11 = vor.u32 %v4489_v6, %v4485_v43  ;;  %v4499_v48 = vshrl.u32 %v6096_v60, 16  ;;  %v6179_v10 = vcombine.low %v9403_v63, %v9377_v37 }
 0x20a   :  { %6979 = vmatprep.subr.bf16.mxu1 %v7539_v54 }
 0x20b   :  { %v4508_v28 = vshll.u32 %v6097_v15, 16  ;;  %v6180_v21 = vcombine.low %v4490_v11, %v4497_v17 }
 0x20c   :  { %4920 = vmatmul.mubr.bf16.gmra.mrb[76].mxu1 %v6173_v53  ;;  %7010 = vmatpush3.bf16.msra.mxu0 %v7535_v55  ;;  %v5889_v55 = vcombine.low %v9467_v14, %v9123_v31  ;;  %v2954_v31 = vrot.slane %v2952_v18, 1  ;;  %v2948_v53 = vor.u32 %v2947_v20, %v2943_v33  ;;  %v2759_v18 = vld [vmem:[#allocation2 + $0x88] sm:$0xf]  ;;  %v4506_v20 = vshrl.u32 %v6097_v15, 16 }
 0x20d   :  { %4927 = vmatprep.mubr.bf16.mxu1 %v6177_v57  ;;  %6980 = vmatpush3.bf16.msra.mxu1 %v7539_v54  ;;  %v5888_v54 = vcombine.low %v9472_v51, %v9145_v47  ;;  %v6098_v57 = vcombine.low %v9492_v30, %v9494_v49  ;;  %v4510_v25 = vrot.slane %v4508_v28, 1  ;;  %v5891_v62 = vcombine.low %v2759_v18, %v9182_v61 }
 0x20e   :  { %7011 = vmatprep.subr.bf16.mxu0 %v7541_v1  ;;  %6981 = vmatprep.subr.bf16.mxu1 %v7545_v52  ;;  %v2966_v47 = vshll.u32 %v5889_v55, 16  ;;  %v2964_v33 = vshrl.u32 %v5889_v55, 16  ;;  %v6051_v61 = vcombine.low %v9407_v56, %v9420_v12  ;;  %v6054_v56 = vcombine.low %v9472_v51, %v9467_v14 }
 0x20f   :  { %4148 = vmatmul.mubr.bf16.gmra.mrb[108].mxu0 %v6045_v9  ;;  %v2959_v41 = vshll.u32 %v5888_v54, 16  ;;  %v5890_v9 = vcombine.low %v9499_v4, %v9180_v23  ;;  %v4515_v43 = vshll.u32 %v6098_v57, 16  ;;  %v2957_v58 = vshrl.u32 %v5888_v54, 16 }
 0x210   :  { %4155 = vmatprep.mubr.bf16.mxu0 %v6049_v45  ;;  %7012 = vmatpush3.bf16.msra.mxu0 %v7541_v1  ;;  %v6099_v1 = vcombine.low %v9485_v46, %v9487_v13  ;;  %v2968_v2 = vrot.slane %v2966_v47, 1  ;;  %v4504_v45 = vor.u32 %v4503_v39, %v4499_v48  ;;  %v4513_v47 = vshrl.u32 %v6098_v57, 16  ;;  %v4322_v57 = vld [vmem:[#allocation2 + $0x30] sm:$0xe] }
 0x211   :  { %6982 = vmatpush3.bf16.msra.mxu1 %v7545_v52  ;;  %7013 = vmatprep.subr.bf16.mxu0 %v7547_v19  ;;  %v2955_v52 = vor.u32 %v2954_v31, %v2950_v32  ;;  %v4511_v31 = vor.u32 %v4510_v25, %v4506_v20  ;;  %v2973_v11 = vshll.u32 %v5890_v9, 16  ;;  %v4517_v28 = vrot.slane %v4515_v43, 1  ;;  %v4327_v43 = vld [vmem:[#allocation2 + $0x68] sm:$0xe] }
 0x212   :  { %v4522_v17 = vshll.u32 %v6099_v1, 16  ;;  %v2969_v60 = vor.u32 %v2968_v2, %v2964_v33  ;;  %v2980_v32 = vshll.u32 %v5891_v62, 16  ;;  %v2971_v63 = vshrl.u32 %v5890_v9, 16  ;;  %v4323_v9 = vld [vmem:[#allocation2 + $0x38] sm:$0xe] }
 0x213   :  { %v6052_v6 = vcombine.low %v2948_v53, %v2955_v52  ;;  %v6183_v23 = vcombine.low %v4504_v45, %v4511_v31  ;;  %v4518_v39 = vor.u32 %v4517_v28, %v4513_v47  ;;  %v6185_v25 = vcombine.low %v9492_v30, %v9485_v46  ;;  %v4324_v2 = vld [vmem:[#allocation2 + $0x40] sm:$0xe]  ;;  %v4325_v46 = vld [vmem:[#allocation2 + $0x48] sm:$0xe]  ;;  %v4333_v28 = vld [vmem:[#allocation2 + $0x98] sm:$0xe] }
 0x214   :  { %4928 = vmatmul.mubr.bf16.gmra.mrb[80].mxu1 %v6176_v40  ;;  %7014 = vmatpush3.bf16.msra.mxu0 %v7547_v19  ;;  %v2961_v19 = vrot.slane %v2959_v41, 1  ;;  %v4520_v40 = vshrl.u32 %v6099_v1, 16  ;;  %v4524_v53 = vrot.slane %v4522_v17, 1  ;;  %v2982_v54 = vrot.slane %v2980_v32, 1  ;;  %v4326_v30 = vld [vmem:[#allocation2 + $0x60] sm:$0xe] }
 0x215   :  { %4935 = vmatprep.mubr.bf16.mxu1 %v6180_v21  ;;  %v2975_v21 = vrot.slane %v2973_v11, 1  ;;  %v6182_v1 = vcombine.low %v9449_v36, %v9460_v38  ;;  %v2978_v41 = vshrl.u32 %v5891_v62, 16  ;;  %v7550_v36 = vld [vmem:[%s9762_s0 + $0xd8] ss:$8 sps:$4 sm:$0xff]   ;;  %v6057_v38 = vcombine.low %v9499_v4, %v2759_v18  ;;  %v7557_v31 = vld [vmem:[%s9762_s0 + $0x108] ss:$8 sps:$4 sm:$0xff]  }
 0x216   :  { %v2962_v15 = vor.u32 %v2961_v19, %v2957_v58  ;;  %v4525_v37 = vor.u32 %v4524_v53, %v4520_v40  ;;  %v6105_v14 = vcombine.low %v4323_v9, %v9248_v3  ;;  %v6106_v45 = vcombine.low %v4324_v2, %v9281_v59  ;;  %v7556_v3 = vld [vmem:[%s9762_s0 + $0xf8] ss:$8 sps:$4 sm:$0xff]  }
 0x217   :  { %4156 = vmatmul.mubr.bf16.gmra.mrb[112].mxu0 %v6048_v27  ;;  %v2976_v52 = vor.u32 %v2975_v21, %v2971_v63  ;;  %v2983_v48 = vor.u32 %v2982_v54, %v2978_v41  ;;  %v6107_v20 = vcombine.low %v4325_v46, %v9257_v42  ;;  %v6108_v50 = vcombine.low %v4326_v30, %v9337_v7  ;;  %v4329_v18 = vld [vmem:[#allocation2 + $0x78] sm:$0xe]  ;;  %v4330_v62 = vld [vmem:[#allocation2 + $0x80] sm:$0xe]  ;;  %v4328_v7 = vld [vmem:[#allocation2 + $0x70] sm:$0xe] }
 0x218   :  { %4163 = vmatprep.mubr.bf16.mxu0 %v6052_v6  ;;  %v6055_v55 = vcombine.low %v2962_v15, %v2969_v60  ;;  %v6186_v27 = vcombine.low %v4518_v39, %v4525_v37  ;;  %v6104_v6 = vcombine.low %v4322_v57, %v9237_v35  ;;  %v4579_v35 = vrot.slane %v6105_v14, 1  ;;  %v7562_v58 = vld [vmem:[%s9762_s0 + $0x1f8] ss:$8 sps:$4 sm:$0xff]  }
 0x219   :  { %v6058_v12 = vcombine.low %v2976_v52, %v2983_v48  ;;  %v6109_v59 = vcombine.low %v4327_v43, %v9345_v26  ;;  %v4580_v42 = vrot.slane %v6106_v45, 1  ;;  %v4582_v4 = vrot.slane %v6108_v50, 1 }
 0x21a   :  { %v4578_v51 = vrot.slane %v6104_v6, 1  ;;  %v6111_v24 = vcombine.low %v4329_v18, %v9383_v29  ;;  %v6112_v26 = vcombine.low %v4330_v62, %v9451_v34  ;;  %v6113_v60 = vcombine.low %v4331_v16, %v9462_v22  ;;  %v7566_v22 = vld [vmem:[%s9762_s0 + $0x218] ss:$8 sps:$4 sm:$0xff]  }
 0x21b   :  { %v4583_v19 = vrot.slane %v6109_v59, 1 }
 0x21c   :  { %4936 = vmatmul.mubr.bf16.gmra.mrb[84].mxu1 %v6179_v10  ;;  %v6172_v17 = vcombine.low %v4578_v51, %v4579_v35  ;;  %v6110_v10 = vcombine.low %v4328_v7, %v9405_v44  ;;  %v4585_v11 = vrot.slane %v6111_v24, 1  ;;  %v4586_v29 = vrot.slane %v6112_v26, 1 }
 0x21d   :  { %4943 = vmatprep.mubr.bf16.mxu1 %v6183_v23  ;;  %v4332_v23 = vld [vmem:[#allocation2 + $0x90] sm:$0xe]  ;;  %v4587_v53 = vrot.slane %v6113_v60, 1  ;;  %v6115_v44 = vcombine.low %v4333_v28, %v9487_v13 }
 0x21e   :  { %v4584_v40 = vrot.slane %v6110_v10, 1  ;;  %v6114_v34 = vcombine.low %v4332_v23, %v9494_v49  ;;  %v7567_v13 = vld [vmem:[%s9762_s0 + $0x228] ss:$8 sps:$4 sm:$0xff]  }
 0x21f   :  { %4164 = vmatmul.mubr.bf16.gmra.mrb[116].mxu0 %v6051_v61  ;;  %v6184_v32 = vcombine.low %v4586_v29, %v4587_v53  ;;  %v7563_v61 = vld [vmem:[%s9762_s0 + $0x208] ss:$8 sps:$4 sm:$0xff]  }
 0x220   :  { %4171 = vmatprep.mubr.bf16.mxu0 %v6055_v55  ;;  %v6181_v15 = vcombine.low %v4584_v40, %v4585_v11  ;;  %v4588_v47 = vrot.slane %v6114_v34, 1  ;;  %v4589_v55 = vrot.slane %v6115_v44, 1 }
 0x222   :  { %v6187_v21 = vcombine.low %v4588_v47, %v4589_v55 }
 0x224   :  { %4944 = vmatmul.mubr.bf16.gmra.mrb[88].mxu1 %v6182_v1 }
 0x225   :  { %4951 = vmatprep.mubr.bf16.mxu1 %v6186_v27 }
 0x227   :  { %4172 = vmatmul.mubr.bf16.gmra.mrb[120].mxu0 %v6054_v56 }
 0x228   :  { %4179 = vmatprep.mubr.bf16.mxu0 %v6058_v12 }
 0x22c   :  { %4952 = vmatmul.mubr.bf16.gmra.mrb[92].mxu1 %v6185_v25 }
 0x22d   :  { %6983 = vmatprep.mubr.bf16.mxu1 %v6166_v0  ;;  %v4581_v0 = vrot.slane %v6107_v20, 1 }
 0x22f   :  { %4180 = vmatmul.mubr.bf16.gmra.mrb[124].mxu0 %v6057_v38  ;;  %v6175_v33 = vcombine.low %v4580_v42, %v4581_v0 }
 0x230   :  { %7015 = vmatprep.mubr.bf16.mxu0 %v7550_v36 }
 0x234   :  { %6984 = vmatmul.mubr.bf16.vlgmr.msra.gmra.mrb[48].mxu1 %v6169_v8  ;;  %v6178_v8 = vcombine.low %v4582_v4, %v4583_v19 }
 0x235   :  { %6987 = vmatprep.mubr.bf16.mxu1 %v6172_v17 }
 0x237   :  { %7016 = vmatmul.mubr.bf16.vlgmr.msra.gmra.mrb[128].mxu0 %v7551_v5 }
 0x238   :  { %7019 = vmatprep.mubr.bf16.mxu0 %v7556_v3 }
 0x23c   :  { %6988 = vmatmul.mubr.bf16.gmra.mrb[52].mxu1 %v6175_v33 }
 0x23d   :  { %6991 = vmatprep.mubr.bf16.mxu1 %v6178_v8 }
 0x23f   :  { %7020 = vmatmul.mubr.bf16.gmra.mrb[132].mxu0 %v7557_v31 }
 0x240   :  { %7023 = vmatprep.mubr.bf16.mxu0 %v7562_v58 }
 0x244   :  { %6992 = vmatmul.mubr.bf16.gmra.mrb[56].mxu1 %v6181_v15 }
 0x245   :  { %6995 = vmatprep.mubr.bf16.mxu1 %v6184_v32 }
 0x247   :  { %7024 = vmatmul.mubr.bf16.gmra.mrb[136].mxu0 %v7563_v61 }
 0x248   :  { %7027 = vmatprep.mubr.bf16.mxu0 %v7566_v22 }
 0x24c   :  { %6996 = vmatmul.mubr.bf16.gmra.mrb[60].mxu1 %v6187_v21 }
 0x24f   :  { %7028 = vmatmul.mubr.bf16.gmra.mrb[140].mxu0 %v7567_v13 }
 0x28a   :  { %v6567_v49 = vpop.f32.mrb[64].mxu0 }
 0x28b   :  { %v6568_v39 = vpop.f32.mrb[65].mxu0 }
 0x28c   :  { %v6569_v37 = vadd.f32 %v6568_v39, %v6567_v49  ;;  %v6570_v63 = vpop.f32.mrb[66].mxu0 }
 0x28d   :  { %v6571_v54 = vpop.f32.mrb[67].mxu0 }
 0x28e   :  { %v6572_v1 = vadd.f32 %v6571_v54, %v6570_v63 }
 0x292   :  { %v6573_v52 = vpop.f32.mrb[68].mxu0 }
 0x293   :  { %v6574_v41 = vpop.f32.mrb[69].mxu0 }
 0x294   :  { %v9563_v27 = vadd.f32 %v6574_v41, %v6573_v52  ;;  %v6576_v48 = vpop.f32.mrb[70].mxu0 }
 0x295   :  { %v6577_v56 = vpop.f32.mrb[71].mxu0 }
 0x296   :  { %v9565_v12 = vadd.f32 %v6577_v56, %v6576_v48 }
 0x29a   :  { %v6579_v57 = vpop.f32.mrb[72].mxu0 }
 0x29b   :  { %v6580_v25 = vpop.f32.mrb[73].mxu0 }
 0x29c   :  { %v9567_v9 = vadd.f32 %v6580_v25, %v6579_v57  ;;  %v6582_v6 = vpop.f32.mrb[74].mxu0 }
 0x29d   :  { %v6583_v36 = vpop.f32.mrb[75].mxu0 }
 0x29e   :  { %v9569_v38 = vadd.f32 %v6583_v36, %v6582_v6 }
 0x2a2   :  { %v6585_v14 = vpop.f32.mrb[76].mxu0 }
 0x2a3   :  { %v6586_v51 = vpop.f32.mrb[77].mxu0 }
 0x2a4   :  { %v9571_v2 = vadd.f32 %v6586_v51, %v6585_v14  ;;  %v6588_v46 = vpop.f32.mrb[78].mxu0 }
 0x2a5   :  { %v6589_v30 = vpop.f32.mrb[79].mxu0 }
 0x2a6   :  { %v9573_v35 = vadd.f32 %v6589_v30, %v6588_v46 }
 0x2aa   :  { %v6591_v45 = vpop.f32.mrb[80].mxu0 }
 0x2ab   :  { %v6592_v20 = vpop.f32.mrb[81].mxu0 }
 0x2ac   :  { %v9575_v43 = vadd.f32 %v6592_v20, %v6591_v45  ;;  %v6594_v17 = vpop.f32.mrb[82].mxu0 }
 0x2ad   :  { %v6595_v5 = vpop.f32.mrb[83].mxu0 }
 0x2ae   :  { %v9577_v50 = vadd.f32 %v6595_v5, %v6594_v17 }
 0x2b2   :  { %v6597_v3 = vpop.f32.mrb[84].mxu0 }
 0x2b3   :  { %v6598_v59 = vpop.f32.mrb[85].mxu0 }
 0x2b4   :  { %v9579_v42 = vadd.f32 %v6598_v59, %v6597_v3  ;;  %v6600_v0 = vpop.f32.mrb[86].mxu0 }
 0x2b5   :  { %v6601_v4 = vpop.f32.mrb[87].mxu0 }
 0x2b6   :  { %v9581_v18 = vadd.f32 %v6601_v4, %v6600_v0 }
 0x2ba   :  { %v6603_v62 = vpop.f32.mrb[88].mxu0 }
 0x2bb   :  { %v6604_v19 = vpop.f32.mrb[89].mxu0 }
 0x2bc   :  { %v9583_v7 = vadd.f32 %v6604_v19, %v6603_v62  ;;  %v6606_v33 = vpop.f32.mrb[90].mxu0 }
 0x2bd   :  { %v6607_v24 = vpop.f32.mrb[91].mxu0 }
 0x2be   :  { %v9585_v16 = vadd.f32 %v6607_v24, %v6606_v33 }
 0x2c2   :  { %v6609_v8 = vpop.f32.mrb[92].mxu0 }
 0x2c3   :  { %v6610_v31 = vpop.f32.mrb[93].mxu0 }
 0x2c4   :  { %v9587_v26 = vadd.f32 %v6610_v31, %v6609_v8  ;;  %v6612_v10 = vpop.f32.mrb[94].mxu0 }
 0x2c5   :  { %v6613_v58 = vpop.f32.mrb[95].mxu0 }
 0x2c6   :  { %v9589_v60 = vadd.f32 %v6613_v58, %v6612_v10 }
 0x2c7   :  { %v6727_v11 = vpop.f32.mrb[64].mxu1 }
 0x2c8   :  { %v6728_v29 = vpop.f32.mrb[65].mxu1 }
 0x2c9   :  { %v6729_v23 = vadd.f32 %v6728_v29, %v6727_v11  ;;  %v6730_v28 = vpop.f32.mrb[66].mxu1 }
 0x2ca   :  { %v6731_v40 = vpop.f32.mrb[67].mxu1  ;;  %v6647_v53 = vpop.f32.mrb[96].mxu0 }
 0x2cb   :  { %v6732_v15 = vadd.f32 %v6731_v40, %v6730_v28  ;;  %v6648_v34 = vpop.f32.mrb[97].mxu0 }
 0x2cc   :  { %v6649_v44 = vadd.f32 %v6648_v34, %v6647_v53  ;;  %v6650_v32 = vpop.f32.mrb[98].mxu0 }
 0x2cd   :  { %v6651_v61 = vpop.f32.mrb[99].mxu0 }
 0x2ce   :  { %v7082_v22 = vadd.f32 %v6649_v44, %v6569_v37  ;;  %v6652_v47 = vadd.f32 %v6651_v61, %v6650_v32 }
 0x2cf   :  { %v6733_v55 = vpop.f32.mrb[68].mxu1 }
 0x2d0   :  { %v7088_v21 = vadd.f32 %v6652_v47, %v6572_v1  ;;  %v6734_v13 = vpop.f32.mrb[69].mxu1  ;;  %v9591_v49 = vadd.f32 %v7082_v22, %v6729_v23 }
 0x2d1   :  { %v6735_v39 = vadd.f32 %v6734_v13, %v6733_v55  ;;  %v6736_v63 = vpop.f32.mrb[70].mxu1 }
 0x2d2   :  { %v6737_v54 = vpop.f32.mrb[71].mxu1  ;;  %v6653_v52 = vpop.f32.mrb[100].mxu0  ;;  %v9593_v41 = vadd.f32 %v7088_v21, %v6732_v15 }
 0x2d3   :  { %v6738_v48 = vadd.f32 %v6737_v54, %v6736_v63  ;;  %v6654_v56 = vpop.f32.mrb[101].mxu0 }
 0x2d4   :  { %v6655_v57 = vadd.f32 %v6654_v56, %v6653_v52  ;;  %v6656_v25 = vpop.f32.mrb[102].mxu0 }
 0x2d5   :  { %v6657_v6 = vpop.f32.mrb[103].mxu0 }
 0x2d6   :  { %v7079_v36 = vadd.f32 %v6655_v57, %v9563_v27  ;;  %v6658_v37 = vadd.f32 %v6657_v6, %v6656_v25 }
 0x2d7   :  { %v6739_v14 = vpop.f32.mrb[72].mxu1 }
 0x2d8   :  { %v7085_v1 = vadd.f32 %v6658_v37, %v9565_v12  ;;  %v6740_v51 = vpop.f32.mrb[73].mxu1  ;;  %v9597_v46 = vadd.f32 %v7079_v36, %v6735_v39 }
 0x2d9   :  { %v6741_v30 = vadd.f32 %v6740_v51, %v6739_v14  ;;  %v6742_v45 = vpop.f32.mrb[74].mxu1 }
 0x2da   :  { %v6743_v20 = vpop.f32.mrb[75].mxu1  ;;  %v6659_v17 = vpop.f32.mrb[104].mxu0  ;;  %v9599_v5 = vadd.f32 %v7085_v1, %v6738_v48 }
 0x2db   :  { %v6744_v3 = vadd.f32 %v6743_v20, %v6742_v45  ;;  %v6660_v59 = vpop.f32.mrb[105].mxu0 }
 0x2dc   :  { %v6661_v0 = vadd.f32 %v6660_v59, %v6659_v17  ;;  %v6662_v4 = vpop.f32.mrb[106].mxu0 }
 0x2dd   :  { %v6663_v62 = vpop.f32.mrb[107].mxu0 }
 0x2de   :  { %v7094_v27 = vadd.f32 %v6661_v0, %v9567_v9  ;;  %v6664_v19 = vadd.f32 %v6663_v62, %v6662_v4 }
 0x2df   :  { %v6745_v33 = vpop.f32.mrb[76].mxu1 }
 0x2e0   :  { %v7100_v12 = vadd.f32 %v6664_v19, %v9569_v38  ;;  %v6746_v24 = vpop.f32.mrb[77].mxu1  ;;  %v9603_v8 = vadd.f32 %v7094_v27, %v6741_v30 }
 0x2e1   :  { %v6747_v31 = vadd.f32 %v6746_v24, %v6745_v33  ;;  %v6748_v10 = vpop.f32.mrb[78].mxu1 }
 0x2e2   :  { %v6749_v58 = vpop.f32.mrb[79].mxu1  ;;  %v6665_v11 = vpop.f32.mrb[108].mxu0  ;;  %v9605_v29 = vadd.f32 %v7100_v12, %v6744_v3 }
 0x2e3   :  { %v6750_v23 = vadd.f32 %v6749_v58, %v6748_v10  ;;  %v6666_v28 = vpop.f32.mrb[109].mxu0 }
 0x2e4   :  { %v6667_v40 = vadd.f32 %v6666_v28, %v6665_v11  ;;  %v6668_v53 = vpop.f32.mrb[110].mxu0 }
 0x2e5   :  { %v6669_v15 = vpop.f32.mrb[111].mxu0 }
 0x2e6   :  { %v7091_v9 = vadd.f32 %v6667_v40, %v9571_v2  ;;  %v6670_v34 = vadd.f32 %v6669_v15, %v6668_v53 }
 0x2e7   :  { %v6751_v44 = vpop.f32.mrb[80].mxu1 }
 0x2e8   :  { %v7097_v38 = vadd.f32 %v6670_v34, %v9573_v35  ;;  %v6752_v32 = vpop.f32.mrb[81].mxu1  ;;  %v9609_v61 = vadd.f32 %v7091_v9, %v6747_v31 }
 0x2e9   :  { %v6753_v22 = vadd.f32 %v6752_v32, %v6751_v44  ;;  %v6754_v47 = vpop.f32.mrb[82].mxu1 }
 0x2ea   :  { %v6755_v55 = vpop.f32.mrb[83].mxu1  ;;  %v6671_v21 = vpop.f32.mrb[112].mxu0  ;;  %v9611_v13 = vadd.f32 %v7097_v38, %v6750_v23 }
 0x2eb   :  { %v6756_v39 = vadd.f32 %v6755_v55, %v6754_v47  ;;  %v6672_v63 = vpop.f32.mrb[113].mxu0 }
 0x2ec   :  { %v6673_v54 = vadd.f32 %v6672_v63, %v6671_v21  ;;  %v6674_v52 = vpop.f32.mrb[114].mxu0 }
 0x2ed   :  { %v6675_v48 = vpop.f32.mrb[115].mxu0 }
 0x2ee   :  { %v7106_v2 = vadd.f32 %v6673_v54, %v9575_v43  ;;  %v6676_v56 = vadd.f32 %v6675_v48, %v6674_v52 }
 0x2ef   :  { %v6757_v57 = vpop.f32.mrb[84].mxu1 }
 0x2f0   :  { %v7112_v35 = vadd.f32 %v6676_v56, %v9577_v50  ;;  %v6758_v25 = vpop.f32.mrb[85].mxu1  ;;  %v9615_v6 = vadd.f32 %v7106_v2, %v6753_v22  ;;  %v9642_v56 = vld [vmem:[%s9768_s8] ss:$0 sm:$0xff] }
 0x2f1   :  { %v6759_v36 = vadd.f32 %v6758_v25, %v6757_v57  ;;  %v6760_v37 = vpop.f32.mrb[86].mxu1 }
 0x2f2   :  { %v6761_v14 = vpop.f32.mrb[87].mxu1  ;;  %v6677_v1 = vpop.f32.mrb[116].mxu0  ;;  %v9617_v51 = vadd.f32 %v7112_v35, %v6756_v39 }
 0x2f3   :  { %v6762_v30 = vadd.f32 %v6761_v14, %v6760_v37  ;;  %v6678_v45 = vpop.f32.mrb[117].mxu0  ;;  %v9657_v14 = vld [vmem:[%s9770_s9] ss:$0 sm:$0xff] }
 0x2f4   :  { %v6679_v20 = vadd.f32 %v6678_v45, %v6677_v1  ;;  %v6680_v17 = vpop.f32.mrb[118].mxu0 }
 0x2f5   :  { %v6681_v3 = vpop.f32.mrb[119].mxu0 }
 0x2f6   :  { %v7103_v43 = vadd.f32 %v6679_v20, %v9579_v42  ;;  %v6682_v59 = vadd.f32 %v6681_v3, %v6680_v17 }
 0x2f7   :  { %v6763_v0 = vpop.f32.mrb[88].mxu1 }
 0x2f8   :  { %v7109_v50 = vadd.f32 %v6682_v59, %v9581_v18  ;;  %v6764_v4 = vpop.f32.mrb[89].mxu1  ;;  %v9621_v62 = vadd.f32 %v7103_v43, %v6759_v36  ;;  %v9651_v36 = vld [vmem:[%s9769_s6] ss:$0 sm:$0xff] }
 0x2f9   :  { %v6765_v27 = vadd.f32 %v6764_v4, %v6763_v0  ;;  %v6766_v19 = vpop.f32.mrb[90].mxu1 }
 0x2fa   :  { %v6767_v33 = vpop.f32.mrb[91].mxu1  ;;  %v6683_v12 = vpop.f32.mrb[120].mxu0  ;;  %v9623_v24 = vadd.f32 %v7109_v50, %v6762_v30 }
 0x2fb   :  { %v6768_v31 = vadd.f32 %v6767_v33, %v6766_v19  ;;  %v6684_v10 = vpop.f32.mrb[121].mxu0 }
 0x2fc   :  { %v6685_v58 = vadd.f32 %v6684_v10, %v6683_v12  ;;  %v6686_v11 = vpop.f32.mrb[122].mxu0 }
 0x2fd   :  { %v6687_v23 = vpop.f32.mrb[123].mxu0 }
 0x2fe   :  { %v7118_v42 = vadd.f32 %v6685_v58, %v9583_v7  ;;  %v6688_v28 = vadd.f32 %v6687_v23, %v6686_v11 }
 0x2ff   :  { %v6769_v40 = vpop.f32.mrb[92].mxu1 }
 0x300   :  { %v7124_v18 = vadd.f32 %v6688_v28, %v9585_v16  ;;  %v6770_v53 = vpop.f32.mrb[93].mxu1  ;;  %v9627_v15 = vadd.f32 %v7118_v42, %v6765_v27  ;;  %v9635_v16 = vld [vmem:[%s9767_s5] ss:$0 sm:$0xff] }
 0x301   :  { %v6771_v9 = vadd.f32 %v6770_v53, %v6769_v40  ;;  %v6772_v34 = vpop.f32.mrb[94].mxu1 }
 0x302   :  { %v6773_v44 = vpop.f32.mrb[95].mxu1  ;;  %v6689_v38 = vpop.f32.mrb[124].mxu0  ;;  %v9629_v32 = vadd.f32 %v7124_v18, %v6768_v31 }
 0x303   :  { %v6774_v22 = vadd.f32 %v6773_v44, %v6772_v34  ;;  %v6690_v47 = vpop.f32.mrb[125].mxu0 }
 0x304   :  { %v6691_v55 = vadd.f32 %v6690_v47, %v6689_v38  ;;  %v6692_v21 = vpop.f32.mrb[126].mxu0 }
 0x305   :  { %v6693_v39 = vpop.f32.mrb[127].mxu0 }
 0x306   :  { %v7115_v7 = vadd.f32 %v6691_v55, %v9587_v26  ;;  %v6694_v63 = vadd.f32 %v6693_v39, %v6692_v21 }
 0x307   :  { %v6985_v54 = vpop.f32.mrb[48].mxu1 }
 0x308   :  { %v7121_v52 = vadd.f32 %v6694_v63, %v9589_v60  ;;  %v7081_v48 = vadd.f32 %v9597_v46, %v6985_v54  ;;  %v4994_v2 = vpop.f32.mrb[49].mxu1  ;;  %v9644_v57 = vadd.f32 %v7115_v7, %v6771_v9 }
 0x309   :  { %v7084_v26 = vadd.f32 %v9591_v49, %v4994_v2  ;;  %v6986_v35 = vpop.f32.mrb[50].mxu1 }
 0x30a   :  { %v5082_v25 = vmul.f32 %v7081_v48, %v9635_v16  ;;  %v7087_v60 = vadd.f32 %v9599_v5, %v6986_v35  ;;  %v4997_v46 = vpop.f32.mrb[51].mxu1  ;;  %v7017_v37 = vpop.f32.mrb[128].mxu0  ;;  %v9659_v1 = vadd.f32 %v7121_v52, %v6774_v22 }
 0x30b   :  { %v5080_v49 = vmul.f32 %v7084_v26, %v9635_v16  ;;  %v7090_v30 = vadd.f32 %v9593_v41, %v4997_v46  ;;  %v5353_v45 = vmul.f32 %v7017_v37, %v9642_v56  ;;  %v5281_v20 = vpop.f32.mrb[129].mxu0 }
 0x30c   :  { %v5083_v17 = vmul.f32 %v7087_v60, %v9635_v16  ;;  %v5351_v5 = vmul.f32 %v9642_v56, %v5281_v20  ;;  %v7018_v3 = vpop.f32.mrb[130].mxu0  ;;  %v5105_v43 = vadd.f32 %v9651_v36, %v5082_v25 }
 0x30d   :  { %v5081_v59 = vmul.f32 %v7090_v30, %v9635_v16  ;;  %v5376_v0 = vadd.f32 %v9657_v14, %v5353_v45  ;;  %v5354_v50 = vmul.f32 %v7018_v3, %v9642_v56  ;;  %v5284_v4 = vpop.f32.mrb[131].mxu0  ;;  %v5103_v27 = vadd.f32 %v9651_v36, %v5080_v49 }
 0x30e   :  { %v5374_v41 = vadd.f32 %v9657_v14, %v5351_v5  ;;  %v5352_v19 = vmul.f32 %v9642_v56, %v5284_v4  ;;  %v5106_v33 = vadd.f32 %v9651_v36, %v5083_v17 }
 0x30f   :  { %v5392_v12 = vadd.f32 %v5376_v0, %v5105_v43  ;;  %v5377_v31 = vadd.f32 %v9657_v14, %v5354_v50  ;;  %v6989_v10 = vpop.f32.mrb[52].mxu1  ;;  %v5104_v58 = vadd.f32 %v9651_v36, %v5081_v59 }
 0x310   :  { %v5390_v11 = vadd.f32 %v5374_v41, %v5103_v27  ;;  %v5375_v23 = vadd.f32 %v9657_v14, %v5352_v19  ;;  %v7093_v42 = vadd.f32 %v9609_v61, %v6989_v10  ;;  %v5010_v28 = vpop.f32.mrb[53].mxu1 }
 0x311   :  { %v5393_v40 = vadd.f32 %v5377_v31, %v5106_v33  ;;  %v7096_v18 = vadd.f32 %v9603_v8, %v5010_v28  ;;  %v6990_v53 = vpop.f32.mrb[54].mxu1  ;;  %v5408_v9 = vmax.f32 %v5392_v12, 0.0 }
 0x312   :  { %v5391_v34 = vadd.f32 %v5375_v23, %v5104_v58  ;;  %v5086_v44 = vmul.f32 %v7093_v42, %v9635_v16  ;;  %v7099_v38 = vadd.f32 %v9611_v13, %v6990_v53  ;;  %v5013_v22 = vpop.f32.mrb[55].mxu1  ;;  %v7021_v47 = vpop.f32.mrb[132].mxu0  ;;  %v5406_v63 = vmax.f32 %v5390_v11, 0.0 }
 0x313   :  { %v5409_v55 = vmax.f32 %v5393_v40, 0.0  ;;  %v5084_v21 = vmul.f32 %v7096_v18, %v9635_v16  ;;  %v7102_v39 = vadd.f32 %v9605_v29, %v5013_v22  ;;  %v5357_v61 = vmul.f32 %v7021_v47, %v9642_v56  ;;  %v5297_v7 = vpop.f32.mrb[133].mxu0 }
 0x314   :  { %v5407_v54 = vmax.f32 %v5391_v34, 0.0  ;;  %v5087_v8 = vmul.f32 %v7099_v38, %v9635_v16  ;;  %v5355_v52 = vmul.f32 %v9642_v56, %v5297_v7  ;;  %v7022_v48 = vpop.f32.mrb[134].mxu0  ;;  %v5109_v13 = vadd.f32 %v9651_v36, %v5086_v44 }
 0x315   :  { %v6272_v2 = vpack.c.bf16 %v5409_v55, %v5408_v9  ;;  %v5085_v26 = vmul.f32 %v7102_v39, %v9635_v16  ;;  %v5380_v35 = vadd.f32 %v9657_v14, %v5357_v61  ;;  %v5300_v25 = vpop.f32.mrb[135].mxu0  ;;  %v5107_v29 = vadd.f32 %v9651_v36, %v5084_v21 }
 0x316   :  { %v6267_v60 = vpack.c.bf16 %v5407_v54, %v5406_v63  ;;  %v5378_v46 = vadd.f32 %v9657_v14, %v5355_v52  ;;  %v5358_v37 = vmul.f32 %v7022_v48, %v9642_v56  ;;  %v5356_v30 = vmul.f32 %v9642_v56, %v5300_v25 }
 0x317   :  { %6304 = vst [vmem:[%s9771_s10 + $0x8] sm:$0xff] %v6272_v2   ;;  %v5396_v49 = vadd.f32 %v5380_v35, %v5109_v13  ;;  %v6993_v45 = vpop.f32.mrb[56].mxu1  ;;  %v5110_v20 = vadd.f32 %v9651_v36, %v5087_v8  ;;  %v5108_v59 = vadd.f32 %v9651_v36, %v5085_v26 }
 0x318   :  { %6268 = vst [vmem:[%s9771_s10] sm:$0xff] %v6267_v60   ;;  %v5394_v17 = vadd.f32 %v5378_v46, %v5107_v29  ;;  %v5381_v5 = vadd.f32 %v9657_v14, %v5358_v37  ;;  %v7105_v3 = vadd.f32 %v9621_v62, %v6993_v45  ;;  %v5026_v43 = vpop.f32.mrb[57].mxu1  ;;  %v5379_v0 = vadd.f32 %v9657_v14, %v5356_v30 }
 0x319   :  { %v7108_v50 = vadd.f32 %v9615_v6, %v5026_v43  ;;  %v6994_v4 = vpop.f32.mrb[58].mxu1  ;;  %v5412_v27 = vmax.f32 %v5396_v49, 0.0 }
 0x31a   :  { %v5397_v41 = vadd.f32 %v5381_v5, %v5110_v20  ;;  %v5090_v19 = vmul.f32 %v7105_v3, %v9635_v16  ;;  %v7111_v33 = vadd.f32 %v9623_v24, %v6994_v4  ;;  %v5029_v12 = vpop.f32.mrb[59].mxu1  ;;  %v7025_v31 = vpop.f32.mrb[136].mxu0  ;;  %v5395_v10 = vadd.f32 %v5379_v0, %v5108_v59 }
 0x31b   :  { %v5088_v58 = vmul.f32 %v7108_v50, %v9635_v16  ;;  %v7114_v62 = vadd.f32 %v9617_v51, %v5029_v12  ;;  %v5361_v11 = vmul.f32 %v7025_v31, %v9642_v56  ;;  %v5313_v23 = vpop.f32.mrb[137].mxu0  ;;  %v5410_v42 = vmax.f32 %v5394_v17, 0.0 }
 0x31c   :  { %v5413_v28 = vmax.f32 %v5397_v41, 0.0  ;;  %v5091_v6 = vmul.f32 %v7111_v33, %v9635_v16  ;;  %v5359_v40 = vmul.f32 %v9642_v56, %v5313_v23  ;;  %v7026_v18 = vpop.f32.mrb[138].mxu0  ;;  %v5411_v53 = vmax.f32 %v5395_v10, 0.0 }
 0x31d   :  { %v5113_v24 = vadd.f32 %v9651_v36, %v5090_v19  ;;  %v5089_v9 = vmul.f32 %v7114_v62, %v9635_v16  ;;  %v5384_v34 = vadd.f32 %v9657_v14, %v5361_v11  ;;  %v5316_v44 = vpop.f32.mrb[139].mxu0  ;;  %v5111_v51 = vadd.f32 %v9651_v36, %v5088_v58 }
 0x31e   :  { %v6282_v38 = vpack.c.bf16 %v5413_v28, %v5412_v27  ;;  %v5382_v22 = vadd.f32 %v9657_v14, %v5359_v40  ;;  %v5362_v47 = vmul.f32 %v7026_v18, %v9642_v56  ;;  %v6277_v55 = vpack.c.bf16 %v5411_v53, %v5410_v42 }
 0x31f   :  { %v5400_v21 = vadd.f32 %v5384_v34, %v5113_v24  ;;  %v5360_v39 = vmul.f32 %v9642_v56, %v5316_v44  ;;  %v6997_v61 = vpop.f32.mrb[60].mxu1  ;;  %v5114_v7 = vadd.f32 %v9651_v36, %v5091_v6  ;;  %v5112_v48 = vadd.f32 %v9651_v36, %v5089_v9 }
 0x320   :  { %6306 = vst [vmem:[%s9771_s10 + $0x18] sm:$0xff] %v6282_v38   ;;  %v5398_v63 = vadd.f32 %v5382_v22, %v5111_v51  ;;  %v5385_v54 = vadd.f32 %v9657_v14, %v5362_v47  ;;  %v7117_v8 = vadd.f32 %v9644_v57, %v6997_v61  ;;  %v5042_v52 = vpop.f32.mrb[61].mxu1  ;;  %6305 = vst [vmem:[%s9771_s10 + $0x10] sm:$0xff] %v6277_v55  }
 0x321   :  { %v5383_v2 = vadd.f32 %v9657_v14, %v5360_v39  ;;  %v7120_v13 = vadd.f32 %v9627_v15, %v5042_v52  ;;  %v6998_v26 = vpop.f32.mrb[62].mxu1  ;;  %v5416_v35 = vmax.f32 %v5400_v21, 0.0 }
 0x322   :  { %v5401_v25 = vadd.f32 %v5385_v54, %v5114_v7  ;;  %v5094_v60 = vmul.f32 %v7117_v8, %v9635_v16  ;;  %v7123_v29 = vadd.f32 %v9659_v1, %v6998_v26  ;;  %v5045_v46 = vpop.f32.mrb[63].mxu1  ;;  %v7029_v57 = vpop.f32.mrb[140].mxu0  ;;  %v5414_v17 = vmax.f32 %v5398_v63, 0.0 }
 0x323   :  { %v5399_v37 = vadd.f32 %v5383_v2, %v5112_v48  ;;  %v5092_v49 = vmul.f32 %v7120_v13, %v9635_v16  ;;  %v7126_v30 = vadd.f32 %v9629_v32, %v5045_v46  ;;  %v5365_v45 = vmul.f32 %v7029_v57, %v9642_v56  ;;  %v5329_v20 = vpop.f32.mrb[141].mxu0 }
 0x324   :  { %v5417_v5 = vmax.f32 %v5401_v25, 0.0  ;;  %v5095_v15 = vmul.f32 %v7123_v29, %v9635_v16  ;;  %v5363_v3 = vmul.f32 %v9642_v56, %v5329_v20  ;;  %v7030_v43 = vpop.f32.mrb[142].mxu0  ;;  %v5117_v1 = vadd.f32 %v9651_v36, %v5094_v60 }
 0x325   :  { %v5415_v59 = vmax.f32 %v5399_v37, 0.0  ;;  %v5093_v0 = vmul.f32 %v7126_v30, %v9635_v16  ;;  %v5388_v50 = vadd.f32 %v9657_v14, %v5365_v45  ;;  %v5332_v4 = vpop.f32.mrb[143].mxu0  ;;  %v5115_v32 = vadd.f32 %v9651_v36, %v5092_v49 }
 0x326   :  { %v6292_v27 = vpack.c.bf16 %v5417_v5, %v5416_v35  ;;  %v5386_v41 = vadd.f32 %v9657_v14, %v5363_v3  ;;  %v5366_v19 = vmul.f32 %v7030_v43, %v9642_v56  ;;  %v5364_v31 = vmul.f32 %v9642_v56, %v5332_v4 }
 0x327   :  { %v6287_v33 = vpack.c.bf16 %v5415_v59, %v5414_v17  ;;  %v5404_v12 = vadd.f32 %v5388_v50, %v5117_v1  ;;  %v5118_v16 = vadd.f32 %v9651_v36, %v5095_v15  ;;  %v5116_v62 = vadd.f32 %v9651_v36, %v5093_v0 }
 0x328   :  { %6308 = vst [vmem:[%s9771_s10 + $0x28] sm:$0xff] %v6292_v27   ;;  %v5402_v10 = vadd.f32 %v5386_v41, %v5115_v32  ;;  %v5389_v58 = vadd.f32 %v9657_v14, %v5366_v19  ;;  %v5387_v11 = vadd.f32 %v9657_v14, %v5364_v31 }
 0x329   :  { %6307 = vst [vmem:[%s9771_s10 + $0x20] sm:$0xff] %v6287_v33   ;;  %v5420_v56 = vmax.f32 %v5404_v12, 0.0 }
 0x32a   :  { %v5405_v23 = vadd.f32 %v5389_v58, %v5118_v16  ;;  %v5403_v42 = vadd.f32 %v5387_v11, %v5116_v62  ;;  %v5418_v6 = vmax.f32 %v5402_v10, 0.0 }
 0x32c   :  { %v5421_v28 = vmax.f32 %v5405_v23, 0.0  ;;  %v5419_v40 = vmax.f32 %v5403_v42, 0.0 }
 0x32e   :  { %v6302_v18 = vpack.c.bf16 %v5421_v28, %v5420_v56  ;;  %v6297_v53 = vpack.c.bf16 %v5419_v40, %v5418_v6 }
 0x330   :  { %6310 = vst [vmem:[%s9771_s10 + $0x38] sm:$0xff] %v6302_v18   ;;  %6309 = vst [vmem:[%s9771_s10 + $0x30] sm:$0xff] %v6297_v53  }

</bundles_post_ra>
